<compile_context>
chip_gen: v6e
topology: v6e:2x2x1
jax: 0.10.0
libtpu: 0.0.40
codegen_flags: <defaults>
</compile_context>

<pallas_src>
import numpy as np

import jax
import jax.numpy as jnp
from jax.experimental import pallas as pl
from jax.experimental.pallas import tpu as pltpu

BN_EPS = 1e-5


def _sigmoid(x):
    return 1.0 / (1.0 + jnp.exp(-x))


# ----------------------------------------------------------------------------
# Per-image forward: everything stays in VMEM / vregs.
# ----------------------------------------------------------------------------
def _image_forward(xb_ref, ob_ref, w1_ref, w2_ref, wf1_ref, wf2_ref, wf3_ref,
                   ep1_ref, ep2_ref, ep3_ref, ep4_ref, b3_ref,
                   s_ref, p1_ref):
    # ---------------- Conv block 1: 5x5 (3->6) + sigmoid + BN + ReLU + pool ----
    # xb_ref: (32, 128) image rows, lane layout w*3 + c (96 used, zero padded).
    # w1_ref[kh]: (128, 256) band matrix; out col = (ow%2)*128 + co*14 + ow//2.
    y1 = jnp.dot(xb_ref[pl.ds(0, 28), :], w1_ref[0],
                 preferred_element_type=jnp.float32)
    for kh in range(1, 5):
        y1 = y1 + jnp.dot(xb_ref[pl.ds(kh, 28), :], w1_ref[kh],
                          preferred_element_type=jnp.float32)
    bias = ep1_ref[pl.ds(0, 1), :]
    scale = ep1_ref[pl.ds(1, 1), :]
    shift = ep1_ref[pl.ds(2, 1), :]
    y1 = _sigmoid(y1 + bias)
    y1 = jnp.maximum(y1 * scale + shift, 0.0)
    # 2x2 maxpool, width direction: even/odd ow live in separate lane blocks.
    yw = jnp.maximum(y1[:, 0:128], y1[:, 128:256])            # (28, 128)
    s_ref[pl.ds(0, 28), :] = yw
    # 2x2 maxpool, height direction -> pooled1 (14 rows, col = ci*14 + ow').
    for p in range(14):
        p1_ref[pl.ds(p, 1), :] = jnp.maximum(s_ref[pl.ds(2 * p, 1), :],
                                             s_ref[pl.ds(2 * p + 1, 1), :])

    # ---------------- Conv block 2: 5x5 (6->16) + sigmoid + BN + ReLU + pool ---
    y2 = jnp.dot(p1_ref[pl.ds(0, 10), :], w2_ref[0],
                 preferred_element_type=jnp.float32)
    for kh in range(1, 5):
        y2 = y2 + jnp.dot(p1_ref[pl.ds(kh, 10), :], w2_ref[kh],
                          preferred_element_type=jnp.float32)
    bias = ep2_ref[pl.ds(0, 1), :]
    scale = ep2_ref[pl.ds(1, 1), :]
    shift = ep2_ref[pl.ds(2, 1), :]
    y2 = _sigmoid(y2 + bias)
    y2 = jnp.maximum(y2 * scale + shift, 0.0)
    y2w = jnp.maximum(y2[:, 0:128], y2[:, 128:256])           # (10, 128)
    s_ref[pl.ds(0, 10), :] = y2w

    # ---------------- FC1: height-pool + NCHW flatten folded into 5 matmuls ----
    a = jnp.zeros((1, 128), jnp.float32)
    for h in range(5):
        row = jnp.maximum(s_ref[pl.ds(2 * h, 1), :],
                          s_ref[pl.ds(2 * h + 1, 1), :])      # pooled2 row h
        a = a + jnp.dot(row, wf1_ref[h], preferred_element_type=jnp.float32)
    bias = ep3_ref[pl.ds(0, 1), :]
    scale = ep3_ref[pl.ds(1, 1), :]
    shift = ep3_ref[pl.ds(2, 1), :]
    a = _sigmoid(a + bias)
    a = jnp.maximum(a * scale + shift, 0.0)

    # ---------------- FC2 ------------------------------------------------------
    a = jnp.dot(a, wf2_ref[...], preferred_element_type=jnp.float32)
    bias = ep4_ref[pl.ds(0, 1), :]
    scale = ep4_ref[pl.ds(1, 1), :]
    shift = ep4_ref[pl.ds(2, 1), :]
    a = _sigmoid(a + bias)
    a = jnp.maximum(a * scale + shift, 0.0)

    # ---------------- FC3 + final sigmoid (no BN / ReLU) ----------------------
    a = jnp.dot(a, wf3_ref[...], preferred_element_type=jnp.float32)
    a = _sigmoid(a + b3_ref[...])
    ob_ref[...] = jnp.broadcast_to(a, (8, 128))               # lane-dense output


# ----------------------------------------------------------------------------
# Kernel body: one grid step == a block of BB images.
# ----------------------------------------------------------------------------
def _lenet_kernel(x_ref, w1_ref, w2_ref, wf1_ref, wf2_ref, wf3_ref,
                  ep1_ref, ep2_ref, ep3_ref, ep4_ref, b3_ref,
                  o_ref, s_ref, p1_ref):
    bb = x_ref.shape[0]
    for b in range(bb):                                       # unrolled, bb small
        _image_forward(x_ref.at[b], o_ref.at[b],
                       w1_ref, w2_ref, wf1_ref, wf2_ref, wf3_ref,
                       ep1_ref, ep2_ref, ep3_ref, ep4_ref, b3_ref,
                       s_ref, p1_ref)


# ----------------------------------------------------------------------------
# Wrapper-side packing: band weight matrices, folded BN, lane padding.
# ----------------------------------------------------------------------------
def _pack_operands(x_nchw, p):
    B = x_nchw.shape[0]
    # Input: NCHW -> per-image rows with lanes = w*3 + c, zero padded to 128.
    x = jnp.transpose(x_nchw, (0, 2, 3, 1)).reshape(B, 32, 96)
    x = jnp.pad(x, ((0, 0), (0, 0), (0, 32)))

    # Conv1 band weights (5, 128, 256): row = (ow+kw)*3+ci, col = pw*128+co*14+ow'.
    kh, kw, ci, co, ow = np.meshgrid(np.arange(5), np.arange(5), np.arange(3),
                                     np.arange(6), np.arange(28), indexing="ij")
    w1 = jnp.zeros((5, 128, 256), jnp.float32).at[
        kh, (ow + kw) * 3 + ci, (ow % 2) * 128 + co * 14 + ow // 2
    ].set(p["conv1_w"][kh, kw, ci, co])

    # Conv2 band weights (5, 128, 256): row = ci*14+(ow+kw), col = pw*128+co*5+ow'.
    kh, kw, ci, co, ow = np.meshgrid(np.arange(5), np.arange(5), np.arange(6),
                                     np.arange(16), np.arange(10), indexing="ij")
    w2 = jnp.zeros((5, 128, 256), jnp.float32).at[
        kh, ci * 14 + ow + kw, (ow % 2) * 128 + co * 5 + ow // 2
    ].set(p["conv2_w"][kh, kw, ci, co])

    # FC weights, permuted to the kernel's (spatial row h, c*5+w) flatten layout.
    wf1 = p["fc1_w"].reshape(16, 5, 5, 120).transpose(1, 0, 2, 3).reshape(5, 80, 120)
    wf1 = jnp.zeros((5, 128, 128), jnp.float32).at[:, :80, :120].set(wf1)
    wf2 = jnp.zeros((128, 128), jnp.float32).at[:120, :84].set(p["fc2_w"])
    wf3 = jnp.zeros((128, 128), jnp.float32).at[:84, :10].set(p["fc3_w"])

    # Epilogues: bias + eval-BatchNorm folded into per-column scale/shift.
    def bn_affine(g, be, m, v):
        s = g * jax.lax.rsqrt(v + BN_EPS)
        return s, be - m * s

    def conv_ep(bias, g, be, m, v, n_ch, n_w):
        s, sh = bn_affine(g, be, m, v)

        def cols(vec):
            half = jnp.zeros((128,), jnp.float32).at[:n_ch * n_w].set(
                jnp.repeat(vec, n_w))
            return jnp.concatenate([half, half])

        return jnp.stack([cols(bias), cols(s), cols(sh)])          # (3, 256)

    def fc_ep(bias, g, be, m, v, n_out):
        s, sh = bn_affine(g, be, m, v)

        def pad(vec):
            return jnp.zeros((128,), jnp.float32).at[:n_out].set(vec)

        return jnp.stack([pad(bias), pad(s), pad(sh)])             # (3, 128)

    ep1 = conv_ep(p["conv1_b"], p["bn1_g"], p["bn1_b"], p["bn1_m"], p["bn1_v"], 6, 14)
    ep2 = conv_ep(p["conv2_b"], p["bn2_g"], p["bn2_b"], p["bn2_m"], p["bn2_v"], 16, 5)
    ep3 = fc_ep(p["fc1_b"], p["bn3_g"], p["bn3_b"], p["bn3_m"], p["bn3_v"], 120)
    ep4 = fc_ep(p["fc2_b"], p["bn4_g"], p["bn4_b"], p["bn4_m"], p["bn4_v"], 84)
    b3 = jnp.zeros((1, 128), jnp.float32).at[0, :10].set(p["fc3_b"])

    return x, w1, w2, wf1, wf2, wf3, ep1, ep2, ep3, ep4, b3


# ----------------------------------------------------------------------------
# Full forward (train=False path of VariationalDropoutLeNet)
# ----------------------------------------------------------------------------
def lenet_forward(x_nchw, params, block_b=8):
    B = x_nchw.shape[0]
    BB = int(min(block_b, B))                      # images per grid step
    Bp = ((B + BB - 1) // BB) * BB                 # padded batch
    if Bp != B:
        x_nchw = jnp.pad(x_nchw, ((0, Bp - B), (0, 0), (0, 0), (0, 0)))

    ops = _pack_operands(x_nchw, params)

    flops = Bp * 2 * (5 * 28 * 128 * 256 + 5 * 10 * 128 * 256 + 7 * 128 * 128)
    transc = Bp * (28 * 256 + 10 * 256 + 3 * 128)
    nbytes = sum(int(np.prod(o.shape)) * 4 for o in ops) + Bp * 8 * 128 * 4

    out = pl.pallas_call(
        _lenet_kernel,
        out_shape=jax.ShapeDtypeStruct((Bp, 8, 128), jnp.float32),
        grid_spec=pltpu.PrefetchScalarGridSpec(
            num_scalar_prefetch=0,
            grid=(Bp // BB,),
            in_specs=[
                pl.BlockSpec((BB, 32, 128), lambda b: (b, 0, 0)),     # image rows
                pl.BlockSpec((5, 128, 256), lambda b: (0, 0, 0)),     # conv1 bands
                pl.BlockSpec((5, 128, 256), lambda b: (0, 0, 0)),     # conv2 bands
                pl.BlockSpec((5, 128, 128), lambda b: (0, 0, 0)),     # fc1 (per row)
                pl.BlockSpec((128, 128), lambda b: (0, 0)),           # fc2
                pl.BlockSpec((128, 128), lambda b: (0, 0)),           # fc3
                pl.BlockSpec((3, 256), lambda b: (0, 0)),             # conv1 bias/scale/shift
                pl.BlockSpec((3, 256), lambda b: (0, 0)),             # conv2 bias/scale/shift
                pl.BlockSpec((3, 128), lambda b: (0, 0)),             # fc1 bias/scale/shift
                pl.BlockSpec((3, 128), lambda b: (0, 0)),             # fc2 bias/scale/shift
                pl.BlockSpec((1, 128), lambda b: (0, 0)),             # fc3 bias
            ],
            out_specs=pl.BlockSpec((BB, 8, 128), lambda b: (b, 0, 0)),
            scratch_shapes=[pltpu.VMEM((32, 128), jnp.float32),       # conv row buffer
                            pltpu.VMEM((16, 128), jnp.float32)],      # pooled1 buffer
        ),
        compiler_params=pltpu.CompilerParams(
            dimension_semantics=("parallel",)),
        cost_estimate=pl.CostEstimate(flops=flops, transcendentals=transc,
                                      bytes_accessed=nbytes),
    )(*ops)
    return out[:B, 0, :10]                                          # (B, 10) logits


# ----------------------------------------------------------------------------
# Pure-JAX reference (same eval-mode math) for a correctness self-check.
# ----------------------------------------------------------------------------
def lenet_reference(x_nchw, p):
    x = jnp.transpose(x_nchw, (0, 2, 3, 1))

    def conv_block(x, w, b, g, be, m, v):
        y = jax.lax.conv_general_dilated(
            x, w, window_strides=(1, 1), padding="VALID",
            dimension_numbers=("NHWC", "HWIO", "NHWC"))
        y = _sigmoid(y + b)
        y = (y - m) * jax.lax.rsqrt(v + BN_EPS) * g + be
        y = jnp.maximum(y, 0.0)
        return jax.lax.reduce_window(y, -jnp.inf, jax.lax.max,
                                     (1, 2, 2, 1), (1, 2, 2, 1), "VALID")

    y = conv_block(x, p["conv1_w"], p["conv1_b"], p["bn1_g"], p["bn1_b"],
                   p["bn1_m"], p["bn1_v"])
    y = conv_block(y, p["conv2_w"], p["conv2_b"], p["bn2_g"], p["bn2_b"],
                   p["bn2_m"], p["bn2_v"])
    B = y.shape[0]
    y = jnp.transpose(y, (0, 3, 1, 2)).reshape(B, 400)                # NCHW flatten

    def fc_block(y, w, b, g, be, m, v):
        y = _sigmoid(y @ w + b)
        y = (y - m) * jax.lax.rsqrt(v + BN_EPS) * g + be
        return jnp.maximum(y, 0.0)

    y = fc_block(y, p["fc1_w"], p["fc1_b"], p["bn3_g"], p["bn3_b"],
                 p["bn3_m"], p["bn3_v"])
    y = fc_block(y, p["fc2_w"], p["fc2_b"], p["bn4_g"], p["bn4_b"],
                 p["bn4_m"], p["bn4_v"])
    return _sigmoid(y @ p["fc3_w"] + p["fc3_b"])


# ----------------------------------------------------------------------------
# Deterministic parameter initialization (shapes from the module's __init__)
# ----------------------------------------------------------------------------
def init_params(key):
    ks = jax.random.split(key, 10)

    def normal(k, shape, scale):
        return scale * jax.random.normal(k, shape, jnp.float32)

    params = {
        'conv1_w': normal(ks[0], (5, 5, 3, 6), 0.1),     # (KH, KW, Cin, Cout)
        'conv1_b': normal(ks[1], (6,), 0.1),
        'conv2_w': normal(ks[2], (5, 5, 6, 16), 0.1),
        'conv2_b': normal(ks[3], (16,), 0.1),
        'fc1_w': normal(ks[4], (400, 120), 0.05),        # (in, out)
        'fc1_b': normal(ks[5], (120,), 0.05),
        'fc2_w': normal(ks[6], (120, 84), 0.05),
        'fc2_b': normal(ks[7], (84,), 0.05),
        'fc3_w': normal(ks[8], (84, 10), 0.05),
        'fc3_b': normal(ks[9], (10,), 0.05),
    }
    # BatchNorm: PyTorch default init / fresh running stats (eval mode).
    for name, n in [('bn1', 6), ('bn2', 16), ('bn3', 120), ('bn4', 84)]:
        params[f'{name}_g'] = jnp.ones((n,), jnp.float32)
        params[f'{name}_b'] = jnp.zeros((n,), jnp.float32)
        params[f'{name}_m'] = jnp.zeros((n,), jnp.float32)
        params[f'{name}_v'] = jnp.ones((n,), jnp.float32)
    return params


if __name__ == "__main__":
    key = jax.random.PRNGKey(0)
    kx, kp = jax.random.split(key)
    # PyTorch-style NCHW input: batch=2, channels=3, spatial=32 (fixed by the net).
    x = jax.random.normal(kx, (2, 3, 32, 32), jnp.float32)
    params = init_params(kp)

    out = jax.jit(lenet_forward)(x, params)
    out = jax.block_until_ready(out)
    assert out.shape == (2, 10) and out.dtype == jnp.float32

    ref = jax.block_until_ready(jax.jit(lenet_reference)(x, params))
    max_err = float(jnp.max(jnp.abs(out - ref)))
    assert max_err < 5e-3, f"mismatch vs reference: max abs err {max_err}"
    print("KERNEL_OK")
</pallas_src>

<mosaic_0001>
module attributes {stable_mosaic.version = 11 : i64} {
  func.func @_lenet_kernel(%arg0: i32, %arg1: memref<2x32x128xf32, #tpu.memory_space<vmem>>, %arg2: memref<5x128x256xf32, #tpu.memory_space<vmem>>, %arg3: memref<5x128x256xf32, #tpu.memory_space<vmem>>, %arg4: memref<5x128x128xf32, #tpu.memory_space<vmem>>, %arg5: memref<128x128xf32, #tpu.memory_space<vmem>>, %arg6: memref<128x128xf32, #tpu.memory_space<vmem>>, %arg7: memref<3x256xf32, #tpu.memory_space<vmem>>, %arg8: memref<3x256xf32, #tpu.memory_space<vmem>>, %arg9: memref<3x128xf32, #tpu.memory_space<vmem>>, %arg10: memref<3x128xf32, #tpu.memory_space<vmem>>, %arg11: memref<1x128xf32, #tpu.memory_space<vmem>>, %arg12: memref<2x8x128xf32, #tpu.memory_space<vmem>>, %arg13: memref<32x128xf32, #tpu.memory_space<vmem>>, %arg14: memref<16x128xf32, #tpu.memory_space<vmem>>) attributes {dimension_semantics = [#tpu.dimension_semantics<parallel>], iteration_bounds = array<i64: 1>, scalar_prefetch = 0 : i64, scratch_operands = 2 : i64, tpu.core_type = #tpu.core_type<tc>, window_params = [{transform_indices = @transform_0, window_bounds = array<i64: 2, 32, 128>}, {pipeline_mode = #tpu.pipeline_mode<synchronous>, transform_indices = @transform_1, window_bounds = array<i64: 5, 128, 256>}, {pipeline_mode = #tpu.pipeline_mode<synchronous>, transform_indices = @transform_2, window_bounds = array<i64: 5, 128, 256>}, {pipeline_mode = #tpu.pipeline_mode<synchronous>, transform_indices = @transform_3, window_bounds = array<i64: 5, 128, 128>}, {pipeline_mode = #tpu.pipeline_mode<synchronous>, transform_indices = @transform_4, window_bounds = array<i64: 128, 128>}, {pipeline_mode = #tpu.pipeline_mode<synchronous>, transform_indices = @transform_5, window_bounds = array<i64: 128, 128>}, {pipeline_mode = #tpu.pipeline_mode<synchronous>, transform_indices = @transform_6, window_bounds = array<i64: 3, 256>}, {pipeline_mode = #tpu.pipeline_mode<synchronous>, transform_indices = @transform_7, window_bounds = array<i64: 3, 256>}, {pipeline_mode = #tpu.pipeline_mode<synchronous>, transform_indices = @transform_8, window_bounds = array<i64: 3, 128>}, {pipeline_mode = #tpu.pipeline_mode<synchronous>, transform_indices = @transform_9, window_bounds = array<i64: 3, 128>}, {pipeline_mode = #tpu.pipeline_mode<synchronous>, transform_indices = @transform_10, window_bounds = array<i64: 1, 128>}, {transform_indices = @transform_11, window_bounds = array<i64: 2, 8, 128>}]} {
    %c0_i32 = arith.constant 0 : i32
    %c0_i32_0 = arith.constant 0 : i32
    %c0_i32_1 = arith.constant 0 : i32
    %0 = tpu.memref_slice %arg1[%c0_i32, %c0_i32_0, %c0_i32_1] : memref<2x32x128xf32, #tpu.memory_space<vmem>> -> memref<1x32x128xf32, #tpu.memory_space<vmem>>
    %1 = tpu.memref_squeeze %0 : memref<1x32x128xf32, #tpu.memory_space<vmem>> -> memref<32x128xf32, #tpu.memory_space<vmem>>
    %c0 = arith.constant 0 : index
    %c0_2 = arith.constant 0 : index
    %2 = vector.load %1[%c0, %c0_2] : memref<32x128xf32, #tpu.memory_space<vmem>>, vector<28x128xf32>
    %c0_3 = arith.constant 0 : index
    %c0_4 = arith.constant 0 : index
    %c0_5 = arith.constant 0 : index
    %3 = vector.load %arg2[%c0_3, %c0_4, %c0_5] : memref<5x128x256xf32, #tpu.memory_space<vmem>>, vector<1x128x256xf32>
    %4 = vector.shape_cast %3 : vector<1x128x256xf32> to vector<128x256xf32>
    %cst = arith.constant dense<0.000000e+00> : vector<28x256xf32>
    %5 = tpu.matmul %2, %4, %cst {dimension_numbers = #tpu.dot_dimension_numbers<[1], [0], [0], [1], [0, 0, 1, 1], [], []>} : vector<28x128xf32>, vector<128x256xf32>, vector<28x256xf32> -> vector<28x256xf32>
    %c0_i32_6 = arith.constant 0 : i32
    %c0_i32_7 = arith.constant 0 : i32
    %c0_i32_8 = arith.constant 0 : i32
    %6 = tpu.memref_slice %arg1[%c0_i32_6, %c0_i32_7, %c0_i32_8] : memref<2x32x128xf32, #tpu.memory_space<vmem>> -> memref<1x32x128xf32, #tpu.memory_space<vmem>>
    %7 = tpu.memref_squeeze %6 : memref<1x32x128xf32, #tpu.memory_space<vmem>> -> memref<32x128xf32, #tpu.memory_space<vmem>>
    %c1 = arith.constant 1 : index
    %c0_9 = arith.constant 0 : index
    %8 = vector.load %7[%c1, %c0_9] : memref<32x128xf32, #tpu.memory_space<vmem>>, vector<28x128xf32>
    %c1_10 = arith.constant 1 : index
    %c0_11 = arith.constant 0 : index
    %c0_12 = arith.constant 0 : index
    %9 = vector.load %arg2[%c1_10, %c0_11, %c0_12] : memref<5x128x256xf32, #tpu.memory_space<vmem>>, vector<1x128x256xf32>
    %10 = vector.shape_cast %9 : vector<1x128x256xf32> to vector<128x256xf32>
    %cst_13 = arith.constant dense<0.000000e+00> : vector<28x256xf32>
    %11 = tpu.matmul %8, %10, %cst_13 {dimension_numbers = #tpu.dot_dimension_numbers<[1], [0], [0], [1], [0, 0, 1, 1], [], []>} : vector<28x128xf32>, vector<128x256xf32>, vector<28x256xf32> -> vector<28x256xf32>
    %12 = arith.addf %5, %11 : vector<28x256xf32>
    %c0_i32_14 = arith.constant 0 : i32
    %c0_i32_15 = arith.constant 0 : i32
    %c0_i32_16 = arith.constant 0 : i32
    %13 = tpu.memref_slice %arg1[%c0_i32_14, %c0_i32_15, %c0_i32_16] : memref<2x32x128xf32, #tpu.memory_space<vmem>> -> memref<1x32x128xf32, #tpu.memory_space<vmem>>
    %14 = tpu.memref_squeeze %13 : memref<1x32x128xf32, #tpu.memory_space<vmem>> -> memref<32x128xf32, #tpu.memory_space<vmem>>
    %c2 = arith.constant 2 : index
    %c0_17 = arith.constant 0 : index
    %15 = vector.load %14[%c2, %c0_17] : memref<32x128xf32, #tpu.memory_space<vmem>>, vector<28x128xf32>
    %c2_18 = arith.constant 2 : index
    %c0_19 = arith.constant 0 : index
    %c0_20 = arith.constant 0 : index
    %16 = vector.load %arg2[%c2_18, %c0_19, %c0_20] : memref<5x128x256xf32, #tpu.memory_space<vmem>>, vector<1x128x256xf32>
    %17 = vector.shape_cast %16 : vector<1x128x256xf32> to vector<128x256xf32>
    %cst_21 = arith.constant dense<0.000000e+00> : vector<28x256xf32>
    %18 = tpu.matmul %15, %17, %cst_21 {dimension_numbers = #tpu.dot_dimension_numbers<[1], [0], [0], [1], [0, 0, 1, 1], [], []>} : vector<28x128xf32>, vector<128x256xf32>, vector<28x256xf32> -> vector<28x256xf32>
    %19 = arith.addf %12, %18 : vector<28x256xf32>
    %c0_i32_22 = arith.constant 0 : i32
    %c0_i32_23 = arith.constant 0 : i32
    %c0_i32_24 = arith.constant 0 : i32
    %20 = tpu.memref_slice %arg1[%c0_i32_22, %c0_i32_23, %c0_i32_24] : memref<2x32x128xf32, #tpu.memory_space<vmem>> -> memref<1x32x128xf32, #tpu.memory_space<vmem>>
    %21 = tpu.memref_squeeze %20 : memref<1x32x128xf32, #tpu.memory_space<vmem>> -> memref<32x128xf32, #tpu.memory_space<vmem>>
    %c3 = arith.constant 3 : index
    %c0_25 = arith.constant 0 : index
    %22 = vector.load %21[%c3, %c0_25] : memref<32x128xf32, #tpu.memory_space<vmem>>, vector<28x128xf32>
    %c3_26 = arith.constant 3 : index
    %c0_27 = arith.constant 0 : index
    %c0_28 = arith.constant 0 : index
    %23 = vector.load %arg2[%c3_26, %c0_27, %c0_28] : memref<5x128x256xf32, #tpu.memory_space<vmem>>, vector<1x128x256xf32>
    %24 = vector.shape_cast %23 : vector<1x128x256xf32> to vector<128x256xf32>
    %cst_29 = arith.constant dense<0.000000e+00> : vector<28x256xf32>
    %25 = tpu.matmul %22, %24, %cst_29 {dimension_numbers = #tpu.dot_dimension_numbers<[1], [0], [0], [1], [0, 0, 1, 1], [], []>} : vector<28x128xf32>, vector<128x256xf32>, vector<28x256xf32> -> vector<28x256xf32>
    %26 = arith.addf %19, %25 : vector<28x256xf32>
    %c0_i32_30 = arith.constant 0 : i32
    %c0_i32_31 = arith.constant 0 : i32
    %c0_i32_32 = arith.constant 0 : i32
    %27 = tpu.memref_slice %arg1[%c0_i32_30, %c0_i32_31, %c0_i32_32] : memref<2x32x128xf32, #tpu.memory_space<vmem>> -> memref<1x32x128xf32, #tpu.memory_space<vmem>>
    %28 = tpu.memref_squeeze %27 : memref<1x32x128xf32, #tpu.memory_space<vmem>> -> memref<32x128xf32, #tpu.memory_space<vmem>>
    %c4 = arith.constant 4 : index
    %c0_33 = arith.constant 0 : index
    %29 = vector.load %28[%c4, %c0_33] : memref<32x128xf32, #tpu.memory_space<vmem>>, vector<28x128xf32>
    %c4_34 = arith.constant 4 : index
    %c0_35 = arith.constant 0 : index
    %c0_36 = arith.constant 0 : index
    %30 = vector.load %arg2[%c4_34, %c0_35, %c0_36] : memref<5x128x256xf32, #tpu.memory_space<vmem>>, vector<1x128x256xf32>
    %31 = vector.shape_cast %30 : vector<1x128x256xf32> to vector<128x256xf32>
    %cst_37 = arith.constant dense<0.000000e+00> : vector<28x256xf32>
    %32 = tpu.matmul %29, %31, %cst_37 {dimension_numbers = #tpu.dot_dimension_numbers<[1], [0], [0], [1], [0, 0, 1, 1], [], []>} : vector<28x128xf32>, vector<128x256xf32>, vector<28x256xf32> -> vector<28x256xf32>
    %33 = arith.addf %26, %32 : vector<28x256xf32>
    %c0_38 = arith.constant 0 : index
    %c0_39 = arith.constant 0 : index
    %34 = vector.load %arg7[%c0_38, %c0_39] : memref<3x256xf32, #tpu.memory_space<vmem>>, vector<1x256xf32>
    %c1_40 = arith.constant 1 : index
    %c0_41 = arith.constant 0 : index
    %35 = vector.load %arg7[%c1_40, %c0_41] : memref<3x256xf32, #tpu.memory_space<vmem>>, vector<1x256xf32>
    %c2_42 = arith.constant 2 : index
    %c0_43 = arith.constant 0 : index
    %36 = vector.load %arg7[%c2_42, %c0_43] : memref<3x256xf32, #tpu.memory_space<vmem>>, vector<1x256xf32>
    %37 = vector.broadcast %34 : vector<1x256xf32> to vector<28x256xf32>
    %38 = arith.addf %33, %37 : vector<28x256xf32>
    %cst_44 = arith.constant 0.000000e+00 : f32
    %39 = vector.broadcast %cst_44 : f32 to vector<28x256xf32>
    %40 = arith.subf %39, %38 : vector<28x256xf32>
    %41 = math.exp %40 : vector<28x256xf32>
    %cst_45 = arith.constant 1.000000e+00 : f32
    %42 = vector.broadcast %cst_45 : f32 to vector<28x256xf32>
    %43 = arith.addf %42, %41 : vector<28x256xf32>
    %cst_46 = arith.constant 1.000000e+00 : f32
    %44 = vector.broadcast %cst_46 : f32 to vector<28x256xf32>
    %45 = arith.divf %44, %43 : vector<28x256xf32>
    %46 = vector.broadcast %35 : vector<1x256xf32> to vector<28x256xf32>
    %47 = arith.mulf %45, %46 : vector<28x256xf32>
    %48 = vector.broadcast %36 : vector<1x256xf32> to vector<28x256xf32>
    %49 = arith.addf %47, %48 : vector<28x256xf32>
    %cst_47 = arith.constant 0.000000e+00 : f32
    %50 = vector.broadcast %cst_47 : f32 to vector<28x256xf32>
    %51 = arith.maximumf %49, %50 : vector<28x256xf32>
    %52 = vector.extract_strided_slice %51 {offsets = [0, 0], sizes = [28, 128], strides = [1, 1]} : vector<28x256xf32> to vector<28x128xf32>
    %53 = vector.extract_strided_slice %51 {offsets = [0, 128], sizes = [28, 128], strides = [1, 1]} : vector<28x256xf32> to vector<28x128xf32>
    %54 = arith.maximumf %52, %53 : vector<28x128xf32>
    %c0_48 = arith.constant 0 : index
    %c0_49 = arith.constant 0 : index
    %55 = vector.load %arg13[%c0_48, %c0_49] : memref<32x128xf32, #tpu.memory_space<vmem>>, vector<28x128xf32>
    tpu.vector_store %arg13[%c0_48, %c0_49], %54 {strides = array<i32>} : memref<32x128xf32, #tpu.memory_space<vmem>>, vector<28x128xf32>,
    %c0_50 = arith.constant 0 : index
    %c0_51 = arith.constant 0 : index
    %56 = vector.load %arg13[%c0_50, %c0_51] : memref<32x128xf32, #tpu.memory_space<vmem>>, vector<1x128xf32>
    %c1_52 = arith.constant 1 : index
    %c0_53 = arith.constant 0 : index
    %57 = vector.load %arg13[%c1_52, %c0_53] : memref<32x128xf32, #tpu.memory_space<vmem>>, vector<1x128xf32>
    %58 = arith.maximumf %56, %57 : vector<1x128xf32>
    %c0_54 = arith.constant 0 : index
    %c0_55 = arith.constant 0 : index
    %59 = vector.load %arg14[%c0_54, %c0_55] : memref<16x128xf32, #tpu.memory_space<vmem>>, vector<1x128xf32>
    tpu.vector_store %arg14[%c0_54, %c0_55], %58 {strides = array<i32>} : memref<16x128xf32, #tpu.memory_space<vmem>>, vector<1x128xf32>,
    %c2_56 = arith.constant 2 : index
    %c0_57 = arith.constant 0 : index
    %60 = vector.load %arg13[%c2_56, %c0_57] : memref<32x128xf32, #tpu.memory_space<vmem>>, vector<1x128xf32>
    %c3_58 = arith.constant 3 : index
    %c0_59 = arith.constant 0 : index
    %61 = vector.load %arg13[%c3_58, %c0_59] : memref<32x128xf32, #tpu.memory_space<vmem>>, vector<1x128xf32>
    %62 = arith.maximumf %60, %61 : vector<1x128xf32>
    %c1_60 = arith.constant 1 : index
    %c0_61 = arith.constant 0 : index
    %63 = vector.load %arg14[%c1_60, %c0_61] : memref<16x128xf32, #tpu.memory_space<vmem>>, vector<1x128xf32>
    tpu.vector_store %arg14[%c1_60, %c0_61], %62 {strides = array<i32>} : memref<16x128xf32, #tpu.memory_space<vmem>>, vector<1x128xf32>,
    %c4_62 = arith.constant 4 : index
    %c0_63 = arith.constant 0 : index
    %64 = vector.load %arg13[%c4_62, %c0_63] : memref<32x128xf32, #tpu.memory_space<vmem>>, vector<1x128xf32>
    %c5 = arith.constant 5 : index
    %c0_64 = arith.constant 0 : index
    %65 = vector.load %arg13[%c5, %c0_64] : memref<32x128xf32, #tpu.memory_space<vmem>>, vector<1x128xf32>
    %66 = arith.maximumf %64, %65 : vector<1x128xf32>
    %c2_65 = arith.constant 2 : index
    %c0_66 = arith.constant 0 : index
    %67 = vector.load %arg14[%c2_65, %c0_66] : memref<16x128xf32, #tpu.memory_space<vmem>>, vector<1x128xf32>
    tpu.vector_store %arg14[%c2_65, %c0_66], %66 {strides = array<i32>} : memref<16x128xf32, #tpu.memory_space<vmem>>, vector<1x128xf32>,
    %c6 = arith.constant 6 : index
    %c0_67 = arith.constant 0 : index
    %68 = vector.load %arg13[%c6, %c0_67] : memref<32x128xf32, #tpu.memory_space<vmem>>, vector<1x128xf32>
    %c7 = arith.constant 7 : index
    %c0_68 = arith.constant 0 : index
    %69 = vector.load %arg13[%c7, %c0_68] : memref<32x128xf32, #tpu.memory_space<vmem>>, vector<1x128xf32>
    %70 = arith.maximumf %68, %69 : vector<1x128xf32>
    %c3_69 = arith.constant 3 : index
    %c0_70 = arith.constant 0 : index
    %71 = vector.load %arg14[%c3_69, %c0_70] : memref<16x128xf32, #tpu.memory_space<vmem>>, vector<1x128xf32>
    tpu.vector_store %arg14[%c3_69, %c0_70], %70 {strides = array<i32>} : memref<16x128xf32, #tpu.memory_space<vmem>>, vector<1x128xf32>,
    %c8 = arith.constant 8 : index
    %c0_71 = arith.constant 0 : index
    %72 = vector.load %arg13[%c8, %c0_71] : memref<32x128xf32, #tpu.memory_space<vmem>>, vector<1x128xf32>
    %c9 = arith.constant 9 : index
    %c0_72 = arith.constant 0 : index
    %73 = vector.load %arg13[%c9, %c0_72] : memref<32x128xf32, #tpu.memory_space<vmem>>, vector<1x128xf32>
    %74 = arith.maximumf %72, %73 : vector<1x128xf32>
    %c4_73 = arith.constant 4 : index
    %c0_74 = arith.constant 0 : index
    %75 = vector.load %arg14[%c4_73, %c0_74] : memref<16x128xf32, #tpu.memory_space<vmem>>, vector<1x128xf32>
    tpu.vector_store %arg14[%c4_73, %c0_74], %74 {strides = array<i32>} : memref<16x128xf32, #tpu.memory_space<vmem>>, vector<1x128xf32>,
    %c10 = arith.constant 10 : index
    %c0_75 = arith.constant 0 : index
    %76 = vector.load %arg13[%c10, %c0_75] : memref<32x128xf32, #tpu.memory_space<vmem>>, vector<1x128xf32>
    %c11 = arith.constant 11 : index
    %c0_76 = arith.constant 0 : index
    %77 = vector.load %arg13[%c11, %c0_76] : memref<32x128xf32, #tpu.memory_space<vmem>>, vector<1x128xf32>
    %78 = arith.maximumf %76, %77 : vector<1x128xf32>
    %c5_77 = arith.constant 5 : index
    %c0_78 = arith.constant 0 : index
    %79 = vector.load %arg14[%c5_77, %c0_78] : memref<16x128xf32, #tpu.memory_space<vmem>>, vector<1x128xf32>
    tpu.vector_store %arg14[%c5_77, %c0_78], %78 {strides = array<i32>} : memref<16x128xf32, #tpu.memory_space<vmem>>, vector<1x128xf32>,
    %c12 = arith.constant 12 : index
    %c0_79 = arith.constant 0 : index
    %80 = vector.load %arg13[%c12, %c0_79] : memref<32x128xf32, #tpu.memory_space<vmem>>, vector<1x128xf32>
    %c13 = arith.constant 13 : index
    %c0_80 = arith.constant 0 : index
    %81 = vector.load %arg13[%c13, %c0_80] : memref<32x128xf32, #tpu.memory_space<vmem>>, vector<1x128xf32>
    %82 = arith.maximumf %80, %81 : vector<1x128xf32>
    %c6_81 = arith.constant 6 : index
    %c0_82 = arith.constant 0 : index
    %83 = vector.load %arg14[%c6_81, %c0_82] : memref<16x128xf32, #tpu.memory_space<vmem>>, vector<1x128xf32>
    tpu.vector_store %arg14[%c6_81, %c0_82], %82 {strides = array<i32>} : memref<16x128xf32, #tpu.memory_space<vmem>>, vector<1x128xf32>,
    %c14 = arith.constant 14 : index
    %c0_83 = arith.constant 0 : index
    %84 = vector.load %arg13[%c14, %c0_83] : memref<32x128xf32, #tpu.memory_space<vmem>>, vector<1x128xf32>
    %c15 = arith.constant 15 : index
    %c0_84 = arith.constant 0 : index
    %85 = vector.load %arg13[%c15, %c0_84] : memref<32x128xf32, #tpu.memory_space<vmem>>, vector<1x128xf32>
    %86 = arith.maximumf %84, %85 : vector<1x128xf32>
    %c7_85 = arith.constant 7 : index
    %c0_86 = arith.constant 0 : index
    %87 = vector.load %arg14[%c7_85, %c0_86] : memref<16x128xf32, #tpu.memory_space<vmem>>, vector<1x128xf32>
    tpu.vector_store %arg14[%c7_85, %c0_86], %86 {strides = array<i32>} : memref<16x128xf32, #tpu.memory_space<vmem>>, vector<1x128xf32>,
    %c16 = arith.constant 16 : index
    %c0_87 = arith.constant 0 : index
    %88 = vector.load %arg13[%c16, %c0_87] : memref<32x128xf32, #tpu.memory_space<vmem>>, vector<1x128xf32>
    %c17 = arith.constant 17 : index
    %c0_88 = arith.constant 0 : index
    %89 = vector.load %arg13[%c17, %c0_88] : memref<32x128xf32, #tpu.memory_space<vmem>>, vector<1x128xf32>
    %90 = arith.maximumf %88, %89 : vector<1x128xf32>
    %c8_89 = arith.constant 8 : index
    %c0_90 = arith.constant 0 : index
    %91 = vector.load %arg14[%c8_89, %c0_90] : memref<16x128xf32, #tpu.memory_space<vmem>>, vector<1x128xf32>
    tpu.vector_store %arg14[%c8_89, %c0_90], %90 {strides = array<i32>} : memref<16x128xf32, #tpu.memory_space<vmem>>, vector<1x128xf32>,
    %c18 = arith.constant 18 : index
    %c0_91 = arith.constant 0 : index
    %92 = vector.load %arg13[%c18, %c0_91] : memref<32x128xf32, #tpu.memory_space<vmem>>, vector<1x128xf32>
    %c19 = arith.constant 19 : index
    %c0_92 = arith.constant 0 : index
    %93 = vector.load %arg13[%c19, %c0_92] : memref<32x128xf32, #tpu.memory_space<vmem>>, vector<1x128xf32>
    %94 = arith.maximumf %92, %93 : vector<1x128xf32>
    %c9_93 = arith.constant 9 : index
    %c0_94 = arith.constant 0 : index
    %95 = vector.load %arg14[%c9_93, %c0_94] : memref<16x128xf32, #tpu.memory_space<vmem>>, vector<1x128xf32>
    tpu.vector_store %arg14[%c9_93, %c0_94], %94 {strides = array<i32>} : memref<16x128xf32, #tpu.memory_space<vmem>>, vector<1x128xf32>,
    %c20 = arith.constant 20 : index
    %c0_95 = arith.constant 0 : index
    %96 = vector.load %arg13[%c20, %c0_95] : memref<32x128xf32, #tpu.memory_space<vmem>>, vector<1x128xf32>
    %c21 = arith.constant 21 : index
    %c0_96 = arith.constant 0 : index
    %97 = vector.load %arg13[%c21, %c0_96] : memref<32x128xf32, #tpu.memory_space<vmem>>, vector<1x128xf32>
    %98 = arith.maximumf %96, %97 : vector<1x128xf32>
    %c10_97 = arith.constant 10 : index
    %c0_98 = arith.constant 0 : index
    %99 = vector.load %arg14[%c10_97, %c0_98] : memref<16x128xf32, #tpu.memory_space<vmem>>, vector<1x128xf32>
    tpu.vector_store %arg14[%c10_97, %c0_98], %98 {strides = array<i32>} : memref<16x128xf32, #tpu.memory_space<vmem>>, vector<1x128xf32>,
    %c22 = arith.constant 22 : index
    %c0_99 = arith.constant 0 : index
    %100 = vector.load %arg13[%c22, %c0_99] : memref<32x128xf32, #tpu.memory_space<vmem>>, vector<1x128xf32>
    %c23 = arith.constant 23 : index
    %c0_100 = arith.constant 0 : index
    %101 = vector.load %arg13[%c23, %c0_100] : memref<32x128xf32, #tpu.memory_space<vmem>>, vector<1x128xf32>
    %102 = arith.maximumf %100, %101 : vector<1x128xf32>
    %c11_101 = arith.constant 11 : index
    %c0_102 = arith.constant 0 : index
    %103 = vector.load %arg14[%c11_101, %c0_102] : memref<16x128xf32, #tpu.memory_space<vmem>>, vector<1x128xf32>
    tpu.vector_store %arg14[%c11_101, %c0_102], %102 {strides = array<i32>} : memref<16x128xf32, #tpu.memory_space<vmem>>, vector<1x128xf32>,
    %c24 = arith.constant 24 : index
    %c0_103 = arith.constant 0 : index
    %104 = vector.load %arg13[%c24, %c0_103] : memref<32x128xf32, #tpu.memory_space<vmem>>, vector<1x128xf32>
    %c25 = arith.constant 25 : index
    %c0_104 = arith.constant 0 : index
    %105 = vector.load %arg13[%c25, %c0_104] : memref<32x128xf32, #tpu.memory_space<vmem>>, vector<1x128xf32>
    %106 = arith.maximumf %104, %105 : vector<1x128xf32>
    %c12_105 = arith.constant 12 : index
    %c0_106 = arith.constant 0 : index
    %107 = vector.load %arg14[%c12_105, %c0_106] : memref<16x128xf32, #tpu.memory_space<vmem>>, vector<1x128xf32>
    tpu.vector_store %arg14[%c12_105, %c0_106], %106 {strides = array<i32>} : memref<16x128xf32, #tpu.memory_space<vmem>>, vector<1x128xf32>,
    %c26 = arith.constant 26 : index
    %c0_107 = arith.constant 0 : index
    %108 = vector.load %arg13[%c26, %c0_107] : memref<32x128xf32, #tpu.memory_space<vmem>>, vector<1x128xf32>
    %c27 = arith.constant 27 : index
    %c0_108 = arith.constant 0 : index
    %109 = vector.load %arg13[%c27, %c0_108] : memref<32x128xf32, #tpu.memory_space<vmem>>, vector<1x128xf32>
    %110 = arith.maximumf %108, %109 : vector<1x128xf32>
    %c13_109 = arith.constant 13 : index
    %c0_110 = arith.constant 0 : index
    %111 = vector.load %arg14[%c13_109, %c0_110] : memref<16x128xf32, #tpu.memory_space<vmem>>, vector<1x128xf32>
    tpu.vector_store %arg14[%c13_109, %c0_110], %110 {strides = array<i32>} : memref<16x128xf32, #tpu.memory_space<vmem>>, vector<1x128xf32>,
    %c0_111 = arith.constant 0 : index
    %c0_112 = arith.constant 0 : index
    %112 = vector.load %arg14[%c0_111, %c0_112] : memref<16x128xf32, #tpu.memory_space<vmem>>, vector<10x128xf32>
    %c0_113 = arith.constant 0 : index
    %c0_114 = arith.constant 0 : index
    %c0_115 = arith.constant 0 : index
    %113 = vector.load %arg3[%c0_113, %c0_114, %c0_115] : memref<5x128x256xf32, #tpu.memory_space<vmem>>, vector<1x128x256xf32>
    %114 = vector.shape_cast %113 : vector<1x128x256xf32> to vector<128x256xf32>
    %cst_116 = arith.constant dense<0.000000e+00> : vector<10x256xf32>
    %115 = tpu.matmul %112, %114, %cst_116 {dimension_numbers = #tpu.dot_dimension_numbers<[1], [0], [0], [1], [0, 0, 1, 1], [], []>} : vector<10x128xf32>, vector<128x256xf32>, vector<10x256xf32> -> vector<10x256xf32>
    %c1_117 = arith.constant 1 : index
    %c0_118 = arith.constant 0 : index
    %116 = vector.load %arg14[%c1_117, %c0_118] : memref<16x128xf32, #tpu.memory_space<vmem>>, vector<10x128xf32>
    %c1_119 = arith.constant 1 : index
    %c0_120 = arith.constant 0 : index
    %c0_121 = arith.constant 0 : index
    %117 = vector.load %arg3[%c1_119, %c0_120, %c0_121] : memref<5x128x256xf32, #tpu.memory_space<vmem>>, vector<1x128x256xf32>
    %118 = vector.shape_cast %117 : vector<1x128x256xf32> to vector<128x256xf32>
    %cst_122 = arith.constant dense<0.000000e+00> : vector<10x256xf32>
    %119 = tpu.matmul %116, %118, %cst_122 {dimension_numbers = #tpu.dot_dimension_numbers<[1], [0], [0], [1], [0, 0, 1, 1], [], []>} : vector<10x128xf32>, vector<128x256xf32>, vector<10x256xf32> -> vector<10x256xf32>
    %120 = arith.addf %115, %119 : vector<10x256xf32>
    %c2_123 = arith.constant 2 : index
    %c0_124 = arith.constant 0 : index
    %121 = vector.load %arg14[%c2_123, %c0_124] : memref<16x128xf32, #tpu.memory_space<vmem>>, vector<10x128xf32>
    %c2_125 = arith.constant 2 : index
    %c0_126 = arith.constant 0 : index
    %c0_127 = arith.constant 0 : index
    %122 = vector.load %arg3[%c2_125, %c0_126, %c0_127] : memref<5x128x256xf32, #tpu.memory_space<vmem>>, vector<1x128x256xf32>
    %123 = vector.shape_cast %122 : vector<1x128x256xf32> to vector<128x256xf32>
    %cst_128 = arith.constant dense<0.000000e+00> : vector<10x256xf32>
    %124 = tpu.matmul %121, %123, %cst_128 {dimension_numbers = #tpu.dot_dimension_numbers<[1], [0], [0], [1], [0, 0, 1, 1], [], []>} : vector<10x128xf32>, vector<128x256xf32>, vector<10x256xf32> -> vector<10x256xf32>
    %125 = arith.addf %120, %124 : vector<10x256xf32>
    %c3_129 = arith.constant 3 : index
    %c0_130 = arith.constant 0 : index
    %126 = vector.load %arg14[%c3_129, %c0_130] : memref<16x128xf32, #tpu.memory_space<vmem>>, vector<10x128xf32>
    %c3_131 = arith.constant 3 : index
    %c0_132 = arith.constant 0 : index
    %c0_133 = arith.constant 0 : index
    %127 = vector.load %arg3[%c3_131, %c0_132, %c0_133] : memref<5x128x256xf32, #tpu.memory_space<vmem>>, vector<1x128x256xf32>
    %128 = vector.shape_cast %127 : vector<1x128x256xf32> to vector<128x256xf32>
    %cst_134 = arith.constant dense<0.000000e+00> : vector<10x256xf32>
    %129 = tpu.matmul %126, %128, %cst_134 {dimension_numbers = #tpu.dot_dimension_numbers<[1], [0], [0], [1], [0, 0, 1, 1], [], []>} : vector<10x128xf32>, vector<128x256xf32>, vector<10x256xf32> -> vector<10x256xf32>
    %130 = arith.addf %125, %129 : vector<10x256xf32>
    %c4_135 = arith.constant 4 : index
    %c0_136 = arith.constant 0 : index
    %131 = vector.load %arg14[%c4_135, %c0_136] : memref<16x128xf32, #tpu.memory_space<vmem>>, vector<10x128xf32>
    %c4_137 = arith.constant 4 : index
    %c0_138 = arith.constant 0 : index
    %c0_139 = arith.constant 0 : index
    %132 = vector.load %arg3[%c4_137, %c0_138, %c0_139] : memref<5x128x256xf32, #tpu.memory_space<vmem>>, vector<1x128x256xf32>
    %133 = vector.shape_cast %132 : vector<1x128x256xf32> to vector<128x256xf32>
    %cst_140 = arith.constant dense<0.000000e+00> : vector<10x256xf32>
    %134 = tpu.matmul %131, %133, %cst_140 {dimension_numbers = #tpu.dot_dimension_numbers<[1], [0], [0], [1], [0, 0, 1, 1], [], []>} : vector<10x128xf32>, vector<128x256xf32>, vector<10x256xf32> -> vector<10x256xf32>
    %135 = arith.addf %130, %134 : vector<10x256xf32>
    %c0_141 = arith.constant 0 : index
    %c0_142 = arith.constant 0 : index
    %136 = vector.load %arg8[%c0_141, %c0_142] : memref<3x256xf32, #tpu.memory_space<vmem>>, vector<1x256xf32>
    %c1_143 = arith.constant 1 : index
    %c0_144 = arith.constant 0 : index
    %137 = vector.load %arg8[%c1_143, %c0_144] : memref<3x256xf32, #tpu.memory_space<vmem>>, vector<1x256xf32>
    %c2_145 = arith.constant 2 : index
    %c0_146 = arith.constant 0 : index
    %138 = vector.load %arg8[%c2_145, %c0_146] : memref<3x256xf32, #tpu.memory_space<vmem>>, vector<1x256xf32>
    %139 = vector.broadcast %136 : vector<1x256xf32> to vector<10x256xf32>
    %140 = arith.addf %135, %139 : vector<10x256xf32>
    %cst_147 = arith.constant 0.000000e+00 : f32
    %141 = vector.broadcast %cst_147 : f32 to vector<10x256xf32>
    %142 = arith.subf %141, %140 : vector<10x256xf32>
    %143 = math.exp %142 : vector<10x256xf32>
    %cst_148 = arith.constant 1.000000e+00 : f32
    %144 = vector.broadcast %cst_148 : f32 to vector<10x256xf32>
    %145 = arith.addf %144, %143 : vector<10x256xf32>
    %cst_149 = arith.constant 1.000000e+00 : f32
    %146 = vector.broadcast %cst_149 : f32 to vector<10x256xf32>
    %147 = arith.divf %146, %145 : vector<10x256xf32>
    %148 = vector.broadcast %137 : vector<1x256xf32> to vector<10x256xf32>
    %149 = arith.mulf %147, %148 : vector<10x256xf32>
    %150 = vector.broadcast %138 : vector<1x256xf32> to vector<10x256xf32>
    %151 = arith.addf %149, %150 : vector<10x256xf32>
    %cst_150 = arith.constant 0.000000e+00 : f32
    %152 = vector.broadcast %cst_150 : f32 to vector<10x256xf32>
    %153 = arith.maximumf %151, %152 : vector<10x256xf32>
    %154 = vector.extract_strided_slice %153 {offsets = [0, 0], sizes = [10, 128], strides = [1, 1]} : vector<10x256xf32> to vector<10x128xf32>
    %155 = vector.extract_strided_slice %153 {offsets = [0, 128], sizes = [10, 128], strides = [1, 1]} : vector<10x256xf32> to vector<10x128xf32>
    %156 = arith.maximumf %154, %155 : vector<10x128xf32>
    %c0_151 = arith.constant 0 : index
    %c0_152 = arith.constant 0 : index
    %157 = vector.load %arg13[%c0_151, %c0_152] : memref<32x128xf32, #tpu.memory_space<vmem>>, vector<10x128xf32>
    tpu.vector_store %arg13[%c0_151, %c0_152], %156 {strides = array<i32>} : memref<32x128xf32, #tpu.memory_space<vmem>>, vector<10x128xf32>,
    %cst_153 = arith.constant 0.000000e+00 : f32
    %158 = vector.broadcast %cst_153 : f32 to vector<1x128xf32>
    %c0_154 = arith.constant 0 : index
    %c0_155 = arith.constant 0 : index
    %159 = vector.load %arg13[%c0_154, %c0_155] : memref<32x128xf32, #tpu.memory_space<vmem>>, vector<1x128xf32>
    %c1_156 = arith.constant 1 : index
    %c0_157 = arith.constant 0 : index
    %160 = vector.load %arg13[%c1_156, %c0_157] : memref<32x128xf32, #tpu.memory_space<vmem>>, vector<1x128xf32>
    %161 = arith.maximumf %159, %160 : vector<1x128xf32>
    %c0_158 = arith.constant 0 : index
    %c0_159 = arith.constant 0 : index
    %c0_160 = arith.constant 0 : index
    %162 = vector.load %arg4[%c0_158, %c0_159, %c0_160] : memref<5x128x128xf32, #tpu.memory_space<vmem>>, vector<1x128x128xf32>
    %163 = vector.shape_cast %162 : vector<1x128x128xf32> to vector<128x128xf32>
    %cst_161 = arith.constant dense<0.000000e+00> : vector<1x128xf32>
    %164 = tpu.matmul %161, %163, %cst_161 {dimension_numbers = #tpu.dot_dimension_numbers<[1], [0], [0], [1], [0, 0, 1, 1], [], []>} : vector<1x128xf32>, vector<128x128xf32>, vector<1x128xf32> -> vector<1x128xf32>
    %165 = arith.addf %158, %164 : vector<1x128xf32>
    %c2_162 = arith.constant 2 : index
    %c0_163 = arith.constant 0 : index
    %166 = vector.load %arg13[%c2_162, %c0_163] : memref<32x128xf32, #tpu.memory_space<vmem>>, vector<1x128xf32>
    %c3_164 = arith.constant 3 : index
    %c0_165 = arith.constant 0 : index
    %167 = vector.load %arg13[%c3_164, %c0_165] : memref<32x128xf32, #tpu.memory_space<vmem>>, vector<1x128xf32>
    %168 = arith.maximumf %166, %167 : vector<1x128xf32>
    %c1_166 = arith.constant 1 : index
    %c0_167 = arith.constant 0 : index
    %c0_168 = arith.constant 0 : index
    %169 = vector.load %arg4[%c1_166, %c0_167, %c0_168] : memref<5x128x128xf32, #tpu.memory_space<vmem>>, vector<1x128x128xf32>
    %170 = vector.shape_cast %169 : vector<1x128x128xf32> to vector<128x128xf32>
    %cst_169 = arith.constant dense<0.000000e+00> : vector<1x128xf32>
    %171 = tpu.matmul %168, %170, %cst_169 {dimension_numbers = #tpu.dot_dimension_numbers<[1], [0], [0], [1], [0, 0, 1, 1], [], []>} : vector<1x128xf32>, vector<128x128xf32>, vector<1x128xf32> -> vector<1x128xf32>
    %172 = arith.addf %165, %171 : vector<1x128xf32>
    %c4_170 = arith.constant 4 : index
    %c0_171 = arith.constant 0 : index
    %173 = vector.load %arg13[%c4_170, %c0_171] : memref<32x128xf32, #tpu.memory_space<vmem>>, vector<1x128xf32>
    %c5_172 = arith.constant 5 : index
    %c0_173 = arith.constant 0 : index
    %174 = vector.load %arg13[%c5_172, %c0_173] : memref<32x128xf32, #tpu.memory_space<vmem>>, vector<1x128xf32>
    %175 = arith.maximumf %173, %174 : vector<1x128xf32>
    %c2_174 = arith.constant 2 : index
    %c0_175 = arith.constant 0 : index
    %c0_176 = arith.constant 0 : index
    %176 = vector.load %arg4[%c2_174, %c0_175, %c0_176] : memref<5x128x128xf32, #tpu.memory_space<vmem>>, vector<1x128x128xf32>
    %177 = vector.shape_cast %176 : vector<1x128x128xf32> to vector<128x128xf32>
    %cst_177 = arith.constant dense<0.000000e+00> : vector<1x128xf32>
    %178 = tpu.matmul %175, %177, %cst_177 {dimension_numbers = #tpu.dot_dimension_numbers<[1], [0], [0], [1], [0, 0, 1, 1], [], []>} : vector<1x128xf32>, vector<128x128xf32>, vector<1x128xf32> -> vector<1x128xf32>
    %179 = arith.addf %172, %178 : vector<1x128xf32>
    %c6_178 = arith.constant 6 : index
    %c0_179 = arith.constant 0 : index
    %180 = vector.load %arg13[%c6_178, %c0_179] : memref<32x128xf32, #tpu.memory_space<vmem>>, vector<1x128xf32>
    %c7_180 = arith.constant 7 : index
    %c0_181 = arith.constant 0 : index
    %181 = vector.load %arg13[%c7_180, %c0_181] : memref<32x128xf32, #tpu.memory_space<vmem>>, vector<1x128xf32>
    %182 = arith.maximumf %180, %181 : vector<1x128xf32>
    %c3_182 = arith.constant 3 : index
    %c0_183 = arith.constant 0 : index
    %c0_184 = arith.constant 0 : index
    %183 = vector.load %arg4[%c3_182, %c0_183, %c0_184] : memref<5x128x128xf32, #tpu.memory_space<vmem>>, vector<1x128x128xf32>
    %184 = vector.shape_cast %183 : vector<1x128x128xf32> to vector<128x128xf32>
    %cst_185 = arith.constant dense<0.000000e+00> : vector<1x128xf32>
    %185 = tpu.matmul %182, %184, %cst_185 {dimension_numbers = #tpu.dot_dimension_numbers<[1], [0], [0], [1], [0, 0, 1, 1], [], []>} : vector<1x128xf32>, vector<128x128xf32>, vector<1x128xf32> -> vector<1x128xf32>
    %186 = arith.addf %179, %185 : vector<1x128xf32>
    %c8_186 = arith.constant 8 : index
    %c0_187 = arith.constant 0 : index
    %187 = vector.load %arg13[%c8_186, %c0_187] : memref<32x128xf32, #tpu.memory_space<vmem>>, vector<1x128xf32>
    %c9_188 = arith.constant 9 : index
    %c0_189 = arith.constant 0 : index
    %188 = vector.load %arg13[%c9_188, %c0_189] : memref<32x128xf32, #tpu.memory_space<vmem>>, vector<1x128xf32>
    %189 = arith.maximumf %187, %188 : vector<1x128xf32>
    %c4_190 = arith.constant 4 : index
    %c0_191 = arith.constant 0 : index
    %c0_192 = arith.constant 0 : index
    %190 = vector.load %arg4[%c4_190, %c0_191, %c0_192] : memref<5x128x128xf32, #tpu.memory_space<vmem>>, vector<1x128x128xf32>
    %191 = vector.shape_cast %190 : vector<1x128x128xf32> to vector<128x128xf32>
    %cst_193 = arith.constant dense<0.000000e+00> : vector<1x128xf32>
    %192 = tpu.matmul %189, %191, %cst_193 {dimension_numbers = #tpu.dot_dimension_numbers<[1], [0], [0], [1], [0, 0, 1, 1], [], []>} : vector<1x128xf32>, vector<128x128xf32>, vector<1x128xf32> -> vector<1x128xf32>
    %193 = arith.addf %186, %192 : vector<1x128xf32>
    %c0_194 = arith.constant 0 : index
    %c0_195 = arith.constant 0 : index
    %194 = vector.load %arg9[%c0_194, %c0_195] : memref<3x128xf32, #tpu.memory_space<vmem>>, vector<1x128xf32>
    %c1_196 = arith.constant 1 : index
    %c0_197 = arith.constant 0 : index
    %195 = vector.load %arg9[%c1_196, %c0_197] : memref<3x128xf32, #tpu.memory_space<vmem>>, vector<1x128xf32>
    %c2_198 = arith.constant 2 : index
    %c0_199 = arith.constant 0 : index
    %196 = vector.load %arg9[%c2_198, %c0_199] : memref<3x128xf32, #tpu.memory_space<vmem>>, vector<1x128xf32>
    %197 = arith.addf %193, %194 : vector<1x128xf32>
    %cst_200 = arith.constant 0.000000e+00 : f32
    %198 = vector.broadcast %cst_200 : f32 to vector<1x128xf32>
    %199 = arith.subf %198, %197 : vector<1x128xf32>
    %200 = math.exp %199 : vector<1x128xf32>
    %cst_201 = arith.constant 1.000000e+00 : f32
    %201 = vector.broadcast %cst_201 : f32 to vector<1x128xf32>
    %202 = arith.addf %201, %200 : vector<1x128xf32>
    %cst_202 = arith.constant 1.000000e+00 : f32
    %203 = vector.broadcast %cst_202 : f32 to vector<1x128xf32>
    %204 = arith.divf %203, %202 : vector<1x128xf32>
    %205 = arith.mulf %204, %195 : vector<1x128xf32>
    %206 = arith.addf %205, %196 : vector<1x128xf32>
    %cst_203 = arith.constant 0.000000e+00 : f32
    %207 = vector.broadcast %cst_203 : f32 to vector<1x128xf32>
    %208 = arith.maximumf %206, %207 : vector<1x128xf32>
    %c0_204 = arith.constant 0 : index
    %c0_205 = arith.constant 0 : index
    %209 = vector.load %arg5[%c0_204, %c0_205] : memref<128x128xf32, #tpu.memory_space<vmem>>, vector<128x128xf32>
    %cst_206 = arith.constant dense<0.000000e+00> : vector<1x128xf32>
    %210 = tpu.matmul %208, %209, %cst_206 {dimension_numbers = #tpu.dot_dimension_numbers<[1], [0], [0], [1], [0, 0, 1, 1], [], []>} : vector<1x128xf32>, vector<128x128xf32>, vector<1x128xf32> -> vector<1x128xf32>
    %c0_207 = arith.constant 0 : index
    %c0_208 = arith.constant 0 : index
    %211 = vector.load %arg10[%c0_207, %c0_208] : memref<3x128xf32, #tpu.memory_space<vmem>>, vector<1x128xf32>
    %c1_209 = arith.constant 1 : index
    %c0_210 = arith.constant 0 : index
    %212 = vector.load %arg10[%c1_209, %c0_210] : memref<3x128xf32, #tpu.memory_space<vmem>>, vector<1x128xf32>
    %c2_211 = arith.constant 2 : index
    %c0_212 = arith.constant 0 : index
    %213 = vector.load %arg10[%c2_211, %c0_212] : memref<3x128xf32, #tpu.memory_space<vmem>>, vector<1x128xf32>
    %214 = arith.addf %210, %211 : vector<1x128xf32>
    %cst_213 = arith.constant 0.000000e+00 : f32
    %215 = vector.broadcast %cst_213 : f32 to vector<1x128xf32>
    %216 = arith.subf %215, %214 : vector<1x128xf32>
    %217 = math.exp %216 : vector<1x128xf32>
    %cst_214 = arith.constant 1.000000e+00 : f32
    %218 = vector.broadcast %cst_214 : f32 to vector<1x128xf32>
    %219 = arith.addf %218, %217 : vector<1x128xf32>
    %cst_215 = arith.constant 1.000000e+00 : f32
    %220 = vector.broadcast %cst_215 : f32 to vector<1x128xf32>
    %221 = arith.divf %220, %219 : vector<1x128xf32>
    %222 = arith.mulf %221, %212 : vector<1x128xf32>
    %223 = arith.addf %222, %213 : vector<1x128xf32>
    %cst_216 = arith.constant 0.000000e+00 : f32
    %224 = vector.broadcast %cst_216 : f32 to vector<1x128xf32>
    %225 = arith.maximumf %223, %224 : vector<1x128xf32>
    %c0_217 = arith.constant 0 : index
    %c0_218 = arith.constant 0 : index
    %226 = vector.load %arg6[%c0_217, %c0_218] : memref<128x128xf32, #tpu.memory_space<vmem>>, vector<128x128xf32>
    %cst_219 = arith.constant dense<0.000000e+00> : vector<1x128xf32>
    %227 = tpu.matmul %225, %226, %cst_219 {dimension_numbers = #tpu.dot_dimension_numbers<[1], [0], [0], [1], [0, 0, 1, 1], [], []>} : vector<1x128xf32>, vector<128x128xf32>, vector<1x128xf32> -> vector<1x128xf32>
    %c0_220 = arith.constant 0 : index
    %c0_221 = arith.constant 0 : index
    %228 = vector.load %arg11[%c0_220, %c0_221] : memref<1x128xf32, #tpu.memory_space<vmem>>, vector<1x128xf32>
    %229 = arith.addf %227, %228 : vector<1x128xf32>
    %cst_222 = arith.constant 0.000000e+00 : f32
    %230 = vector.broadcast %cst_222 : f32 to vector<1x128xf32>
    %231 = arith.subf %230, %229 : vector<1x128xf32>
    %232 = math.exp %231 : vector<1x128xf32>
    %cst_223 = arith.constant 1.000000e+00 : f32
    %233 = vector.broadcast %cst_223 : f32 to vector<1x128xf32>
    %234 = arith.addf %233, %232 : vector<1x128xf32>
    %cst_224 = arith.constant 1.000000e+00 : f32
    %235 = vector.broadcast %cst_224 : f32 to vector<1x128xf32>
    %236 = arith.divf %235, %234 : vector<1x128xf32>
    %237 = vector.shape_cast %236 : vector<1x128xf32> to vector<1x128xf32>
    %238 = vector.broadcast %237 : vector<1x128xf32> to vector<8x128xf32>
    %c0_225 = arith.constant 0 : index
    %c0_226 = arith.constant 0 : index
    %c0_227 = arith.constant 0 : index
    %239 = vector.load %arg12[%c0_225, %c0_226, %c0_227] : memref<2x8x128xf32, #tpu.memory_space<vmem>>, vector<1x8x128xf32>
    %240 = vector.shape_cast %239 : vector<1x8x128xf32> to vector<8x128xf32>
    %241 = vector.shape_cast %238 : vector<8x128xf32> to vector<1x8x128xf32>
    tpu.vector_store %arg12[%c0_225, %c0_226, %c0_227], %241 {strides = array<i32>} : memref<2x8x128xf32, #tpu.memory_space<vmem>>, vector<1x8x128xf32>,
    %c1_i32 = arith.constant 1 : i32
    %c0_i32_228 = arith.constant 0 : i32
    %c0_i32_229 = arith.constant 0 : i32
    %242 = tpu.memref_slice %arg1[%c1_i32, %c0_i32_228, %c0_i32_229] : memref<2x32x128xf32, #tpu.memory_space<vmem>> -> memref<1x32x128xf32, #tpu.memory_space<vmem>>
    %243 = tpu.memref_squeeze %242 : memref<1x32x128xf32, #tpu.memory_space<vmem>> -> memref<32x128xf32, #tpu.memory_space<vmem>>
    %c0_230 = arith.constant 0 : index
    %c0_231 = arith.constant 0 : index
    %244 = vector.load %243[%c0_230, %c0_231] : memref<32x128xf32, #tpu.memory_space<vmem>>, vector<28x128xf32>
    %c0_232 = arith.constant 0 : index
    %c0_233 = arith.constant 0 : index
    %c0_234 = arith.constant 0 : index
    %245 = vector.load %arg2[%c0_232, %c0_233, %c0_234] : memref<5x128x256xf32, #tpu.memory_space<vmem>>, vector<1x128x256xf32>
    %246 = vector.shape_cast %245 : vector<1x128x256xf32> to vector<128x256xf32>
    %cst_235 = arith.constant dense<0.000000e+00> : vector<28x256xf32>
    %247 = tpu.matmul %244, %246, %cst_235 {dimension_numbers = #tpu.dot_dimension_numbers<[1], [0], [0], [1], [0, 0, 1, 1], [], []>} : vector<28x128xf32>, vector<128x256xf32>, vector<28x256xf32> -> vector<28x256xf32>
    %c1_i32_236 = arith.constant 1 : i32
    %c0_i32_237 = arith.constant 0 : i32
    %c0_i32_238 = arith.constant 0 : i32
    %248 = tpu.memref_slice %arg1[%c1_i32_236, %c0_i32_237, %c0_i32_238] : memref<2x32x128xf32, #tpu.memory_space<vmem>> -> memref<1x32x128xf32, #tpu.memory_space<vmem>>
    %249 = tpu.memref_squeeze %248 : memref<1x32x128xf32, #tpu.memory_space<vmem>> -> memref<32x128xf32, #tpu.memory_space<vmem>>
    %c1_239 = arith.constant 1 : index
    %c0_240 = arith.constant 0 : index
    %250 = vector.load %249[%c1_239, %c0_240] : memref<32x128xf32, #tpu.memory_space<vmem>>, vector<28x128xf32>
    %c1_241 = arith.constant 1 : index
    %c0_242 = arith.constant 0 : index
    %c0_243 = arith.constant 0 : index
    %251 = vector.load %arg2[%c1_241, %c0_242, %c0_243] : memref<5x128x256xf32, #tpu.memory_space<vmem>>, vector<1x128x256xf32>
    %252 = vector.shape_cast %251 : vector<1x128x256xf32> to vector<128x256xf32>
    %cst_244 = arith.constant dense<0.000000e+00> : vector<28x256xf32>
    %253 = tpu.matmul %250, %252, %cst_244 {dimension_numbers = #tpu.dot_dimension_numbers<[1], [0], [0], [1], [0, 0, 1, 1], [], []>} : vector<28x128xf32>, vector<128x256xf32>, vector<28x256xf32> -> vector<28x256xf32>
    %254 = arith.addf %247, %253 : vector<28x256xf32>
    %c1_i32_245 = arith.constant 1 : i32
    %c0_i32_246 = arith.constant 0 : i32
    %c0_i32_247 = arith.constant 0 : i32
    %255 = tpu.memref_slice %arg1[%c1_i32_245, %c0_i32_246, %c0_i32_247] : memref<2x32x128xf32, #tpu.memory_space<vmem>> -> memref<1x32x128xf32, #tpu.memory_space<vmem>>
    %256 = tpu.memref_squeeze %255 : memref<1x32x128xf32, #tpu.memory_space<vmem>> -> memref<32x128xf32, #tpu.memory_space<vmem>>
    %c2_248 = arith.constant 2 : index
    %c0_249 = arith.constant 0 : index
    %257 = vector.load %256[%c2_248, %c0_249] : memref<32x128xf32, #tpu.memory_space<vmem>>, vector<28x128xf32>
    %c2_250 = arith.constant 2 : index
    %c0_251 = arith.constant 0 : index
    %c0_252 = arith.constant 0 : index
    %258 = vector.load %arg2[%c2_250, %c0_251, %c0_252] : memref<5x128x256xf32, #tpu.memory_space<vmem>>, vector<1x128x256xf32>
    %259 = vector.shape_cast %258 : vector<1x128x256xf32> to vector<128x256xf32>
    %cst_253 = arith.constant dense<0.000000e+00> : vector<28x256xf32>
    %260 = tpu.matmul %257, %259, %cst_253 {dimension_numbers = #tpu.dot_dimension_numbers<[1], [0], [0], [1], [0, 0, 1, 1], [], []>} : vector<28x128xf32>, vector<128x256xf32>, vector<28x256xf32> -> vector<28x256xf32>
    %261 = arith.addf %254, %260 : vector<28x256xf32>
    %c1_i32_254 = arith.constant 1 : i32
    %c0_i32_255 = arith.constant 0 : i32
    %c0_i32_256 = arith.constant 0 : i32
    %262 = tpu.memref_slice %arg1[%c1_i32_254, %c0_i32_255, %c0_i32_256] : memref<2x32x128xf32, #tpu.memory_space<vmem>> -> memref<1x32x128xf32, #tpu.memory_space<vmem>>
    %263 = tpu.memref_squeeze %262 : memref<1x32x128xf32, #tpu.memory_space<vmem>> -> memref<32x128xf32, #tpu.memory_space<vmem>>
    %c3_257 = arith.constant 3 : index
    %c0_258 = arith.constant 0 : index
    %264 = vector.load %263[%c3_257, %c0_258] : memref<32x128xf32, #tpu.memory_space<vmem>>, vector<28x128xf32>
    %c3_259 = arith.constant 3 : index
    %c0_260 = arith.constant 0 : index
    %c0_261 = arith.constant 0 : index
    %265 = vector.load %arg2[%c3_259, %c0_260, %c0_261] : memref<5x128x256xf32, #tpu.memory_space<vmem>>, vector<1x128x256xf32>
    %266 = vector.shape_cast %265 : vector<1x128x256xf32> to vector<128x256xf32>
    %cst_262 = arith.constant dense<0.000000e+00> : vector<28x256xf32>
    %267 = tpu.matmul %264, %266, %cst_262 {dimension_numbers = #tpu.dot_dimension_numbers<[1], [0], [0], [1], [0, 0, 1, 1], [], []>} : vector<28x128xf32>, vector<128x256xf32>, vector<28x256xf32> -> vector<28x256xf32>
    %268 = arith.addf %261, %267 : vector<28x256xf32>
    %c1_i32_263 = arith.constant 1 : i32
    %c0_i32_264 = arith.constant 0 : i32
    %c0_i32_265 = arith.constant 0 : i32
    %269 = tpu.memref_slice %arg1[%c1_i32_263, %c0_i32_264, %c0_i32_265] : memref<2x32x128xf32, #tpu.memory_space<vmem>> -> memref<1x32x128xf32, #tpu.memory_space<vmem>>
    %270 = tpu.memref_squeeze %269 : memref<1x32x128xf32, #tpu.memory_space<vmem>> -> memref<32x128xf32, #tpu.memory_space<vmem>>
    %c4_266 = arith.constant 4 : index
    %c0_267 = arith.constant 0 : index
    %271 = vector.load %270[%c4_266, %c0_267] : memref<32x128xf32, #tpu.memory_space<vmem>>, vector<28x128xf32>
    %c4_268 = arith.constant 4 : index
    %c0_269 = arith.constant 0 : index
    %c0_270 = arith.constant 0 : index
    %272 = vector.load %arg2[%c4_268, %c0_269, %c0_270] : memref<5x128x256xf32, #tpu.memory_space<vmem>>, vector<1x128x256xf32>
    %273 = vector.shape_cast %272 : vector<1x128x256xf32> to vector<128x256xf32>
    %cst_271 = arith.constant dense<0.000000e+00> : vector<28x256xf32>
    %274 = tpu.matmul %271, %273, %cst_271 {dimension_numbers = #tpu.dot_dimension_numbers<[1], [0], [0], [1], [0, 0, 1, 1], [], []>} : vector<28x128xf32>, vector<128x256xf32>, vector<28x256xf32> -> vector<28x256xf32>
    %275 = arith.addf %268, %274 : vector<28x256xf32>
    %c0_272 = arith.constant 0 : index
    %c0_273 = arith.constant 0 : index
    %276 = vector.load %arg7[%c0_272, %c0_273] : memref<3x256xf32, #tpu.memory_space<vmem>>, vector<1x256xf32>
    %c1_274 = arith.constant 1 : index
    %c0_275 = arith.constant 0 : index
    %277 = vector.load %arg7[%c1_274, %c0_275] : memref<3x256xf32, #tpu.memory_space<vmem>>, vector<1x256xf32>
    %c2_276 = arith.constant 2 : index
    %c0_277 = arith.constant 0 : index
    %278 = vector.load %arg7[%c2_276, %c0_277] : memref<3x256xf32, #tpu.memory_space<vmem>>, vector<1x256xf32>
    %279 = vector.broadcast %276 : vector<1x256xf32> to vector<28x256xf32>
    %280 = arith.addf %275, %279 : vector<28x256xf32>
    %cst_278 = arith.constant 0.000000e+00 : f32
    %281 = vector.broadcast %cst_278 : f32 to vector<28x256xf32>
    %282 = arith.subf %281, %280 : vector<28x256xf32>
    %283 = math.exp %282 : vector<28x256xf32>
    %cst_279 = arith.constant 1.000000e+00 : f32
    %284 = vector.broadcast %cst_279 : f32 to vector<28x256xf32>
    %285 = arith.addf %284, %283 : vector<28x256xf32>
    %cst_280 = arith.constant 1.000000e+00 : f32
    %286 = vector.broadcast %cst_280 : f32 to vector<28x256xf32>
    %287 = arith.divf %286, %285 : vector<28x256xf32>
    %288 = vector.broadcast %277 : vector<1x256xf32> to vector<28x256xf32>
    %289 = arith.mulf %287, %288 : vector<28x256xf32>
    %290 = vector.broadcast %278 : vector<1x256xf32> to vector<28x256xf32>
    %291 = arith.addf %289, %290 : vector<28x256xf32>
    %cst_281 = arith.constant 0.000000e+00 : f32
    %292 = vector.broadcast %cst_281 : f32 to vector<28x256xf32>
    %293 = arith.maximumf %291, %292 : vector<28x256xf32>
    %294 = vector.extract_strided_slice %293 {offsets = [0, 0], sizes = [28, 128], strides = [1, 1]} : vector<28x256xf32> to vector<28x128xf32>
    %295 = vector.extract_strided_slice %293 {offsets = [0, 128], sizes = [28, 128], strides = [1, 1]} : vector<28x256xf32> to vector<28x128xf32>
    %296 = arith.maximumf %294, %295 : vector<28x128xf32>
    %c0_282 = arith.constant 0 : index
    %c0_283 = arith.constant 0 : index
    %297 = vector.load %arg13[%c0_282, %c0_283] : memref<32x128xf32, #tpu.memory_space<vmem>>, vector<28x128xf32>
    tpu.vector_store %arg13[%c0_282, %c0_283], %296 {strides = array<i32>} : memref<32x128xf32, #tpu.memory_space<vmem>>, vector<28x128xf32>,
    %c0_284 = arith.constant 0 : index
    %c0_285 = arith.constant 0 : index
    %298 = vector.load %arg13[%c0_284, %c0_285] : memref<32x128xf32, #tpu.memory_space<vmem>>, vector<1x128xf32>
    %c1_286 = arith.constant 1 : index
    %c0_287 = arith.constant 0 : index
    %299 = vector.load %arg13[%c1_286, %c0_287] : memref<32x128xf32, #tpu.memory_space<vmem>>, vector<1x128xf32>
    %300 = arith.maximumf %298, %299 : vector<1x128xf32>
    %c0_288 = arith.constant 0 : index
    %c0_289 = arith.constant 0 : index
    %301 = vector.load %arg14[%c0_288, %c0_289] : memref<16x128xf32, #tpu.memory_space<vmem>>, vector<1x128xf32>
    tpu.vector_store %arg14[%c0_288, %c0_289], %300 {strides = array<i32>} : memref<16x128xf32, #tpu.memory_space<vmem>>, vector<1x128xf32>,
    %c2_290 = arith.constant 2 : index
    %c0_291 = arith.constant 0 : index
    %302 = vector.load %arg13[%c2_290, %c0_291] : memref<32x128xf32, #tpu.memory_space<vmem>>, vector<1x128xf32>
    %c3_292 = arith.constant 3 : index
    %c0_293 = arith.constant 0 : index
    %303 = vector.load %arg13[%c3_292, %c0_293] : memref<32x128xf32, #tpu.memory_space<vmem>>, vector<1x128xf32>
    %304 = arith.maximumf %302, %303 : vector<1x128xf32>
    %c1_294 = arith.constant 1 : index
    %c0_295 = arith.constant 0 : index
    %305 = vector.load %arg14[%c1_294, %c0_295] : memref<16x128xf32, #tpu.memory_space<vmem>>, vector<1x128xf32>
    tpu.vector_store %arg14[%c1_294, %c0_295], %304 {strides = array<i32>} : memref<16x128xf32, #tpu.memory_space<vmem>>, vector<1x128xf32>,
    %c4_296 = arith.constant 4 : index
    %c0_297 = arith.constant 0 : index
    %306 = vector.load %arg13[%c4_296, %c0_297] : memref<32x128xf32, #tpu.memory_space<vmem>>, vector<1x128xf32>
    %c5_298 = arith.constant 5 : index
    %c0_299 = arith.constant 0 : index
    %307 = vector.load %arg13[%c5_298, %c0_299] : memref<32x128xf32, #tpu.memory_space<vmem>>, vector<1x128xf32>
    %308 = arith.maximumf %306, %307 : vector<1x128xf32>
    %c2_300 = arith.constant 2 : index
    %c0_301 = arith.constant 0 : index
    %309 = vector.load %arg14[%c2_300, %c0_301] : memref<16x128xf32, #tpu.memory_space<vmem>>, vector<1x128xf32>
    tpu.vector_store %arg14[%c2_300, %c0_301], %308 {strides = array<i32>} : memref<16x128xf32, #tpu.memory_space<vmem>>, vector<1x128xf32>,
    %c6_302 = arith.constant 6 : index
    %c0_303 = arith.constant 0 : index
    %310 = vector.load %arg13[%c6_302, %c0_303] : memref<32x128xf32, #tpu.memory_space<vmem>>, vector<1x128xf32>
    %c7_304 = arith.constant 7 : index
    %c0_305 = arith.constant 0 : index
    %311 = vector.load %arg13[%c7_304, %c0_305] : memref<32x128xf32, #tpu.memory_space<vmem>>, vector<1x128xf32>
    %312 = arith.maximumf %310, %311 : vector<1x128xf32>
    %c3_306 = arith.constant 3 : index
    %c0_307 = arith.constant 0 : index
    %313 = vector.load %arg14[%c3_306, %c0_307] : memref<16x128xf32, #tpu.memory_space<vmem>>, vector<1x128xf32>
    tpu.vector_store %arg14[%c3_306, %c0_307], %312 {strides = array<i32>} : memref<16x128xf32, #tpu.memory_space<vmem>>, vector<1x128xf32>,
    %c8_308 = arith.constant 8 : index
    %c0_309 = arith.constant 0 : index
    %314 = vector.load %arg13[%c8_308, %c0_309] : memref<32x128xf32, #tpu.memory_space<vmem>>, vector<1x128xf32>
    %c9_310 = arith.constant 9 : index
    %c0_311 = arith.constant 0 : index
    %315 = vector.load %arg13[%c9_310, %c0_311] : memref<32x128xf32, #tpu.memory_space<vmem>>, vector<1x128xf32>
    %316 = arith.maximumf %314, %315 : vector<1x128xf32>
    %c4_312 = arith.constant 4 : index
    %c0_313 = arith.constant 0 : index
    %317 = vector.load %arg14[%c4_312, %c0_313] : memref<16x128xf32, #tpu.memory_space<vmem>>, vector<1x128xf32>
    tpu.vector_store %arg14[%c4_312, %c0_313], %316 {strides = array<i32>} : memref<16x128xf32, #tpu.memory_space<vmem>>, vector<1x128xf32>,
    %c10_314 = arith.constant 10 : index
    %c0_315 = arith.constant 0 : index
    %318 = vector.load %arg13[%c10_314, %c0_315] : memref<32x128xf32, #tpu.memory_space<vmem>>, vector<1x128xf32>
    %c11_316 = arith.constant 11 : index
    %c0_317 = arith.constant 0 : index
    %319 = vector.load %arg13[%c11_316, %c0_317] : memref<32x128xf32, #tpu.memory_space<vmem>>, vector<1x128xf32>
    %320 = arith.maximumf %318, %319 : vector<1x128xf32>
    %c5_318 = arith.constant 5 : index
    %c0_319 = arith.constant 0 : index
    %321 = vector.load %arg14[%c5_318, %c0_319] : memref<16x128xf32, #tpu.memory_space<vmem>>, vector<1x128xf32>
    tpu.vector_store %arg14[%c5_318, %c0_319], %320 {strides = array<i32>} : memref<16x128xf32, #tpu.memory_space<vmem>>, vector<1x128xf32>,
    %c12_320 = arith.constant 12 : index
    %c0_321 = arith.constant 0 : index
    %322 = vector.load %arg13[%c12_320, %c0_321] : memref<32x128xf32, #tpu.memory_space<vmem>>, vector<1x128xf32>
    %c13_322 = arith.constant 13 : index
    %c0_323 = arith.constant 0 : index
    %323 = vector.load %arg13[%c13_322, %c0_323] : memref<32x128xf32, #tpu.memory_space<vmem>>, vector<1x128xf32>
    %324 = arith.maximumf %322, %323 : vector<1x128xf32>
    %c6_324 = arith.constant 6 : index
    %c0_325 = arith.constant 0 : index
    %325 = vector.load %arg14[%c6_324, %c0_325] : memref<16x128xf32, #tpu.memory_space<vmem>>, vector<1x128xf32>
    tpu.vector_store %arg14[%c6_324, %c0_325], %324 {strides = array<i32>} : memref<16x128xf32, #tpu.memory_space<vmem>>, vector<1x128xf32>,
    %c14_326 = arith.constant 14 : index
    %c0_327 = arith.constant 0 : index
    %326 = vector.load %arg13[%c14_326, %c0_327] : memref<32x128xf32, #tpu.memory_space<vmem>>, vector<1x128xf32>
    %c15_328 = arith.constant 15 : index
    %c0_329 = arith.constant 0 : index
    %327 = vector.load %arg13[%c15_328, %c0_329] : memref<32x128xf32, #tpu.memory_space<vmem>>, vector<1x128xf32>
    %328 = arith.maximumf %326, %327 : vector<1x128xf32>
    %c7_330 = arith.constant 7 : index
    %c0_331 = arith.constant 0 : index
    %329 = vector.load %arg14[%c7_330, %c0_331] : memref<16x128xf32, #tpu.memory_space<vmem>>, vector<1x128xf32>
    tpu.vector_store %arg14[%c7_330, %c0_331], %328 {strides = array<i32>} : memref<16x128xf32, #tpu.memory_space<vmem>>, vector<1x128xf32>,
    %c16_332 = arith.constant 16 : index
    %c0_333 = arith.constant 0 : index
    %330 = vector.load %arg13[%c16_332, %c0_333] : memref<32x128xf32, #tpu.memory_space<vmem>>, vector<1x128xf32>
    %c17_334 = arith.constant 17 : index
    %c0_335 = arith.constant 0 : index
    %331 = vector.load %arg13[%c17_334, %c0_335] : memref<32x128xf32, #tpu.memory_space<vmem>>, vector<1x128xf32>
    %332 = arith.maximumf %330, %331 : vector<1x128xf32>
    %c8_336 = arith.constant 8 : index
    %c0_337 = arith.constant 0 : index
    %333 = vector.load %arg14[%c8_336, %c0_337] : memref<16x128xf32, #tpu.memory_space<vmem>>, vector<1x128xf32>
    tpu.vector_store %arg14[%c8_336, %c0_337], %332 {strides = array<i32>} : memref<16x128xf32, #tpu.memory_space<vmem>>, vector<1x128xf32>,
    %c18_338 = arith.constant 18 : index
    %c0_339 = arith.constant 0 : index
    %334 = vector.load %arg13[%c18_338, %c0_339] : memref<32x128xf32, #tpu.memory_space<vmem>>, vector<1x128xf32>
    %c19_340 = arith.constant 19 : index
    %c0_341 = arith.constant 0 : index
    %335 = vector.load %arg13[%c19_340, %c0_341] : memref<32x128xf32, #tpu.memory_space<vmem>>, vector<1x128xf32>
    %336 = arith.maximumf %334, %335 : vector<1x128xf32>
    %c9_342 = arith.constant 9 : index
    %c0_343 = arith.constant 0 : index
    %337 = vector.load %arg14[%c9_342, %c0_343] : memref<16x128xf32, #tpu.memory_space<vmem>>, vector<1x128xf32>
    tpu.vector_store %arg14[%c9_342, %c0_343], %336 {strides = array<i32>} : memref<16x128xf32, #tpu.memory_space<vmem>>, vector<1x128xf32>,
    %c20_344 = arith.constant 20 : index
    %c0_345 = arith.constant 0 : index
    %338 = vector.load %arg13[%c20_344, %c0_345] : memref<32x128xf32, #tpu.memory_space<vmem>>, vector<1x128xf32>
    %c21_346 = arith.constant 21 : index
    %c0_347 = arith.constant 0 : index
    %339 = vector.load %arg13[%c21_346, %c0_347] : memref<32x128xf32, #tpu.memory_space<vmem>>, vector<1x128xf32>
    %340 = arith.maximumf %338, %339 : vector<1x128xf32>
    %c10_348 = arith.constant 10 : index
    %c0_349 = arith.constant 0 : index
    %341 = vector.load %arg14[%c10_348, %c0_349] : memref<16x128xf32, #tpu.memory_space<vmem>>, vector<1x128xf32>
    tpu.vector_store %arg14[%c10_348, %c0_349], %340 {strides = array<i32>} : memref<16x128xf32, #tpu.memory_space<vmem>>, vector<1x128xf32>,
    %c22_350 = arith.constant 22 : index
    %c0_351 = arith.constant 0 : index
    %342 = vector.load %arg13[%c22_350, %c0_351] : memref<32x128xf32, #tpu.memory_space<vmem>>, vector<1x128xf32>
    %c23_352 = arith.constant 23 : index
    %c0_353 = arith.constant 0 : index
    %343 = vector.load %arg13[%c23_352, %c0_353] : memref<32x128xf32, #tpu.memory_space<vmem>>, vector<1x128xf32>
    %344 = arith.maximumf %342, %343 : vector<1x128xf32>
    %c11_354 = arith.constant 11 : index
    %c0_355 = arith.constant 0 : index
    %345 = vector.load %arg14[%c11_354, %c0_355] : memref<16x128xf32, #tpu.memory_space<vmem>>, vector<1x128xf32>
    tpu.vector_store %arg14[%c11_354, %c0_355], %344 {strides = array<i32>} : memref<16x128xf32, #tpu.memory_space<vmem>>, vector<1x128xf32>,
    %c24_356 = arith.constant 24 : index
    %c0_357 = arith.constant 0 : index
    %346 = vector.load %arg13[%c24_356, %c0_357] : memref<32x128xf32, #tpu.memory_space<vmem>>, vector<1x128xf32>
    %c25_358 = arith.constant 25 : index
    %c0_359 = arith.constant 0 : index
    %347 = vector.load %arg13[%c25_358, %c0_359] : memref<32x128xf32, #tpu.memory_space<vmem>>, vector<1x128xf32>
    %348 = arith.maximumf %346, %347 : vector<1x128xf32>
    %c12_360 = arith.constant 12 : index
    %c0_361 = arith.constant 0 : index
    %349 = vector.load %arg14[%c12_360, %c0_361] : memref<16x128xf32, #tpu.memory_space<vmem>>, vector<1x128xf32>
    tpu.vector_store %arg14[%c12_360, %c0_361], %348 {strides = array<i32>} : memref<16x128xf32, #tpu.memory_space<vmem>>, vector<1x128xf32>,
    %c26_362 = arith.constant 26 : index
    %c0_363 = arith.constant 0 : index
    %350 = vector.load %arg13[%c26_362, %c0_363] : memref<32x128xf32, #tpu.memory_space<vmem>>, vector<1x128xf32>
    %c27_364 = arith.constant 27 : index
    %c0_365 = arith.constant 0 : index
    %351 = vector.load %arg13[%c27_364, %c0_365] : memref<32x128xf32, #tpu.memory_space<vmem>>, vector<1x128xf32>
    %352 = arith.maximumf %350, %351 : vector<1x128xf32>
    %c13_366 = arith.constant 13 : index
    %c0_367 = arith.constant 0 : index
    %353 = vector.load %arg14[%c13_366, %c0_367] : memref<16x128xf32, #tpu.memory_space<vmem>>, vector<1x128xf32>
    tpu.vector_store %arg14[%c13_366, %c0_367], %352 {strides = array<i32>} : memref<16x128xf32, #tpu.memory_space<vmem>>, vector<1x128xf32>,
    %c0_368 = arith.constant 0 : index
    %c0_369 = arith.constant 0 : index
    %354 = vector.load %arg14[%c0_368, %c0_369] : memref<16x128xf32, #tpu.memory_space<vmem>>, vector<10x128xf32>
    %c0_370 = arith.constant 0 : index
    %c0_371 = arith.constant 0 : index
    %c0_372 = arith.constant 0 : index
    %355 = vector.load %arg3[%c0_370, %c0_371, %c0_372] : memref<5x128x256xf32, #tpu.memory_space<vmem>>, vector<1x128x256xf32>
    %356 = vector.shape_cast %355 : vector<1x128x256xf32> to vector<128x256xf32>
    %cst_373 = arith.constant dense<0.000000e+00> : vector<10x256xf32>
    %357 = tpu.matmul %354, %356, %cst_373 {dimension_numbers = #tpu.dot_dimension_numbers<[1], [0], [0], [1], [0, 0, 1, 1], [], []>} : vector<10x128xf32>, vector<128x256xf32>, vector<10x256xf32> -> vector<10x256xf32>
    %c1_374 = arith.constant 1 : index
    %c0_375 = arith.constant 0 : index
    %358 = vector.load %arg14[%c1_374, %c0_375] : memref<16x128xf32, #tpu.memory_space<vmem>>, vector<10x128xf32>
    %c1_376 = arith.constant 1 : index
    %c0_377 = arith.constant 0 : index
    %c0_378 = arith.constant 0 : index
    %359 = vector.load %arg3[%c1_376, %c0_377, %c0_378] : memref<5x128x256xf32, #tpu.memory_space<vmem>>, vector<1x128x256xf32>
    %360 = vector.shape_cast %359 : vector<1x128x256xf32> to vector<128x256xf32>
    %cst_379 = arith.constant dense<0.000000e+00> : vector<10x256xf32>
    %361 = tpu.matmul %358, %360, %cst_379 {dimension_numbers = #tpu.dot_dimension_numbers<[1], [0], [0], [1], [0, 0, 1, 1], [], []>} : vector<10x128xf32>, vector<128x256xf32>, vector<10x256xf32> -> vector<10x256xf32>
    %362 = arith.addf %357, %361 : vector<10x256xf32>
    %c2_380 = arith.constant 2 : index
    %c0_381 = arith.constant 0 : index
    %363 = vector.load %arg14[%c2_380, %c0_381] : memref<16x128xf32, #tpu.memory_space<vmem>>, vector<10x128xf32>
    %c2_382 = arith.constant 2 : index
    %c0_383 = arith.constant 0 : index
    %c0_384 = arith.constant 0 : index
    %364 = vector.load %arg3[%c2_382, %c0_383, %c0_384] : memref<5x128x256xf32, #tpu.memory_space<vmem>>, vector<1x128x256xf32>
    %365 = vector.shape_cast %364 : vector<1x128x256xf32> to vector<128x256xf32>
    %cst_385 = arith.constant dense<0.000000e+00> : vector<10x256xf32>
    %366 = tpu.matmul %363, %365, %cst_385 {dimension_numbers = #tpu.dot_dimension_numbers<[1], [0], [0], [1], [0, 0, 1, 1], [], []>} : vector<10x128xf32>, vector<128x256xf32>, vector<10x256xf32> -> vector<10x256xf32>
    %367 = arith.addf %362, %366 : vector<10x256xf32>
    %c3_386 = arith.constant 3 : index
    %c0_387 = arith.constant 0 : index
    %368 = vector.load %arg14[%c3_386, %c0_387] : memref<16x128xf32, #tpu.memory_space<vmem>>, vector<10x128xf32>
    %c3_388 = arith.constant 3 : index
    %c0_389 = arith.constant 0 : index
    %c0_390 = arith.constant 0 : index
    %369 = vector.load %arg3[%c3_388, %c0_389, %c0_390] : memref<5x128x256xf32, #tpu.memory_space<vmem>>, vector<1x128x256xf32>
    %370 = vector.shape_cast %369 : vector<1x128x256xf32> to vector<128x256xf32>
    %cst_391 = arith.constant dense<0.000000e+00> : vector<10x256xf32>
    %371 = tpu.matmul %368, %370, %cst_391 {dimension_numbers = #tpu.dot_dimension_numbers<[1], [0], [0], [1], [0, 0, 1, 1], [], []>} : vector<10x128xf32>, vector<128x256xf32>, vector<10x256xf32> -> vector<10x256xf32>
    %372 = arith.addf %367, %371 : vector<10x256xf32>
    %c4_392 = arith.constant 4 : index
    %c0_393 = arith.constant 0 : index
    %373 = vector.load %arg14[%c4_392, %c0_393] : memref<16x128xf32, #tpu.memory_space<vmem>>, vector<10x128xf32>
    %c4_394 = arith.constant 4 : index
    %c0_395 = arith.constant 0 : index
    %c0_396 = arith.constant 0 : index
    %374 = vector.load %arg3[%c4_394, %c0_395, %c0_396] : memref<5x128x256xf32, #tpu.memory_space<vmem>>, vector<1x128x256xf32>
    %375 = vector.shape_cast %374 : vector<1x128x256xf32> to vector<128x256xf32>
    %cst_397 = arith.constant dense<0.000000e+00> : vector<10x256xf32>
    %376 = tpu.matmul %373, %375, %cst_397 {dimension_numbers = #tpu.dot_dimension_numbers<[1], [0], [0], [1], [0, 0, 1, 1], [], []>} : vector<10x128xf32>, vector<128x256xf32>, vector<10x256xf32> -> vector<10x256xf32>
    %377 = arith.addf %372, %376 : vector<10x256xf32>
    %c0_398 = arith.constant 0 : index
    %c0_399 = arith.constant 0 : index
    %378 = vector.load %arg8[%c0_398, %c0_399] : memref<3x256xf32, #tpu.memory_space<vmem>>, vector<1x256xf32>
    %c1_400 = arith.constant 1 : index
    %c0_401 = arith.constant 0 : index
    %379 = vector.load %arg8[%c1_400, %c0_401] : memref<3x256xf32, #tpu.memory_space<vmem>>, vector<1x256xf32>
    %c2_402 = arith.constant 2 : index
    %c0_403 = arith.constant 0 : index
    %380 = vector.load %arg8[%c2_402, %c0_403] : memref<3x256xf32, #tpu.memory_space<vmem>>, vector<1x256xf32>
    %381 = vector.broadcast %378 : vector<1x256xf32> to vector<10x256xf32>
    %382 = arith.addf %377, %381 : vector<10x256xf32>
    %cst_404 = arith.constant 0.000000e+00 : f32
    %383 = vector.broadcast %cst_404 : f32 to vector<10x256xf32>
    %384 = arith.subf %383, %382 : vector<10x256xf32>
    %385 = math.exp %384 : vector<10x256xf32>
    %cst_405 = arith.constant 1.000000e+00 : f32
    %386 = vector.broadcast %cst_405 : f32 to vector<10x256xf32>
    %387 = arith.addf %386, %385 : vector<10x256xf32>
    %cst_406 = arith.constant 1.000000e+00 : f32
    %388 = vector.broadcast %cst_406 : f32 to vector<10x256xf32>
    %389 = arith.divf %388, %387 : vector<10x256xf32>
    %390 = vector.broadcast %379 : vector<1x256xf32> to vector<10x256xf32>
    %391 = arith.mulf %389, %390 : vector<10x256xf32>
    %392 = vector.broadcast %380 : vector<1x256xf32> to vector<10x256xf32>
    %393 = arith.addf %391, %392 : vector<10x256xf32>
    %cst_407 = arith.constant 0.000000e+00 : f32
    %394 = vector.broadcast %cst_407 : f32 to vector<10x256xf32>
    %395 = arith.maximumf %393, %394 : vector<10x256xf32>
    %396 = vector.extract_strided_slice %395 {offsets = [0, 0], sizes = [10, 128], strides = [1, 1]} : vector<10x256xf32> to vector<10x128xf32>
    %397 = vector.extract_strided_slice %395 {offsets = [0, 128], sizes = [10, 128], strides = [1, 1]} : vector<10x256xf32> to vector<10x128xf32>
    %398 = arith.maximumf %396, %397 : vector<10x128xf32>
    %c0_408 = arith.constant 0 : index
    %c0_409 = arith.constant 0 : index
    %399 = vector.load %arg13[%c0_408, %c0_409] : memref<32x128xf32, #tpu.memory_space<vmem>>, vector<10x128xf32>
    tpu.vector_store %arg13[%c0_408, %c0_409], %398 {strides = array<i32>} : memref<32x128xf32, #tpu.memory_space<vmem>>, vector<10x128xf32>,
    %cst_410 = arith.constant 0.000000e+00 : f32
    %400 = vector.broadcast %cst_410 : f32 to vector<1x128xf32>
    %c0_411 = arith.constant 0 : index
    %c0_412 = arith.constant 0 : index
    %401 = vector.load %arg13[%c0_411, %c0_412] : memref<32x128xf32, #tpu.memory_space<vmem>>, vector<1x128xf32>
    %c1_413 = arith.constant 1 : index
    %c0_414 = arith.constant 0 : index
    %402 = vector.load %arg13[%c1_413, %c0_414] : memref<32x128xf32, #tpu.memory_space<vmem>>, vector<1x128xf32>
    %403 = arith.maximumf %401, %402 : vector<1x128xf32>
    %c0_415 = arith.constant 0 : index
    %c0_416 = arith.constant 0 : index
    %c0_417 = arith.constant 0 : index
    %404 = vector.load %arg4[%c0_415, %c0_416, %c0_417] : memref<5x128x128xf32, #tpu.memory_space<vmem>>, vector<1x128x128xf32>
    %405 = vector.shape_cast %404 : vector<1x128x128xf32> to vector<128x128xf32>
    %cst_418 = arith.constant dense<0.000000e+00> : vector<1x128xf32>
    %406 = tpu.matmul %403, %405, %cst_418 {dimension_numbers = #tpu.dot_dimension_numbers<[1], [0], [0], [1], [0, 0, 1, 1], [], []>} : vector<1x128xf32>, vector<128x128xf32>, vector<1x128xf32> -> vector<1x128xf32>
    %407 = arith.addf %400, %406 : vector<1x128xf32>
    %c2_419 = arith.constant 2 : index
    %c0_420 = arith.constant 0 : index
    %408 = vector.load %arg13[%c2_419, %c0_420] : memref<32x128xf32, #tpu.memory_space<vmem>>, vector<1x128xf32>
    %c3_421 = arith.constant 3 : index
    %c0_422 = arith.constant 0 : index
    %409 = vector.load %arg13[%c3_421, %c0_422] : memref<32x128xf32, #tpu.memory_space<vmem>>, vector<1x128xf32>
    %410 = arith.maximumf %408, %409 : vector<1x128xf32>
    %c1_423 = arith.constant 1 : index
    %c0_424 = arith.constant 0 : index
    %c0_425 = arith.constant 0 : index
    %411 = vector.load %arg4[%c1_423, %c0_424, %c0_425] : memref<5x128x128xf32, #tpu.memory_space<vmem>>, vector<1x128x128xf32>
    %412 = vector.shape_cast %411 : vector<1x128x128xf32> to vector<128x128xf32>
    %cst_426 = arith.constant dense<0.000000e+00> : vector<1x128xf32>
    %413 = tpu.matmul %410, %412, %cst_426 {dimension_numbers = #tpu.dot_dimension_numbers<[1], [0], [0], [1], [0, 0, 1, 1], [], []>} : vector<1x128xf32>, vector<128x128xf32>, vector<1x128xf32> -> vector<1x128xf32>
    %414 = arith.addf %407, %413 : vector<1x128xf32>
    %c4_427 = arith.constant 4 : index
    %c0_428 = arith.constant 0 : index
    %415 = vector.load %arg13[%c4_427, %c0_428] : memref<32x128xf32, #tpu.memory_space<vmem>>, vector<1x128xf32>
    %c5_429 = arith.constant 5 : index
    %c0_430 = arith.constant 0 : index
    %416 = vector.load %arg13[%c5_429, %c0_430] : memref<32x128xf32, #tpu.memory_space<vmem>>, vector<1x128xf32>
    %417 = arith.maximumf %415, %416 : vector<1x128xf32>
    %c2_431 = arith.constant 2 : index
    %c0_432 = arith.constant 0 : index
    %c0_433 = arith.constant 0 : index
    %418 = vector.load %arg4[%c2_431, %c0_432, %c0_433] : memref<5x128x128xf32, #tpu.memory_space<vmem>>, vector<1x128x128xf32>
    %419 = vector.shape_cast %418 : vector<1x128x128xf32> to vector<128x128xf32>
    %cst_434 = arith.constant dense<0.000000e+00> : vector<1x128xf32>
    %420 = tpu.matmul %417, %419, %cst_434 {dimension_numbers = #tpu.dot_dimension_numbers<[1], [0], [0], [1], [0, 0, 1, 1], [], []>} : vector<1x128xf32>, vector<128x128xf32>, vector<1x128xf32> -> vector<1x128xf32>
    %421 = arith.addf %414, %420 : vector<1x128xf32>
    %c6_435 = arith.constant 6 : index
    %c0_436 = arith.constant 0 : index
    %422 = vector.load %arg13[%c6_435, %c0_436] : memref<32x128xf32, #tpu.memory_space<vmem>>, vector<1x128xf32>
    %c7_437 = arith.constant 7 : index
    %c0_438 = arith.constant 0 : index
    %423 = vector.load %arg13[%c7_437, %c0_438] : memref<32x128xf32, #tpu.memory_space<vmem>>, vector<1x128xf32>
    %424 = arith.maximumf %422, %423 : vector<1x128xf32>
    %c3_439 = arith.constant 3 : index
    %c0_440 = arith.constant 0 : index
    %c0_441 = arith.constant 0 : index
    %425 = vector.load %arg4[%c3_439, %c0_440, %c0_441] : memref<5x128x128xf32, #tpu.memory_space<vmem>>, vector<1x128x128xf32>
    %426 = vector.shape_cast %425 : vector<1x128x128xf32> to vector<128x128xf32>
    %cst_442 = arith.constant dense<0.000000e+00> : vector<1x128xf32>
    %427 = tpu.matmul %424, %426, %cst_442 {dimension_numbers = #tpu.dot_dimension_numbers<[1], [0], [0], [1], [0, 0, 1, 1], [], []>} : vector<1x128xf32>, vector<128x128xf32>, vector<1x128xf32> -> vector<1x128xf32>
    %428 = arith.addf %421, %427 : vector<1x128xf32>
    %c8_443 = arith.constant 8 : index
    %c0_444 = arith.constant 0 : index
    %429 = vector.load %arg13[%c8_443, %c0_444] : memref<32x128xf32, #tpu.memory_space<vmem>>, vector<1x128xf32>
    %c9_445 = arith.constant 9 : index
    %c0_446 = arith.constant 0 : index
    %430 = vector.load %arg13[%c9_445, %c0_446] : memref<32x128xf32, #tpu.memory_space<vmem>>, vector<1x128xf32>
    %431 = arith.maximumf %429, %430 : vector<1x128xf32>
    %c4_447 = arith.constant 4 : index
    %c0_448 = arith.constant 0 : index
    %c0_449 = arith.constant 0 : index
    %432 = vector.load %arg4[%c4_447, %c0_448, %c0_449] : memref<5x128x128xf32, #tpu.memory_space<vmem>>, vector<1x128x128xf32>
    %433 = vector.shape_cast %432 : vector<1x128x128xf32> to vector<128x128xf32>
    %cst_450 = arith.constant dense<0.000000e+00> : vector<1x128xf32>
    %434 = tpu.matmul %431, %433, %cst_450 {dimension_numbers = #tpu.dot_dimension_numbers<[1], [0], [0], [1], [0, 0, 1, 1], [], []>} : vector<1x128xf32>, vector<128x128xf32>, vector<1x128xf32> -> vector<1x128xf32>
    %435 = arith.addf %428, %434 : vector<1x128xf32>
    %c0_451 = arith.constant 0 : index
    %c0_452 = arith.constant 0 : index
    %436 = vector.load %arg9[%c0_451, %c0_452] : memref<3x128xf32, #tpu.memory_space<vmem>>, vector<1x128xf32>
    %c1_453 = arith.constant 1 : index
    %c0_454 = arith.constant 0 : index
    %437 = vector.load %arg9[%c1_453, %c0_454] : memref<3x128xf32, #tpu.memory_space<vmem>>, vector<1x128xf32>
    %c2_455 = arith.constant 2 : index
    %c0_456 = arith.constant 0 : index
    %438 = vector.load %arg9[%c2_455, %c0_456] : memref<3x128xf32, #tpu.memory_space<vmem>>, vector<1x128xf32>
    %439 = arith.addf %435, %436 : vector<1x128xf32>
    %cst_457 = arith.constant 0.000000e+00 : f32
    %440 = vector.broadcast %cst_457 : f32 to vector<1x128xf32>
    %441 = arith.subf %440, %439 : vector<1x128xf32>
    %442 = math.exp %441 : vector<1x128xf32>
    %cst_458 = arith.constant 1.000000e+00 : f32
    %443 = vector.broadcast %cst_458 : f32 to vector<1x128xf32>
    %444 = arith.addf %443, %442 : vector<1x128xf32>
    %cst_459 = arith.constant 1.000000e+00 : f32
    %445 = vector.broadcast %cst_459 : f32 to vector<1x128xf32>
    %446 = arith.divf %445, %444 : vector<1x128xf32>
    %447 = arith.mulf %446, %437 : vector<1x128xf32>
    %448 = arith.addf %447, %438 : vector<1x128xf32>
    %cst_460 = arith.constant 0.000000e+00 : f32
    %449 = vector.broadcast %cst_460 : f32 to vector<1x128xf32>
    %450 = arith.maximumf %448, %449 : vector<1x128xf32>
    %c0_461 = arith.constant 0 : index
    %c0_462 = arith.constant 0 : index
    %451 = vector.load %arg5[%c0_461, %c0_462] : memref<128x128xf32, #tpu.memory_space<vmem>>, vector<128x128xf32>
    %cst_463 = arith.constant dense<0.000000e+00> : vector<1x128xf32>
    %452 = tpu.matmul %450, %451, %cst_463 {dimension_numbers = #tpu.dot_dimension_numbers<[1], [0], [0], [1], [0, 0, 1, 1], [], []>} : vector<1x128xf32>, vector<128x128xf32>, vector<1x128xf32> -> vector<1x128xf32>
    %c0_464 = arith.constant 0 : index
    %c0_465 = arith.constant 0 : index
    %453 = vector.load %arg10[%c0_464, %c0_465] : memref<3x128xf32, #tpu.memory_space<vmem>>, vector<1x128xf32>
    %c1_466 = arith.constant 1 : index
    %c0_467 = arith.constant 0 : index
    %454 = vector.load %arg10[%c1_466, %c0_467] : memref<3x128xf32, #tpu.memory_space<vmem>>, vector<1x128xf32>
    %c2_468 = arith.constant 2 : index
    %c0_469 = arith.constant 0 : index
    %455 = vector.load %arg10[%c2_468, %c0_469] : memref<3x128xf32, #tpu.memory_space<vmem>>, vector<1x128xf32>
    %456 = arith.addf %452, %453 : vector<1x128xf32>
    %cst_470 = arith.constant 0.000000e+00 : f32
    %457 = vector.broadcast %cst_470 : f32 to vector<1x128xf32>
    %458 = arith.subf %457, %456 : vector<1x128xf32>
    %459 = math.exp %458 : vector<1x128xf32>
    %cst_471 = arith.constant 1.000000e+00 : f32
    %460 = vector.broadcast %cst_471 : f32 to vector<1x128xf32>
    %461 = arith.addf %460, %459 : vector<1x128xf32>
    %cst_472 = arith.constant 1.000000e+00 : f32
    %462 = vector.broadcast %cst_472 : f32 to vector<1x128xf32>
    %463 = arith.divf %462, %461 : vector<1x128xf32>
    %464 = arith.mulf %463, %454 : vector<1x128xf32>
    %465 = arith.addf %464, %455 : vector<1x128xf32>
    %cst_473 = arith.constant 0.000000e+00 : f32
    %466 = vector.broadcast %cst_473 : f32 to vector<1x128xf32>
    %467 = arith.maximumf %465, %466 : vector<1x128xf32>
    %c0_474 = arith.constant 0 : index
    %c0_475 = arith.constant 0 : index
    %468 = vector.load %arg6[%c0_474, %c0_475] : memref<128x128xf32, #tpu.memory_space<vmem>>, vector<128x128xf32>
    %cst_476 = arith.constant dense<0.000000e+00> : vector<1x128xf32>
    %469 = tpu.matmul %467, %468, %cst_476 {dimension_numbers = #tpu.dot_dimension_numbers<[1], [0], [0], [1], [0, 0, 1, 1], [], []>} : vector<1x128xf32>, vector<128x128xf32>, vector<1x128xf32> -> vector<1x128xf32>
    %c0_477 = arith.constant 0 : index
    %c0_478 = arith.constant 0 : index
    %470 = vector.load %arg11[%c0_477, %c0_478] : memref<1x128xf32, #tpu.memory_space<vmem>>, vector<1x128xf32>
    %471 = arith.addf %469, %470 : vector<1x128xf32>
    %cst_479 = arith.constant 0.000000e+00 : f32
    %472 = vector.broadcast %cst_479 : f32 to vector<1x128xf32>
    %473 = arith.subf %472, %471 : vector<1x128xf32>
    %474 = math.exp %473 : vector<1x128xf32>
    %cst_480 = arith.constant 1.000000e+00 : f32
    %475 = vector.broadcast %cst_480 : f32 to vector<1x128xf32>
    %476 = arith.addf %475, %474 : vector<1x128xf32>
    %cst_481 = arith.constant 1.000000e+00 : f32
    %477 = vector.broadcast %cst_481 : f32 to vector<1x128xf32>
    %478 = arith.divf %477, %476 : vector<1x128xf32>
    %479 = vector.shape_cast %478 : vector<1x128xf32> to vector<1x128xf32>
    %480 = vector.broadcast %479 : vector<1x128xf32> to vector<8x128xf32>
    %c1_482 = arith.constant 1 : index
    %c0_483 = arith.constant 0 : index
    %c0_484 = arith.constant 0 : index
    %481 = vector.load %arg12[%c1_482, %c0_483, %c0_484] : memref<2x8x128xf32, #tpu.memory_space<vmem>>, vector<1x8x128xf32>
    %482 = vector.shape_cast %481 : vector<1x8x128xf32> to vector<8x128xf32>
    %483 = vector.shape_cast %480 : vector<8x128xf32> to vector<1x8x128xf32>
    tpu.vector_store %arg12[%c1_482, %c0_483, %c0_484], %483 {strides = array<i32>} : memref<2x8x128xf32, #tpu.memory_space<vmem>>, vector<1x8x128xf32>,
    return
  }
  func.func @transform_0(%arg0: i32) -> (i32, i32, i32) {
    %c0_i32 = arith.constant 0 : i32
    %c0_i32_0 = arith.constant 0 : i32
    %c0_i32_1 = arith.constant 0 : i32
    return %arg0, %c0_i32, %c0_i32_0 : i32, i32, i32
  }
  func.func @transform_1(%arg0: i32) -> (i32, i32, i32) {
    %c0_i32 = arith.constant 0 : i32
    %c0_i32_0 = arith.constant 0 : i32
    %c0_i32_1 = arith.constant 0 : i32
    %c0_i32_2 = arith.constant 0 : i32
    return %c0_i32, %c0_i32_0, %c0_i32_1 : i32, i32, i32
  }
  func.func @transform_2(%arg0: i32) -> (i32, i32, i32) {
    %c0_i32 = arith.constant 0 : i32
    %c0_i32_0 = arith.constant 0 : i32
    %c0_i32_1 = arith.constant 0 : i32
    %c0_i32_2 = arith.constant 0 : i32
    return %c0_i32, %c0_i32_0, %c0_i32_1 : i32, i32, i32
  }
  func.func @transform_3(%arg0: i32) -> (i32, i32, i32) {
    %c0_i32 = arith.constant 0 : i32
    %c0_i32_0 = arith.constant 0 : i32
    %c0_i32_1 = arith.constant 0 : i32
    %c0_i32_2 = arith.constant 0 : i32
    return %c0_i32, %c0_i32_0, %c0_i32_1 : i32, i32, i32
  }
  func.func @transform_4(%arg0: i32) -> (i32, i32) {
    %c0_i32 = arith.constant 0 : i32
    %c0_i32_0 = arith.constant 0 : i32
    %c0_i32_1 = arith.constant 0 : i32
    return %c0_i32, %c0_i32_0 : i32, i32
  }
  func.func @transform_5(%arg0: i32) -> (i32, i32) {
    %c0_i32 = arith.constant 0 : i32
    %c0_i32_0 = arith.constant 0 : i32
    %c0_i32_1 = arith.constant 0 : i32
    return %c0_i32, %c0_i32_0 : i32, i32
  }
  func.func @transform_6(%arg0: i32) -> (i32, i32) {
    %c0_i32 = arith.constant 0 : i32
    %c0_i32_0 = arith.constant 0 : i32
    %c0_i32_1 = arith.constant 0 : i32
    return %c0_i32, %c0_i32_0 : i32, i32
  }
  func.func @transform_7(%arg0: i32) -> (i32, i32) {
    %c0_i32 = arith.constant 0 : i32
    %c0_i32_0 = arith.constant 0 : i32
    %c0_i32_1 = arith.constant 0 : i32
    return %c0_i32, %c0_i32_0 : i32, i32
  }
  func.func @transform_8(%arg0: i32) -> (i32, i32) {
    %c0_i32 = arith.constant 0 : i32
    %c0_i32_0 = arith.constant 0 : i32
    %c0_i32_1 = arith.constant 0 : i32
    return %c0_i32, %c0_i32_0 : i32, i32
  }
  func.func @transform_9(%arg0: i32) -> (i32, i32) {
    %c0_i32 = arith.constant 0 : i32
    %c0_i32_0 = arith.constant 0 : i32
    %c0_i32_1 = arith.constant 0 : i32
    return %c0_i32, %c0_i32_0 : i32, i32
  }
  func.func @transform_10(%arg0: i32) -> (i32, i32) {
    %c0_i32 = arith.constant 0 : i32
    %c0_i32_0 = arith.constant 0 : i32
    %c0_i32_1 = arith.constant 0 : i32
    return %c0_i32, %c0_i32_0 : i32, i32
  }
  func.func @transform_11(%arg0: i32) -> (i32, i32, i32) {
    %c0_i32 = arith.constant 0 : i32
    %c0_i32_0 = arith.constant 0 : i32
    %c0_i32_1 = arith.constant 0 : i32
    return %arg0, %c0_i32, %c0_i32_0 : i32, i32, i32
  }
}

</mosaic_0001>

<bundles_post_ra>
// kernel: lenet_forward.1
= control target key start
LH: loop header
LB: loop body
LE: loop exit
PB: predicated region body
PF: predicated region fallthrough
CT: control target
= control target key end

     0   :  { %v5845_v3 = vmov 0.0   ;;  %vm5846_vm0 = vmmov 0   ;;  %s9060_s1 = inlined_call_operand.vmem [shape: f32[5,128,256], index: 1, kind: input, shape index: {}]   ;;  %s9061_s0 = inlined_call_operand.vmem [shape: f32[2,32,128], index: 0, kind: input, shape index: {}]   ;;  %s9062_s2 = inlined_call_operand.vmem [shape: f32[5,128,256], index: 2, kind: input, shape index: {}]   ;;  %s9063_s6 = inlined_call_operand.vmem [shape: f32[3,256], index: 6, kind: input, shape index: {}]   ;;  %s9064_s3 = inlined_call_operand.vmem [shape: f32[5,128,128], index: 3, kind: input, shape index: {}]   ;;  %s9065_s7 = inlined_call_operand.vmem [shape: f32[3,256], index: 7, kind: input, shape index: {}]   ;;  %s9066_s4 = inlined_call_operand.vmem [shape: f32[128,128], index: 4, kind: input, shape index: {}]   ;;  %s9067_s8 = inlined_call_operand.vmem [shape: f32[3,128], index: 8, kind: input, shape index: {}]   ;;  %s9068_s5 = inlined_call_operand.vmem [shape: f32[128,128], index: 5, kind: input, shape index: {}]   ;;  %s9069_s9 = inlined_call_operand.vmem [shape: f32[3,128], index: 9, kind: input, shape index: {}]   ;;  %s9070_s10 = inlined_call_operand.vmem [shape: f32[1,128], index: 10, kind: input, shape index: {}]   ;;  %s9071_s11 = inlined_call_operand.vmem [shape: f32[2,8,128], index: 11, kind: output, shape index: {}]  }
   0x1   :  { %v4357_v0 = vld [vmem:[%s9060_s1 + $0x1f8] sm:$0xff]  ;;  %v4356_v2 = vld [vmem:[%s9060_s1 + $0x1f0] sm:$0xff]  ;;  %175 = vmatprep.mubr.f32.mxu0 %v5845_v3  ;;  %264 = vmatprep.mubr.f32.mxu1 %v5845_v3  ;;  %v4355_v5 = vld [vmem:[%s9060_s1 + $0x1e8] sm:$0xff] }
   0x2   :  { %v73_v1 = vld [vmem:[%s9060_s1 + $0xf8] sm:$0xff]  ;;  %111 = vmatprep.subr.mxu0 %v4357_v0  ;;  %v72_v4 = vld [vmem:[%s9060_s1 + $0xf0] sm:$0xff]  ;;  %v71_v6 = vld [vmem:[%s9060_s1 + $0xe8] sm:$0xff] }
   0x3   :  { %200 = vmatprep.subr.mxu1 %v73_v1  ;;  %112 = vmatpush1.msra.mxu0 %v4356_v2  ;;  %v4354_v7 = vld [vmem:[%s9060_s1 + $0x1e0] sm:$0xff]  ;;  %v4353_v9 = vld [vmem:[%s9060_s1 + $0x1d8] sm:$0xff]  ;;  %v4352_v11 = vld [vmem:[%s9060_s1 + $0x1d0] sm:$0xff] }
   0x4   :  { %201 = vmatpush1.msra.mxu1 %v72_v4  ;;  %v70_v8 = vld [vmem:[%s9060_s1 + $0xe0] sm:$0xff]  ;;  %113 = vmatprep.subr.mxu0 %v4355_v5  ;;  %v69_v10 = vld [vmem:[%s9060_s1 + $0xd8] sm:$0xff]  ;;  %v68_v12 = vld [vmem:[%s9060_s1 + $0xd0] sm:$0xff] }
   0x5   :  { %202 = vmatprep.subr.mxu1 %v71_v6  ;;  %114 = vmatpush1.msra.mxu0 %v4354_v7  ;;  %v4351_v13 = vld [vmem:[%s9060_s1 + $0x1c8] sm:$0xff]  ;;  %v4350_v15 = vld [vmem:[%s9060_s1 + $0x1c0] sm:$0xff]  ;;  %v4349_v17 = vld [vmem:[%s9060_s1 + $0x1b8] sm:$0xff] }
   0x6   :  { %203 = vmatpush1.msra.mxu1 %v70_v8  ;;  %v67_v14 = vld [vmem:[%s9060_s1 + $0xc8] sm:$0xff]  ;;  %115 = vmatprep.subr.mxu0 %v4353_v9  ;;  %v66_v16 = vld [vmem:[%s9060_s1 + $0xc0] sm:$0xff]  ;;  %v65_v18 = vld [vmem:[%s9060_s1 + $0xb8] sm:$0xff] }
   0x7   :  { %204 = vmatprep.subr.mxu1 %v69_v10  ;;  %116 = vmatpush1.msra.mxu0 %v4352_v11  ;;  %v4348_v19 = vld [vmem:[%s9060_s1 + $0x1b0] sm:$0xff]  ;;  %v4347_v21 = vld [vmem:[%s9060_s1 + $0x1a8] sm:$0xff]  ;;  %v4346_v23 = vld [vmem:[%s9060_s1 + $0x1a0] sm:$0xff] }
   0x8   :  { %205 = vmatpush1.msra.mxu1 %v68_v12  ;;  %117 = vmatprep.subr.mxu0 %v4351_v13  ;;  %v64_v20 = vld [vmem:[%s9060_s1 + $0xb0] sm:$0xff]  ;;  %v63_v22 = vld [vmem:[%s9060_s1 + $0xa8] sm:$0xff]  ;;  %v62_v24 = vld [vmem:[%s9060_s1 + $0xa0] sm:$0xff] }
   0x9   :  { %206 = vmatprep.subr.mxu1 %v67_v14  ;;  %118 = vmatpush1.msra.mxu0 %v4350_v15  ;;  %v4345_v25 = vld [vmem:[%s9060_s1 + $0x198] sm:$0xff]  ;;  %v4344_v27 = vld [vmem:[%s9060_s1 + $0x190] sm:$0xff]  ;;  %v4343_v29 = vld [vmem:[%s9060_s1 + $0x188] sm:$0xff] }
   0xa   :  { %207 = vmatpush1.msra.mxu1 %v66_v16  ;;  %119 = vmatprep.subr.mxu0 %v4349_v17  ;;  %v61_v26 = vld [vmem:[%s9060_s1 + $0x98] sm:$0xff]  ;;  %v60_v28 = vld [vmem:[%s9060_s1 + $0x90] sm:$0xff]  ;;  %v59_v30 = vld [vmem:[%s9060_s1 + $0x88] sm:$0xff] }
   0xb   :  { %208 = vmatprep.subr.mxu1 %v65_v18  ;;  %120 = vmatpush1.msra.mxu0 %v4348_v19  ;;  %v4342_v31 = vld [vmem:[%s9060_s1 + $0x180] sm:$0xff]  ;;  %v4341_v33 = vld [vmem:[%s9060_s1 + $0x178] sm:$0xff]  ;;  %v4340_v35 = vld [vmem:[%s9060_s1 + $0x170] sm:$0xff] }
   0xc   :  { %209 = vmatpush1.msra.mxu1 %v64_v20  ;;  %121 = vmatprep.subr.mxu0 %v4347_v21  ;;  %v58_v32 = vld [vmem:[%s9060_s1 + $0x80] sm:$0xff]  ;;  %v57_v34 = vld [vmem:[%s9060_s1 + $0x78] sm:$0xff]  ;;  %v56_v36 = vld [vmem:[%s9060_s1 + $0x70] sm:$0xff] }
   0xd   :  { %210 = vmatprep.subr.mxu1 %v63_v22  ;;  %122 = vmatpush1.msra.mxu0 %v4346_v23  ;;  %v4339_v37 = vld [vmem:[%s9060_s1 + $0x168] sm:$0xff]  ;;  %v4338_v39 = vld [vmem:[%s9060_s1 + $0x160] sm:$0xff]  ;;  %v4337_v41 = vld [vmem:[%s9060_s1 + $0x158] sm:$0xff] }
   0xe   :  { %211 = vmatpush1.msra.mxu1 %v62_v24  ;;  %123 = vmatprep.subr.mxu0 %v4345_v25  ;;  %v55_v38 = vld [vmem:[%s9060_s1 + $0x68] sm:$0xff]  ;;  %v54_v40 = vld [vmem:[%s9060_s1 + $0x60] sm:$0xff]  ;;  %v53_v42 = vld [vmem:[%s9060_s1 + $0x58] sm:$0xff] }
   0xf   :  { %212 = vmatprep.subr.mxu1 %v61_v26  ;;  %124 = vmatpush1.msra.mxu0 %v4344_v27  ;;  %v4336_v43 = vld [vmem:[%s9060_s1 + $0x150] sm:$0xff]  ;;  %v4335_v45 = vld [vmem:[%s9060_s1 + $0x148] sm:$0xff]  ;;  %v4334_v47 = vld [vmem:[%s9060_s1 + $0x140] sm:$0xff] }
  0x10   :  { %213 = vmatpush1.msra.mxu1 %v60_v28  ;;  %125 = vmatprep.subr.mxu0 %v4343_v29  ;;  %v52_v44 = vld [vmem:[%s9060_s1 + $0x50] sm:$0xff]  ;;  %v51_v46 = vld [vmem:[%s9060_s1 + $0x48] sm:$0xff]  ;;  %v50_v48 = vld [vmem:[%s9060_s1 + $0x40] sm:$0xff] }
  0x11   :  { %214 = vmatprep.subr.mxu1 %v59_v30  ;;  %126 = vmatpush1.msra.mxu0 %v4342_v31  ;;  %v4333_v49 = vld [vmem:[%s9060_s1 + $0x138] sm:$0xff]  ;;  %v4332_v51 = vld [vmem:[%s9060_s1 + $0x130] sm:$0xff]  ;;  %v4331_v53 = vld [vmem:[%s9060_s1 + $0x128] sm:$0xff] }
  0x12   :  { %215 = vmatpush1.msra.mxu1 %v58_v32  ;;  %127 = vmatprep.subr.mxu0 %v4341_v33  ;;  %v49_v50 = vld [vmem:[%s9060_s1 + $0x38] sm:$0xff]  ;;  %v48_v52 = vld [vmem:[%s9060_s1 + $0x30] sm:$0xff]  ;;  %v47_v54 = vld [vmem:[%s9060_s1 + $0x28] sm:$0xff] }
  0x13   :  { %216 = vmatprep.subr.mxu1 %v57_v34  ;;  %128 = vmatpush1.msra.mxu0 %v4340_v35  ;;  %v4330_v55 = vld [vmem:[%s9060_s1 + $0x120] sm:$0xff]  ;;  %v4329_v57 = vld [vmem:[%s9060_s1 + $0x118] sm:$0xff]  ;;  %v4328_v59 = vld [vmem:[%s9060_s1 + $0x110] sm:$0xff] }
  0x14   :  { %217 = vmatpush1.msra.mxu1 %v56_v36  ;;  %129 = vmatprep.subr.mxu0 %v4339_v37  ;;  %v46_v56 = vld [vmem:[%s9060_s1 + $0x20] sm:$0xff]  ;;  %v45_v58 = vld [vmem:[%s9060_s1 + $0x18] sm:$0xff]  ;;  %v44_v60 = vld [vmem:[%s9060_s1 + $0x10] sm:$0xff] }
  0x15   :  { %218 = vmatprep.subr.mxu1 %v55_v38  ;;  %130 = vmatpush1.msra.mxu0 %v4338_v39  ;;  %v4327_v61 = vld [vmem:[%s9060_s1 + $0x108] sm:$0xff]  ;;  %v4326_v63 = vld [vmem:[%s9060_s1 + $0x100] sm:$0xff]  ;;  %v4389_v4 = vld [vmem:[%s9060_s1 + $0x2f8] sm:$0xff] }
  0x16   :  { %219 = vmatpush1.msra.mxu1 %v54_v40  ;;  %131 = vmatprep.subr.mxu0 %v4337_v41  ;;  %v43_v62 = vld [vmem:[%s9060_s1 + $0x8] sm:$0xff]  ;;  %v42_v0 = vld [vmem:[%s9060_s1] sm:$0xff]  ;;  %v4421_v5 = vld [vmem:[%s9060_s1 + $0x3f8] sm:$0xff] }
  0x17   :  { %220 = vmatprep.subr.mxu1 %v53_v42  ;;  %132 = vmatpush1.msra.mxu0 %v4336_v43  ;;  %v74_v1 = vld [vmem:[%s9061_s0 + $0x1] sm:$0xff]  ;;  %v4388_v6 = vld [vmem:[%s9060_s1 + $0x2f0] sm:$0xff]  ;;  %v4385_v12 = vld [vmem:[%s9060_s1 + $0x2d8] sm:$0xff] }
  0x18   :  { %221 = vmatpush1.msra.mxu1 %v52_v44  ;;  %133 = vmatprep.subr.mxu0 %v4335_v45  ;;  %v38_v2 = vld [vmem:[%s9061_s0] sm:$0xff]  ;;  %v4420_v7 = vld [vmem:[%s9060_s1 + $0x3f0] sm:$0xff]  ;;  %v4387_v8 = vld [vmem:[%s9060_s1 + $0x2e8] sm:$0xff] }
  0x19   :  { %222 = vmatprep.subr.mxu1 %v51_v46  ;;  %134 = vmatpush1.msra.mxu0 %v4334_v47  ;;  %v4419_v9 = vld [vmem:[%s9060_s1 + $0x3e8] sm:$0xff]  ;;  %v4386_v10 = vld [vmem:[%s9060_s1 + $0x2e0] sm:$0xff]  ;;  %v4417_v13 = vld [vmem:[%s9060_s1 + $0x3d8] sm:$0xff] }
  0x1a   :  { %223 = vmatpush1.msra.mxu1 %v50_v48  ;;  %135 = vmatprep.subr.mxu0 %v4333_v49  ;;  %v4418_v11 = vld [vmem:[%s9060_s1 + $0x3e0] sm:$0xff]  ;;  %v4384_v14 = vld [vmem:[%s9060_s1 + $0x2d0] sm:$0xff]  ;;  %v4383_v16 = vld [vmem:[%s9060_s1 + $0x2c8] sm:$0xff] }
  0x1b   :  { %224 = vmatprep.subr.mxu1 %v49_v50  ;;  %136 = vmatpush1.msra.mxu0 %v4332_v51  ;;  %v4416_v15 = vld [vmem:[%s9060_s1 + $0x3d0] sm:$0xff]  ;;  %v4415_v17 = vld [vmem:[%s9060_s1 + $0x3c8] sm:$0xff]  ;;  %v4382_v18 = vld [vmem:[%s9060_s1 + $0x2c0] sm:$0xff] }
  0x1c   :  { %225 = vmatpush1.msra.mxu1 %v48_v52  ;;  %137 = vmatprep.subr.mxu0 %v4331_v53  ;;  %v4414_v19 = vld [vmem:[%s9060_s1 + $0x3c0] sm:$0xff]  ;;  %v4381_v20 = vld [vmem:[%s9060_s1 + $0x2b8] sm:$0xff]  ;;  %v4380_v22 = vld [vmem:[%s9060_s1 + $0x2b0] sm:$0xff] }
  0x1d   :  { %226 = vmatprep.subr.mxu1 %v47_v54  ;;  %138 = vmatpush1.msra.mxu0 %v4330_v55  ;;  %v4413_v21 = vld [vmem:[%s9060_s1 + $0x3b8] sm:$0xff]  ;;  %v4412_v23 = vld [vmem:[%s9060_s1 + $0x3b0] sm:$0xff]  ;;  %v4379_v24 = vld [vmem:[%s9060_s1 + $0x2a8] sm:$0xff] }
  0x1e   :  { %227 = vmatpush1.msra.mxu1 %v46_v56  ;;  %139 = vmatprep.subr.mxu0 %v4329_v57  ;;  %v4411_v25 = vld [vmem:[%s9060_s1 + $0x3a8] sm:$0xff]  ;;  %v4378_v26 = vld [vmem:[%s9060_s1 + $0x2a0] sm:$0xff]  ;;  %v4377_v28 = vld [vmem:[%s9060_s1 + $0x298] sm:$0xff] }
  0x1f   :  { %228 = vmatprep.subr.mxu1 %v45_v58  ;;  %140 = vmatpush1.msra.mxu0 %v4328_v59  ;;  %v4410_v27 = vld [vmem:[%s9060_s1 + $0x3a0] sm:$0xff]  ;;  %v4409_v29 = vld [vmem:[%s9060_s1 + $0x398] sm:$0xff]  ;;  %v4376_v30 = vld [vmem:[%s9060_s1 + $0x290] sm:$0xff] }
  0x20   :  { %229 = vmatpush1.msra.mxu1 %v44_v60  ;;  %141 = vmatprep.subr.mxu0 %v4327_v61  ;;  %v4408_v31 = vld [vmem:[%s9060_s1 + $0x390] sm:$0xff]  ;;  %v4375_v32 = vld [vmem:[%s9060_s1 + $0x288] sm:$0xff]  ;;  %v4374_v34 = vld [vmem:[%s9060_s1 + $0x280] sm:$0xff] }
  0x21   :  { %230 = vmatprep.subr.mxu1 %v43_v62  ;;  %142 = vmatpush1.msra.mxu0 %v4326_v63  ;;  %v4407_v33 = vld [vmem:[%s9060_s1 + $0x388] sm:$0xff]  ;;  %v4406_v35 = vld [vmem:[%s9060_s1 + $0x380] sm:$0xff]  ;;  %v4373_v36 = vld [vmem:[%s9060_s1 + $0x278] sm:$0xff] }
  0x22   :  { %231 = vmatpush1.msra.mxu1 %v42_v0  ;;  %176 = vmatmul.mubr.f32.vlgmr.msra.gmra.mxu0 %v74_v1  ;;  %v4372_v37 = vld [vmem:[%s9060_s1 + $0x270] sm:$0xff]  ;;  %v4371_v38 = vld [vmem:[%s9060_s1 + $0x268] sm:$0xff]  ;;  %v4405_v39 = vld [vmem:[%s9060_s1 + $0x378] sm:$0xff] }
  0x23   :  { %265 = vmatmul.mubr.f32.vlgmr.msra.gmra.mxu1 %v38_v2  ;;  %326 = vmatprep.subr.mxu0 %v4389_v4  ;;  %v75_v40 = vld [vmem:[%s9061_s0 + $0x9] sm:$0xff]  ;;  %v4370_v42 = vld [vmem:[%s9060_s1 + $0x260] sm:$0xff]  ;;  %v4369_v44 = vld [vmem:[%s9060_s1 + $0x258] sm:$0xff] }
  0x24   :  { %460 = vmatprep.subr.mxu1 %v4421_v5  ;;  %327 = vmatpush1.msra.mxu0 %v4388_v6  ;;  %v39_v41 = vld [vmem:[%s9061_s0 + $0x8] sm:$0xff]  ;;  %v4404_v43 = vld [vmem:[%s9060_s1 + $0x370] sm:$0xff]  ;;  %v4402_v47 = vld [vmem:[%s9060_s1 + $0x360] sm:$0xff] }
  0x25   :  { %461 = vmatpush1.msra.mxu1 %v4420_v7  ;;  %328 = vmatprep.subr.mxu0 %v4387_v8  ;;  %v4403_v45 = vld [vmem:[%s9060_s1 + $0x368] sm:$0xff]  ;;  %v4368_v46 = vld [vmem:[%s9060_s1 + $0x250] sm:$0xff]  ;;  %v4401_v49 = vld [vmem:[%s9060_s1 + $0x358] sm:$0xff] }
  0x26   :  { %462 = vmatprep.subr.mxu1 %v4419_v9  ;;  %329 = vmatpush1.msra.mxu0 %v4386_v10  ;;  %v4367_v48 = vld [vmem:[%s9060_s1 + $0x248] sm:$0xff]  ;;  %v76_v50 = vld [vmem:[%s9061_s0 + $0x11] sm:$0xff]  ;;  %v4366_v52 = vld [vmem:[%s9060_s1 + $0x240] sm:$0xff] }
  0x27   :  { %463 = vmatpush1.msra.mxu1 %v4418_v11  ;;  %330 = vmatprep.subr.mxu0 %v4385_v12  ;;  %v40_v51 = vld [vmem:[%s9061_s0 + $0x10] sm:$0xff]  ;;  %v4365_v54 = vld [vmem:[%s9060_s1 + $0x238] sm:$0xff]  ;;  %v4399_v55 = vld [vmem:[%s9060_s1 + $0x348] sm:$0xff] }
  0x28   :  { %464 = vmatprep.subr.mxu1 %v4417_v13  ;;  %331 = vmatpush1.msra.mxu0 %v4384_v14  ;;  %v4400_v53 = vld [vmem:[%s9060_s1 + $0x350] sm:$0xff]  ;;  %v4398_v57 = vld [vmem:[%s9060_s1 + $0x340] sm:$0xff]  ;;  %v4363_v58 = vld [vmem:[%s9060_s1 + $0x228] sm:$0xff] }
  0x29   :  { %465 = vmatpush1.msra.mxu1 %v4416_v15  ;;  %332 = vmatprep.subr.mxu0 %v4383_v16  ;;  %v4364_v56 = vld [vmem:[%s9060_s1 + $0x230] sm:$0xff]  ;;  %v4397_v59 = vld [vmem:[%s9060_s1 + $0x338] sm:$0xff]  ;;  %v4362_v62 = vld [vmem:[%s9060_s1 + $0x220] sm:$0xff] }
  0x2a   :  { %466 = vmatprep.subr.mxu1 %v4415_v17  ;;  %333 = vmatpush1.msra.mxu0 %v4382_v18  ;;  %v77_v60 = vld [vmem:[%s9061_s0 + $0x19] sm:$0xf]  ;;  %v4396_v63 = vld [vmem:[%s9060_s1 + $0x330] sm:$0xff]  ;;  %v4395_v1 = vld [vmem:[%s9060_s1 + $0x328] sm:$0xff] }
  0x2b   :  { %467 = vmatpush1.msra.mxu1 %v4414_v19  ;;  %334 = vmatprep.subr.mxu0 %v4381_v20  ;;  %v41_v61 = vld [vmem:[%s9061_s0 + $0x18] sm:$0xf]  ;;  %v4360_v2 = vld [vmem:[%s9060_s1 + $0x210] sm:$0xff]  ;;  %v4394_v4 = vld [vmem:[%s9060_s1 + $0x320] sm:$0xff] }
  0x2c   :  { %468 = vmatprep.subr.mxu1 %v4413_v21  ;;  %335 = vmatpush1.msra.mxu0 %v4380_v22  ;;  %v4361_v0 = vld [vmem:[%s9060_s1 + $0x218] sm:$0xff]  ;;  %v4359_v5 = vld [vmem:[%s9060_s1 + $0x208] sm:$0xff]  ;;  %v4358_v7 = vld [vmem:[%s9060_s1 + $0x200] sm:$0xff] }
  0x2d   :  { %469 = vmatpush1.msra.mxu1 %v4412_v23  ;;  %336 = vmatprep.subr.mxu0 %v4379_v24  ;;  %v4393_v6 = vld [vmem:[%s9060_s1 + $0x318] sm:$0xff]  ;;  %v4392_v8 = vld [vmem:[%s9060_s1 + $0x310] sm:$0xff]  ;;  %v289_v9 = vld [vmem:[%s9061_s0 + $0x2] sm:$0xff] }
  0x2e   :  { %470 = vmatprep.subr.mxu1 %v4411_v25  ;;  %337 = vmatpush1.msra.mxu0 %v4378_v26  ;;  %v4391_v10 = vld [vmem:[%s9060_s1 + $0x308] sm:$0xff]  ;;  %v4453_v11 = vld [vmem:[%s9060_s1 + $0x4f8] sm:$0xff]  ;;  %v4390_v12 = vld [vmem:[%s9060_s1 + $0x300] sm:$0xff] }
  0x2f   :  { %471 = vmatpush1.msra.mxu1 %v4410_v27  ;;  %338 = vmatprep.subr.mxu0 %v4377_v28  ;;  %v4452_v13 = vld [vmem:[%s9060_s1 + $0x4f0] sm:$0xff]  ;;  %v423_v14 = vld [vmem:[%s9061_s0 + $0x3] sm:$0xff]  ;;  %v4449_v18 = vld [vmem:[%s9060_s1 + $0x4d8] sm:$0xff] }
  0x30   :  { %472 = vmatprep.subr.mxu1 %v4409_v29  ;;  %339 = vmatpush1.msra.mxu0 %v4376_v30  ;;  %v4451_v15 = vld [vmem:[%s9060_s1 + $0x4e8] sm:$0xff]  ;;  %v4450_v16 = vld [vmem:[%s9060_s1 + $0x4e0] sm:$0xff]  ;;  %v4448_v19 = vld [vmem:[%s9060_s1 + $0x4d0] sm:$0xff] }
  0x31   :  { %473 = vmatpush1.msra.mxu1 %v4408_v31  ;;  %340 = vmatprep.subr.mxu0 %v4375_v32  ;;  %v290_v17 = vld [vmem:[%s9061_s0 + $0xa] sm:$0xff]  ;;  %v4446_v22 = vld [vmem:[%s9060_s1 + $0x4c0] sm:$0xff]  ;;  %v291_v23 = vld [vmem:[%s9061_s0 + $0x12] sm:$0xff] }
  0x32   :  { %474 = vmatprep.subr.mxu1 %v4407_v33  ;;  %341 = vmatpush1.msra.mxu0 %v4374_v34  ;;  %v424_v20 = vld [vmem:[%s9061_s0 + $0xb] sm:$0xff]  ;;  %v4445_v24 = vld [vmem:[%s9060_s1 + $0x4b8] sm:$0xff]  ;;  %v4442_v28 = vld [vmem:[%s9060_s1 + $0x4a0] sm:$0xff] }
  0x33   :  { %475 = vmatpush1.msra.mxu1 %v4406_v35  ;;  %342 = vmatprep.subr.mxu0 %v4373_v36  ;;  %v4447_v21 = vld [vmem:[%s9060_s1 + $0x4c8] sm:$0xff]  ;;  %v4444_v25 = vld [vmem:[%s9060_s1 + $0x4b0] sm:$0xff]  ;;  %v292_v29 = vld [vmem:[%s9061_s0 + $0x1a] sm:$0xf] }
  0x34   :  { %181 = vmatprep.mubr.f32.mxu0 %v5845_v3  ;;  %343 = vmatpush1.msra.mxu0 %v4372_v37  ;;  %v425_v26 = vld [vmem:[%s9061_s0 + $0x13] sm:$0xff]  ;;  %v4443_v27 = vld [vmem:[%s9060_s1 + $0x4a8] sm:$0xff]  ;;  %v426_v32 = vld [vmem:[%s9061_s0 + $0x1b] sm:$0xf] }
  0x35   :  { %270 = vmatprep.mubr.f32.mxu1 %v5845_v3  ;;  %344 = vmatprep.subr.mxu0 %v4371_v38  ;;  %v4441_v30 = vld [vmem:[%s9060_s1 + $0x498] sm:$0xff]  ;;  %v4440_v31 = vld [vmem:[%s9060_s1 + $0x490] sm:$0xff]  ;;  %v4439_v33 = vld [vmem:[%s9060_s1 + $0x488] sm:$0xff] }
  0x36   :  { %476 = vmatprep.subr.mxu1 %v4405_v39  ;;  %182 = vmatmul.mubr.f32.gmra.mxu0 %v75_v40  ;;  %v4438_v34 = vld [vmem:[%s9060_s1 + $0x480] sm:$0xff]  ;;  %v4437_v35 = vld [vmem:[%s9060_s1 + $0x478] sm:$0xff]  ;;  %v4436_v36 = vld [vmem:[%s9060_s1 + $0x470] sm:$0xff] }
  0x37   :  { %271 = vmatmul.mubr.f32.gmra.mxu1 %v39_v41  ;;  %345 = vmatpush1.msra.mxu0 %v4370_v42  ;;  %v4435_v37 = vld [vmem:[%s9060_s1 + $0x468] sm:$0xff]  ;;  %v4434_v38 = vld [vmem:[%s9060_s1 + $0x460] sm:$0xff]  ;;  %v4433_v39 = vld [vmem:[%s9060_s1 + $0x458] sm:$0xff] }
  0x38   :  { %477 = vmatpush1.msra.mxu1 %v4404_v43  ;;  %346 = vmatprep.subr.mxu0 %v4369_v44  ;;  %v4432_v40 = vld [vmem:[%s9060_s1 + $0x450] sm:$0xff]  ;;  %v4431_v41 = vld [vmem:[%s9060_s1 + $0x448] sm:$0xff]  ;;  %v4430_v42 = vld [vmem:[%s9060_s1 + $0x440] sm:$0xff] }
  0x39   :  { %478 = vmatprep.subr.mxu1 %v4403_v45  ;;  %347 = vmatpush1.msra.mxu0 %v4368_v46  ;;  %v4429_v43 = vld [vmem:[%s9060_s1 + $0x438] sm:$0xff]  ;;  %v4428_v44 = vld [vmem:[%s9060_s1 + $0x430] sm:$0xff]  ;;  %v4427_v45 = vld [vmem:[%s9060_s1 + $0x428] sm:$0xff] }
  0x3a   :  { %479 = vmatpush1.msra.mxu1 %v4402_v47  ;;  %187 = vmatprep.mubr.f32.mxu0 %v5845_v3  ;;  %v4426_v46 = vld [vmem:[%s9060_s1 + $0x420] sm:$0xff]  ;;  %v4425_v47 = vld [vmem:[%s9060_s1 + $0x418] sm:$0xff] }
  0x3b   :  { %276 = vmatprep.mubr.f32.mxu1 %v5845_v3  ;;  %348 = vmatprep.subr.mxu0 %v4367_v48  ;;  %v4424_v48 = vld [vmem:[%s9060_s1 + $0x410] sm:$0xff] }
  0x3c   :  { %480 = vmatprep.subr.mxu1 %v4401_v49  ;;  %188 = vmatmul.mubr.f32.gmra.mxu0 %v76_v50  ;;  %v4423_v49 = vld [vmem:[%s9060_s1 + $0x408] sm:$0xff]  ;;  %v4422_v50 = vld [vmem:[%s9060_s1 + $0x400] sm:$0xff] }
  0x3d   :  { %277 = vmatmul.mubr.f32.gmra.mxu1 %v40_v51  ;;  %349 = vmatpush1.msra.mxu0 %v4366_v52  ;;  %v557_v51 = vld [vmem:[%s9061_s0 + $0x4] sm:$0xff]  ;;  %v558_v52 = vld [vmem:[%s9061_s0 + $0xc] sm:$0xff] }
  0x3e   :  { %481 = vmatpush1.msra.mxu1 %v4400_v53  ;;  %350 = vmatprep.subr.mxu0 %v4365_v54  ;;  %v559_v53 = vld [vmem:[%s9061_s0 + $0x14] sm:$0xff]  ;;  %v560_v54 = vld [vmem:[%s9061_s0 + $0x1c] sm:$0xf] }
  0x3f   :  { %482 = vmatprep.subr.mxu1 %v4399_v55  ;;  %351 = vmatpush1.msra.mxu0 %v4364_v56  ;;  %v906_v55 = vld [vmem:[%s9062_s2 + $0xf8] sm:$0xff]  ;;  %v905_v56 = vld [vmem:[%s9062_s2 + $0xf0] sm:$0xff] }
  0x40   :  { %483 = vmatpush1.msra.mxu1 %v4398_v57  ;;  %193 = vmatprep.mubr.f32.mxu0 %v5845_v3  ;;  %v904_v57 = vld [vmem:[%s9062_s2 + $0xe8] sm:$0xff] }
  0x41   :  { %282 = vmatprep.mubr.f32.mxu1 %v5845_v3  ;;  %352 = vmatprep.subr.mxu0 %v4363_v58  ;;  %v903_v58 = vld [vmem:[%s9062_s2 + $0xe0] sm:$0xff] }
  0x42   :  { %484 = vmatprep.subr.mxu1 %v4397_v59  ;;  %194 = vmatmul.mubr.f32.gmra.mxu0 %v77_v60  ;;  %v4487_v59 = vld [vmem:[%s9062_s2 + $0x1f8] sm:$0xff] }
  0x43   :  { %283 = vmatmul.mubr.f32.gmra.mxu1 %v41_v61  ;;  %353 = vmatpush1.msra.mxu0 %v4362_v62  ;;  %v902_v60 = vld [vmem:[%s9062_s2 + $0xd8] sm:$0xff]  ;;  %v4486_v61 = vld [vmem:[%s9062_s2 + $0x1f0] sm:$0xff] }
  0x44   :  { %485 = vmatpush1.msra.mxu1 %v4396_v63  ;;  %354 = vmatprep.subr.mxu0 %v4361_v0  ;;  %v901_v62 = vld [vmem:[%s9062_s2 + $0xd0] sm:$0xff]  ;;  %v4485_v63 = vld [vmem:[%s9062_s2 + $0x1e8] sm:$0xff] }
  0x45   :  { %486 = vmatprep.subr.mxu1 %v4395_v1  ;;  %355 = vmatpush1.msra.mxu0 %v4360_v2  ;;  %v900_v0 = vld [vmem:[%s9062_s2 + $0xc8] sm:$0xff]  ;;  %v4484_v1 = vld [vmem:[%s9062_s2 + $0x1e0] sm:$0xff] }
  0x46   :  { %487 = vmatpush1.msra.mxu1 %v4394_v4  ;;  %356 = vmatprep.subr.mxu0 %v4359_v5  ;;  %v899_v2 = vld [vmem:[%s9062_s2 + $0xc0] sm:$0xff]  ;;  %v4483_v4 = vld [vmem:[%s9062_s2 + $0x1d8] sm:$0xff] }
  0x47   :  { %488 = vmatprep.subr.mxu1 %v4393_v6  ;;  %357 = vmatpush1.msra.mxu0 %v4358_v7  ;;  %v898_v5 = vld [vmem:[%s9062_s2 + $0xb8] sm:$0xff]  ;;  %v4482_v6 = vld [vmem:[%s9062_s2 + $0x1d0] sm:$0xff] }
  0x48   :  { %390 = vmatprep.mubr.f32.mxu0 %v5845_v3  ;;  %489 = vmatpush1.msra.mxu1 %v4392_v8  ;;  %v897_v7 = vld [vmem:[%s9062_s2 + $0xb0] sm:$0xff]  ;;  %v4481_v8 = vld [vmem:[%s9062_s2 + $0x1c8] sm:$0xff] }
  0x49   :  { %391 = vmatmul.mubr.f32.vlgmr.msra.gmra.mxu0 %v289_v9  ;;  %490 = vmatprep.subr.mxu1 %v4391_v10  ;;  %v896_v9 = vld [vmem:[%s9062_s2 + $0xa8] sm:$0xff]  ;;  %v4480_v10 = vld [vmem:[%s9062_s2 + $0x1c0] sm:$0xff] }
  0x4a   :  { %594 = vmatprep.subr.mxu0 %v4453_v11  ;;  %491 = vmatpush1.msra.mxu1 %v4390_v12  ;;  %v895_v11 = vld [vmem:[%s9062_s2 + $0xa0] sm:$0xff]  ;;  %v4479_v12 = vld [vmem:[%s9062_s2 + $0x1b8] sm:$0xff] }
  0x4b   :  { %524 = vmatprep.mubr.f32.mxu1 %v5845_v3  ;;  %595 = vmatpush1.msra.mxu0 %v4452_v13  ;;  %v894_v13 = vld [vmem:[%s9062_s2 + $0x98] sm:$0xff] }
  0x4c   :  { %525 = vmatmul.mubr.f32.vlgmr.msra.gmra.mxu1 %v423_v14  ;;  %596 = vmatprep.subr.mxu0 %v4451_v15  ;;  %v4478_v14 = vld [vmem:[%s9062_s2 + $0x1b0] sm:$0xff] }
  0x4d   :  { %396 = vmatprep.mubr.f32.mxu0 %v5845_v3  ;;  %597 = vmatpush1.msra.mxu0 %v4450_v16  ;;  %v893_v15 = vld [vmem:[%s9062_s2 + $0x90] sm:$0xff]  ;;  %v4477_v16 = vld [vmem:[%s9062_s2 + $0x1a8] sm:$0xff] }
  0x4e   :  { %530 = vmatprep.mubr.f32.mxu1 %v5845_v3  ;;  %397 = vmatmul.mubr.f32.gmra.mxu0 %v290_v17  ;;  %v892_v17 = vld [vmem:[%s9062_s2 + $0x88] sm:$0xff] }
  0x4f   :  { %598 = vmatprep.subr.mxu0 %v4449_v18  ;;  %402 = vmatprep.mubr.f32.mxu0 %v5845_v3  ;;  %v4476_v18 = vld [vmem:[%s9062_s2 + $0x1a0] sm:$0xff] }
  0x50   :  { %599 = vmatpush1.msra.mxu0 %v4448_v19  ;;  %531 = vmatmul.mubr.f32.gmra.mxu1 %v424_v20  ;;  %v891_v19 = vld [vmem:[%s9062_s2 + $0x80] sm:$0xff]  ;;  %v4475_v20 = vld [vmem:[%s9062_s2 + $0x198] sm:$0xff] }
  0x51   :  { %600 = vmatprep.subr.mxu0 %v4447_v21  ;;  %536 = vmatprep.mubr.f32.mxu1 %v5845_v3  ;;  %v890_v21 = vld [vmem:[%s9062_s2 + $0x78] sm:$0xff] }
  0x52   :  { %601 = vmatpush1.msra.mxu0 %v4446_v22  ;;  %942 = vmatprep.subr.mxu1 %v4487_v59  ;;  %v4474_v22 = vld [vmem:[%s9062_s2 + $0x190] sm:$0xff] }
  0x53   :  { %403 = vmatmul.mubr.f32.gmra.mxu0 %v291_v23  ;;  %602 = vmatprep.subr.mxu0 %v4445_v24  ;;  %v889_v23 = vld [vmem:[%s9062_s2 + $0x70] sm:$0xff]  ;;  %v4473_v24 = vld [vmem:[%s9062_s2 + $0x188] sm:$0xff] }
  0x54   :  { %603 = vmatpush1.msra.mxu0 %v4444_v25  ;;  %537 = vmatmul.mubr.f32.gmra.mxu1 %v425_v26  ;;  %v888_v25 = vld [vmem:[%s9062_s2 + $0x68] sm:$0xff]  ;;  %v4472_v26 = vld [vmem:[%s9062_s2 + $0x180] sm:$0xff] }
  0x55   :  { %604 = vmatprep.subr.mxu0 %v4443_v27  ;;  %408 = vmatprep.mubr.f32.mxu0 %v5845_v3  ;;  %v887_v27 = vld [vmem:[%s9062_s2 + $0x60] sm:$0xff] }
  0x56   :  { %605 = vmatpush1.msra.mxu0 %v4442_v28  ;;  %542 = vmatprep.mubr.f32.mxu1 %v5845_v3  ;;  %v4471_v28 = vld [vmem:[%s9062_s2 + $0x178] sm:$0xff] }
  0x57   :  { %409 = vmatmul.mubr.f32.gmra.mxu0 %v292_v29  ;;  %606 = vmatprep.subr.mxu0 %v4441_v30  ;;  %v886_v29 = vld [vmem:[%s9062_s2 + $0x58] sm:$0xff]  ;;  %v4470_v30 = vld [vmem:[%s9062_s2 + $0x170] sm:$0xff] }
  0x58   :  { %607 = vmatpush1.msra.mxu0 %v4440_v31  ;;  %543 = vmatmul.mubr.f32.gmra.mxu1 %v426_v32  ;;  %v885_v31 = vld [vmem:[%s9062_s2 + $0x50] sm:$0xff]  ;;  %v4469_v32 = vld [vmem:[%s9062_s2 + $0x168] sm:$0xff] }
  0x59   :  { %608 = vmatprep.subr.mxu0 %v4439_v33  ;;  %658 = vmatprep.mubr.f32.mxu0 %v5845_v3  ;;  %v884_v33 = vld [vmem:[%s9062_s2 + $0x48] sm:$0xff] }
  0x5a   :  { %609 = vmatpush1.msra.mxu0 %v4438_v34  ;;  %1006 = vmatprep.mubr.f32.mxu1 %v5845_v3  ;;  %v4468_v34 = vld [vmem:[%s9062_s2 + $0x160] sm:$0xff] }
  0x5b   :  { %610 = vmatprep.subr.mxu0 %v4437_v35  ;;  %943 = vmatpush1.msra.mxu1 %v4486_v61  ;;  %v883_v35 = vld [vmem:[%s9062_s2 + $0x40] sm:$0xff] }
  0x5c   :  { %611 = vmatpush1.msra.mxu0 %v4436_v36  ;;  %944 = vmatprep.subr.mxu1 %v4485_v63  ;;  %v4467_v36 = vld [vmem:[%s9062_s2 + $0x158] sm:$0xff] }
  0x5d   :  { %612 = vmatprep.subr.mxu0 %v4435_v37  ;;  %945 = vmatpush1.msra.mxu1 %v4484_v1  ;;  %v882_v37 = vld [vmem:[%s9062_s2 + $0x38] sm:$0xff] }
  0x5e   :  { %613 = vmatpush1.msra.mxu0 %v4434_v38  ;;  %946 = vmatprep.subr.mxu1 %v4483_v4  ;;  %v4466_v38 = vld [vmem:[%s9062_s2 + $0x150] sm:$0xff] }
  0x5f   :  { %614 = vmatprep.subr.mxu0 %v4433_v39  ;;  %947 = vmatpush1.msra.mxu1 %v4482_v6  ;;  %v881_v39 = vld [vmem:[%s9062_s2 + $0x30] sm:$0xff] }
  0x60   :  { %615 = vmatpush1.msra.mxu0 %v4432_v40  ;;  %948 = vmatprep.subr.mxu1 %v4481_v8  ;;  %v4465_v40 = vld [vmem:[%s9062_s2 + $0x148] sm:$0xff] }
  0x61   :  { %616 = vmatprep.subr.mxu0 %v4431_v41  ;;  %949 = vmatpush1.msra.mxu1 %v4480_v10  ;;  %v880_v41 = vld [vmem:[%s9062_s2 + $0x28] sm:$0xff] }
  0x62   :  { %617 = vmatpush1.msra.mxu0 %v4430_v42  ;;  %950 = vmatprep.subr.mxu1 %v4479_v12  ;;  %v4464_v42 = vld [vmem:[%s9062_s2 + $0x140] sm:$0xff] }
  0x63   :  { %618 = vmatprep.subr.mxu0 %v4429_v43  ;;  %951 = vmatpush1.msra.mxu1 %v4478_v14  ;;  %v879_v43 = vld [vmem:[%s9062_s2 + $0x20] sm:$0xff] }
  0x64   :  { %619 = vmatpush1.msra.mxu0 %v4428_v44  ;;  %952 = vmatprep.subr.mxu1 %v4477_v16  ;;  %v4463_v44 = vld [vmem:[%s9062_s2 + $0x138] sm:$0xff] }
  0x65   :  { %620 = vmatprep.subr.mxu0 %v4427_v45  ;;  %953 = vmatpush1.msra.mxu1 %v4476_v18  ;;  %v878_v45 = vld [vmem:[%s9062_s2 + $0x18] sm:$0xff]  ;;  %v697_v18 = vlaneseq }
  0x66   :  { %621 = vmatpush1.msra.mxu0 %v4426_v46  ;;  %954 = vmatprep.subr.mxu1 %v4475_v20  ;;  %v4462_v46 = vld [vmem:[%s9062_s2 + $0x130] sm:$0xff] }
  0x67   :  { %622 = vmatprep.subr.mxu0 %v4425_v47  ;;  %955 = vmatpush1.msra.mxu1 %v4474_v22  ;;  %v877_v47 = vld [vmem:[%s9062_s2 + $0x10] sm:$0xff] }
  0x68   :  { %623 = vmatpush1.msra.mxu0 %v4424_v48  ;;  %956 = vmatprep.subr.mxu1 %v4473_v24  ;;  %v4461_v48 = vld [vmem:[%s9062_s2 + $0x128] sm:$0xff] }
  0x69   :  { %624 = vmatprep.subr.mxu0 %v4423_v49  ;;  %957 = vmatpush1.msra.mxu1 %v4472_v26  ;;  %v876_v49 = vld [vmem:[%s9062_s2 + $0x8] sm:$0xff] }
  0x6a   :  { %625 = vmatpush1.msra.mxu0 %v4422_v50  ;;  %958 = vmatprep.subr.mxu1 %v4471_v28  ;;  %v4460_v50 = vld [vmem:[%s9062_s2 + $0x120] sm:$0xff] }
  0x6b   :  { %659 = vmatmul.mubr.f32.vlgmr.msra.gmra.mxu0 %v557_v51  ;;  %1019 = vmatprep.subr.mxu0 %v906_v55  ;;  %v875_v51 = vld [vmem:[%s9062_s2] sm:$0xff]  ;;  %v4458_v55 = vld [vmem:[%s9062_s2 + $0x110] sm:$0xff] }
  0x6c   :  { %664 = vmatprep.mubr.f32.mxu0 %v5845_v3  ;;  %1020 = vmatpush1.msra.mxu0 %v905_v56  ;;  %v691_v28 = vld [vmem:[%s9063_s6] ss:$4 sm:$0x3] }
  0x6d   :  { %1021 = vmatprep.subr.mxu0 %v904_v57  ;;  %959 = vmatpush1.msra.mxu1 %v4470_v30  ;;  %v4457_v57 = vld [vmem:[%s9062_s2 + $0x108] sm:$0xff] }
  0x6e   :  { %1022 = vmatpush1.msra.mxu0 %v903_v58  ;;  %960 = vmatprep.subr.mxu1 %v4469_v32  ;;  %v4456_v58 = vld [vmem:[%s9062_s2 + $0x100] sm:$0xff] }
  0x6f   :  { %665 = vmatmul.mubr.f32.gmra.mxu0 %v558_v52  ;;  %1023 = vmatprep.subr.mxu0 %v902_v60  ;;  %v4459_v52 = vld [vmem:[%s9062_s2 + $0x118] sm:$0xff] }
  0x70   :  { %670 = vmatprep.mubr.f32.mxu0 %v5845_v3  ;;  %1024 = vmatpush1.msra.mxu0 %v901_v62  ;;  %v4519_v60 = vld [vmem:[%s9062_s2 + $0x2f8] sm:$0xff] }
  0x71   :  { %1025 = vmatprep.subr.mxu0 %v900_v0  ;;  %961 = vmatpush1.msra.mxu1 %v4468_v34 }
  0x72   :  { %1026 = vmatpush1.msra.mxu0 %v899_v2  ;;  %962 = vmatprep.subr.mxu1 %v4467_v36 }
  0x73   :  { %671 = vmatmul.mubr.f32.gmra.mxu0 %v559_v53  ;;  %1027 = vmatprep.subr.mxu0 %v898_v5  ;;  %v4551_v53 = vld [vmem:[%s9062_s2 + $0x3f8] sm:$0xff] }
  0x74   :  { %676 = vmatprep.mubr.f32.mxu0 %v5845_v3  ;;  %1028 = vmatpush1.msra.mxu0 %v897_v7 }
  0x75   :  { %1029 = vmatprep.subr.mxu0 %v896_v9  ;;  %963 = vmatpush1.msra.mxu1 %v4466_v38 }
  0x76   :  { %1030 = vmatpush1.msra.mxu0 %v895_v11  ;;  %964 = vmatprep.subr.mxu1 %v4465_v40 }
  0x77   :  { %677 = vmatmul.mubr.f32.gmra.mxu0 %v560_v54  ;;  %1031 = vmatprep.subr.mxu0 %v894_v13 }
  0x78   :  { %1083 = vmatprep.mubr.f32.mxu0 %v5845_v3  ;;  %1032 = vmatpush1.msra.mxu0 %v893_v15 }
  0x79   :  { %1033 = vmatprep.subr.mxu0 %v892_v17  ;;  %965 = vmatpush1.msra.mxu1 %v4464_v42 }
  0x7a   :  { %1034 = vmatpush1.msra.mxu0 %v891_v19  ;;  %966 = vmatprep.subr.mxu1 %v4463_v44 }
  0x7b   :  { %1035 = vmatprep.subr.mxu0 %v890_v21  ;;  %967 = vmatpush1.msra.mxu1 %v4462_v46  ;;  %v698_v21 = vshrl.u32 %v697_v18, 7 }
  0x7c   :  { %1036 = vmatpush1.msra.mxu0 %v889_v23  ;;  %968 = vmatprep.subr.mxu1 %v4461_v48 }
  0x7d   :  { %1037 = vmatprep.subr.mxu0 %v888_v25  ;;  %969 = vmatpush1.msra.mxu1 %v4460_v50  ;;  %v6672_v32 = vsub.s32 1, %v698_v21 }
  0x7e   :  { %1038 = vmatpush1.msra.mxu0 %v887_v27  ;;  %970 = vmatprep.subr.mxu1 %v4459_v52  ;;  %v6667_v27 = vsub.s32 0, %v698_v21 }
  0x7f   :  { %1039 = vmatprep.subr.mxu0 %v886_v29  ;;  %971 = vmatpush1.msra.mxu1 %v4458_v55 }
  0x80   :  { %1040 = vmatpush1.msra.mxu0 %v885_v31  ;;  %972 = vmatprep.subr.mxu1 %v4457_v57 }
  0x81   :  { %1041 = vmatprep.subr.mxu0 %v884_v33  ;;  %973 = vmatpush1.msra.mxu1 %v4456_v58 }
  0x82   :  { %1042 = vmatpush1.msra.mxu0 %v883_v35  ;;  %1131 = vmatprep.subr.mxu1 %v4519_v60 }
  0x83   :  { %1043 = vmatprep.subr.mxu0 %v882_v37  ;;  %v700_v37 = vrot.slane %v691_v28, %v6667_v27 }
  0x84   :  { %1044 = vmatpush1.msra.mxu0 %v881_v39 }
  0x85   :  { %1045 = vmatprep.subr.mxu0 %v880_v41 }
  0x86   :  { %1046 = vmatpush1.msra.mxu0 %v879_v43  ;;  %v704_v43 = vrot.slane %v691_v28, %v6672_v32 }
  0x87   :  { %1047 = vmatprep.subr.mxu0 %v878_v45 }
  0x88   :  { %1048 = vmatpush1.msra.mxu0 %v877_v47 }
  0x89   :  { %1049 = vmatprep.subr.mxu0 %v876_v49 }
  0x8a   :  { %1050 = vmatpush1.msra.mxu0 %v875_v51 }
  0x8b   :  { %1247 = vmatprep.subr.mxu0 %v4551_v53 }
  0xe2   :  { %v177_v54 = vpop.f32.mrf.mxu0 }
  0xe3   :  { %v266_v62 = vpop.f32.mrf.mxu1 }
  0xe4   :  { %v179_v56 = vpop.f32.mrf.mxu0  ;;  %v267_v22 = vadd.f32 %v266_v62, %v177_v54 }
  0xe5   :  { %v268_v0 = vpop.f32.mrf.mxu1 }
  0xe6   :  { %v269_v25 = vadd.f32 %v268_v0, %v179_v56 }
  0xf6   :  { %v183_v59 = vpop.f32.mrf.mxu0 }
  0xf7   :  { %v272_v2 = vpop.f32.mrf.mxu1 }
  0xf8   :  { %v185_v61 = vpop.f32.mrf.mxu0  ;;  %v273_v29 = vadd.f32 %v272_v2, %v183_v59 }
  0xf9   :  { %v274_v5 = vpop.f32.mrf.mxu1 }
  0xfa   :  { %v275_v34 = vadd.f32 %v274_v5, %v185_v61 }
  0xfc   :  { %v189_v63 = vpop.f32.mrf.mxu0 }
  0xfd   :  { %v278_v7 = vpop.f32.mrf.mxu1 }
  0xfe   :  { %v191_v1 = vpop.f32.mrf.mxu0  ;;  %v279_v44 = vadd.f32 %v278_v7, %v189_v63 }
  0xff   :  { %v280_v9 = vpop.f32.mrf.mxu1 }
 0x100   :  { %v281_v45 = vadd.f32 %v280_v9, %v191_v1 }
 0x102   :  { %v195_v4 = vpop.f32.mrf.mxu0 }
 0x103   :  { %v284_v11 = vpop.f32.mrf.mxu1 }
 0x104   :  { %v197_v6 = vpop.f32.mrf.mxu0  ;;  %v285_v50 = vadd.f32 %v284_v11, %v195_v4 }
 0x105   :  { %v286_v13 = vpop.f32.mrf.mxu1 }
 0x106   :  { %v287_v59 = vadd.f32 %v286_v13, %v197_v6 }
 0x109   :  { %v392_v8 = vpop.f32.mrf.mxu0 }
 0x10a   :  { %v415_v26 = vadd.f32 %v392_v8, %v267_v22 }
 0x10b   :  { %v394_v10 = vpop.f32.mrf.mxu0 }
 0x10c   :  { %v526_v14 = vpop.f32.mrf.mxu1  ;;  %v416_v30 = vadd.f32 %v394_v10, %v269_v25 }
 0x10d   :  { %v549_v35 = vadd.f32 %v526_v14, %v415_v26 }
 0x10e   :  { %v398_v12 = vpop.f32.mrf.mxu0  ;;  %v528_v16 = vpop.f32.mrf.mxu1 }
 0x10f   :  { %v417_v36 = vadd.f32 %v398_v12, %v273_v29  ;;  %v550_v39 = vadd.f32 %v528_v16, %v416_v30 }
 0x110   :  { %v400_v15 = vpop.f32.mrf.mxu0  ;;  %v532_v19 = vpop.f32.mrf.mxu1 }
 0x111   :  { %v418_v40 = vadd.f32 %v400_v15, %v275_v34  ;;  %v551_v47 = vadd.f32 %v532_v19, %v417_v36 }
 0x112   :  { %v534_v23 = vpop.f32.mrf.mxu1 }
 0x113   :  { %v404_v17 = vpop.f32.mrf.mxu0  ;;  %v552_v54 = vadd.f32 %v534_v23, %v418_v40 }
 0x114   :  { %v538_v31 = vpop.f32.mrf.mxu1  ;;  %v419_v51 = vadd.f32 %v404_v17, %v279_v44 }
 0x115   :  { %v406_v20 = vpop.f32.mrf.mxu0 }
 0x116   :  { %v540_v41 = vpop.f32.mrf.mxu1  ;;  %v420_v52 = vadd.f32 %v406_v20, %v281_v45  ;;  %v553_v2 = vadd.f32 %v538_v31, %v419_v51  ;;  %v4455_v51 = vld [vmem:[%s9063_s6 + $0x2] ss:$4 sm:$0x3] }
 0x117   :  { %v410_v24 = vpop.f32.mrf.mxu0 }
 0x118   :  { %v544_v55 = vpop.f32.mrf.mxu1  ;;  %v421_v60 = vadd.f32 %v410_v24, %v285_v50  ;;  %v554_v5 = vadd.f32 %v540_v41, %v420_v52 }
 0x119   :  { %v412_v33 = vpop.f32.mrf.mxu0 }
 0x11a   :  { %v422_v7 = vadd.f32 %v412_v33, %v287_v59  ;;  %v546_v4 = vpop.f32.mrf.mxu1  ;;  %v555_v12 = vadd.f32 %v544_v55, %v421_v60  ;;  %v786_v55 = vrot.slane %v4455_v51, %v6667_v27  ;;  %v790_v60 = vrot.slane %v4455_v51, %v6672_v32 }
 0x11c   :  { %v556_v17 = vadd.f32 %v546_v4, %v422_v7 }
 0x12b   :  { %v660_v38 = vpop.f32.mrf.mxu0 }
 0x12c   :  { %v683_v42 = vadd.f32 %v660_v38, %v549_v35 }
 0x12d   :  { %v662_v46 = vpop.f32.mrf.mxu0 }
 0x12e   :  { %v707_v48 = vadd.f32 %v700_v37, %v683_v42  ;;  %v684_v49 = vadd.f32 %v662_v46, %v550_v39 }
 0x12f   :  { %v666_v53 = vpop.f32.mrf.mxu0 }
 0x130   :  { %v715_v56 = vsub.f32 0.0, %v707_v48  ;;  %v708_v57 = vadd.f32 %v704_v43, %v684_v49  ;;  %v685_v58 = vadd.f32 %v666_v53, %v551_v47  ;;  %v4454_v47 = vld [vmem:[%s9063_s6 + $0x1] ss:$4 sm:$0x3] }
 0x131   :  { %v668_v61 = vpop.f32.mrf.mxu0  ;;  %v767_v52 = vrot.slane %v4454_v47, %v6667_v27 }
 0x132   :  { %v723_v62 = vmul.f32 1.442695, %v715_v56  ;;  %v716_v0 = vsub.f32 0.0, %v708_v57  ;;  %v709_v63 = vadd.f32 %v700_v37, %v685_v58  ;;  %v686_v1 = vadd.f32 %v668_v61, %v552_v54 }
 0x133   :  { %v672_v8 = vpop.f32.mrf.mxu0  ;;  %v771_v56 = vrot.slane %v4454_v47, %v6672_v32 }
 0x134   :  { %5725 = vpow2.f32 %v723_v62  ;;  %v725_v9 = vmul.f32 1.442695, %v716_v0  ;;  %v717_v10 = vsub.f32 0.0, %v709_v63  ;;  %v710_v11 = vadd.f32 %v704_v43, %v686_v1 }
 0x135   :  { %v687_v14 = vadd.f32 %v672_v8, %v553_v2  ;;  %v674_v15 = vpop.f32.mrf.mxu0 }
 0x136   :  { %5727 = vpow2.f32 %v725_v9  ;;  %v727_v6 = vmul.f32 1.442695, %v717_v10  ;;  %v718_v13 = vsub.f32 0.0, %v710_v11  ;;  %v688_v16 = vadd.f32 %v674_v15, %v554_v5 }
 0x137   :  { %v711_v18 = vadd.f32 %v700_v37, %v687_v14  ;;  %v678_v19 = vpop.f32.mrf.mxu0 }
 0x138   :  { %5729 = vpow2.f32 %v727_v6  ;;  %v729_v20 = vmul.f32 1.442695, %v718_v13  ;;  %v712_v21 = vadd.f32 %v704_v43, %v688_v16  ;;  %v689_v22 = vadd.f32 %v678_v19, %v555_v12 }
 0x139   :  { %v719_v23 = vsub.f32 0.0, %v711_v18  ;;  %v680_v24 = vpop.f32.mrf.mxu0 }
 0x13a   :  { %5731 = vpow2.f32 %v729_v20  ;;  %v720_v25 = vsub.f32 0.0, %v712_v21  ;;  %v713_v26 = vadd.f32 %v700_v37, %v689_v22  ;;  %v690_v28 = vadd.f32 %v680_v24, %v556_v17 }
 0x13b   :  { %v731_v29 = vmul.f32 1.442695, %v719_v23 }
 0x13c   :  { %v733_v30 = vmul.f32 1.442695, %v720_v25  ;;  %v721_v31 = vsub.f32 0.0, %v713_v26  ;;  %v714_v33 = vadd.f32 %v704_v43, %v690_v28 }
 0x13d   :  { %5733 = vpow2.f32 %v731_v29 }
 0x13e   :  { %5735 = vpow2.f32 %v733_v30  ;;  %v735_v34 = vmul.f32 1.442695, %v721_v31  ;;  %v722_v35 = vsub.f32 0.0, %v714_v33 }
 0x140   :  { %5737 = vpow2.f32 %v735_v34  ;;  %v737_v36 = vmul.f32 1.442695, %v722_v35 }
 0x141   :  { %v5726_v38 = vpop.eup %5725 }
 0x142   :  { %v739_v39 = vadd.f32 1.0, %v5726_v38  ;;  %5739 = vpow2.f32 %v737_v36 }
 0x143   :  { %v5728_v40 = vpop.eup %5727 }
 0x144   :  { %5741 = vrcp.f32 %v739_v39  ;;  %v740_v41 = vadd.f32 1.0, %v5728_v40 }
 0x145   :  { %v5730_v42 = vpop.eup %5729 }
 0x146   :  { %5743 = vrcp.f32 %v740_v41  ;;  %v741_v37 = vadd.f32 1.0, %v5730_v42 }
 0x147   :  { %v5732_v44 = vpop.eup %5731 }
 0x148   :  { %5745 = vrcp.f32 %v741_v37  ;;  %v742_v45 = vadd.f32 1.0, %v5732_v44 }
 0x14a   :  { %v5734_v46 = vpop.eup %5733  ;;  %5747 = vrcp.f32 %v742_v45 }
 0x14b   :  { %v5736_v43 = vpop.eup %5735  ;;  %v743_v48 = vadd.f32 1.0, %v5734_v46 }
 0x14c   :  { %v744_v49 = vadd.f32 1.0, %v5736_v43 }
 0x14d   :  { %v5738_v50 = vpop.eup %5737  ;;  %5749 = vrcp.f32 %v743_v48 }
 0x14e   :  { %5751 = vrcp.f32 %v744_v49  ;;  %v745_v53 = vadd.f32 1.0, %v5738_v50 }
 0x14f   :  { %v5740_v54 = vpop.eup %5739 }
 0x150   :  { %5753 = vrcp.f32 %v745_v53  ;;  %v746_v57 = vadd.f32 1.0, %v5740_v54 }
 0x151   :  { %v5742_v58 = vpop.eup %5741 }
 0x152   :  { %v774_v59 = vmul.f32 %v5742_v58, %v767_v52  ;;  %5755 = vrcp.f32 %v746_v57 }
 0x153   :  { %v5744_v61 = vpop.eup %5743 }
 0x154   :  { %v793_v62 = vadd.f32 %v786_v55, %v774_v59  ;;  %v775_v0 = vmul.f32 %v5744_v61, %v771_v56 }
 0x155   :  { %v5746_v63 = vpop.eup %5745 }
 0x156   :  { %v794_v1 = vadd.f32 %v790_v60, %v775_v0  ;;  %v776_v2 = vmul.f32 %v5746_v63, %v767_v52  ;;  %v801_v7 = vmax.f32 %v793_v62, 0.0 }
 0x157   :  { %v5748_v5 = vpop.eup %5747 }
 0x158   :  { %v802_v8 = vmax.f32 %v794_v1, 0.0  ;;  %v795_v4 = vadd.f32 %v786_v55, %v776_v2  ;;  %v777_v9 = vmul.f32 %v5748_v5, %v771_v56 }
 0x15a   :  { %v5750_v10 = vpop.eup %5749  ;;  %v809_v11 = vmax.f32 %v801_v7, %v802_v8  ;;  %v796_v12 = vadd.f32 %v790_v60, %v777_v9  ;;  %v803_v6 = vmax.f32 %v795_v4, 0.0 }
 0x15b   :  { %v5752_v14 = vpop.eup %5751  ;;  %v778_v15 = vmul.f32 %v5750_v10, %v767_v52 }
 0x15c   :  { %813 = vst [vmem:[#allocation2] sm:$0xff] %v809_v11  ;;  %v804_v13 = vmax.f32 %v796_v12, 0.0  ;;  %v779_v16 = vmul.f32 %v5752_v14, %v771_v56 }
 0x15d   :  { %v5754_v17 = vpop.eup %5753  ;;  %v797_v18 = vadd.f32 %v786_v55, %v778_v15  ;;  %v4550_v15 = vld [vmem:[%s9062_s2 + $0x3f0] sm:$0xff] }
 0x15e   :  { %v810_v19 = vmax.f32 %v803_v6, %v804_v13  ;;  %v798_v20 = vadd.f32 %v790_v60, %v779_v16  ;;  %v780_v21 = vmul.f32 %v5754_v17, %v767_v52  ;;  %v4549_v13 = vld [vmem:[%s9062_s2 + $0x3e8] sm:$0xff]  ;;  %v4548_v16 = vld [vmem:[%s9062_s2 + $0x3e0] sm:$0xff]  ;;  %v4518_v17 = vld [vmem:[%s9062_s2 + $0x2f0] sm:$0xff] }
 0x15f   :  { %v5756_v22 = vpop.eup %5755  ;;  %v805_v23 = vmax.f32 %v797_v18, 0.0  ;;  %v4547_v18 = vld [vmem:[%s9062_s2 + $0x3d8] sm:$0xff] }
 0x160   :  { %814 = vst [vmem:[#allocation2 + $0x8] sm:$0xff] %v810_v19  ;;  %v806_v24 = vmax.f32 %v798_v20, 0.0  ;;  %v799_v25 = vadd.f32 %v786_v55, %v780_v21  ;;  %v781_v26 = vmul.f32 %v5756_v22, %v771_v56  ;;  %v4546_v21 = vld [vmem:[%s9062_s2 + $0x3d0] sm:$0xff]  ;;  %v4517_v22 = vld [vmem:[%s9062_s2 + $0x2e8] sm:$0xff] }
 0x162   :  { %v811_v28 = vmax.f32 %v805_v23, %v806_v24  ;;  %v800_v29 = vadd.f32 %v790_v60, %v781_v26  ;;  %v807_v34 = vmax.f32 %v799_v25, 0.0  ;;  %v4545_v23 = vld [vmem:[%s9062_s2 + $0x3c8] sm:$0xff]  ;;  %v4516_v24 = vld [vmem:[%s9062_s2 + $0x2e0] sm:$0xff]  ;;  %v4515_v26 = vld [vmem:[%s9062_s2 + $0x2d8] sm:$0xff] }
 0x163   :  { %v817_v30 = vld [vmem:[#allocation2] sm:$0x1]  ;;  %v818_v31 = vld [vmem:[#allocation2 + $0x1] sm:$0x1]  ;;  %v821_v33 = vld [vmem:[#allocation2 + $0x2] sm:$0x1] }
 0x164   :  { %815 = vst [vmem:[#allocation2 + $0x10] sm:$0xff] %v811_v28  ;;  %v808_v35 = vmax.f32 %v800_v29, 0.0  ;;  %v819_v36 = vmax.f32 %v817_v30, %v818_v31  ;;  %v822_v38 = vld [vmem:[#allocation2 + $0x3] sm:$0x1]  ;;  %v825_v39 = vld [vmem:[#allocation2 + $0x4] sm:$0x1] }
 0x165   :  { %v823_v40 = vmax.f32 %v821_v33, %v822_v38  ;;  %v826_v41 = vld [vmem:[#allocation2 + $0x5] sm:$0x1]  ;;  %v829_v42 = vld [vmem:[#allocation2 + $0x6] sm:$0x1]  ;;  %v830_v37 = vld [vmem:[#allocation2 + $0x7] sm:$0x1] }
 0x166   :  { %v812_v44 = vmax.f32 %v807_v34, %v808_v35  ;;  %820 = vst [vmem:[#allocation3] sm:$0x1] %v819_v36  ;;  %v827_v45 = vmax.f32 %v825_v39, %v826_v41  ;;  %v831_v46 = vmax.f32 %v829_v42, %v830_v37  ;;  %v4544_v25 = vld [vmem:[%s9062_s2 + $0x3c0] sm:$0xff]  ;;  %v4543_v28 = vld [vmem:[%s9062_s2 + $0x3b8] sm:$0xff]  ;;  %v4542_v29 = vld [vmem:[%s9062_s2 + $0x3b0] sm:$0xff] }
 0x167   :  { %824 = vst [vmem:[#allocation3 + $0x1] sm:$0x1] %v823_v40  ;;  %v833_v43 = vld [vmem:[#allocation2 + $0x8] sm:$0x1]  ;;  %v834_v47 = vld [vmem:[#allocation2 + $0x9] sm:$0x1] }
 0x168   :  { %v837_v48 = vld [vmem:[#allocation2 + $0xa] sm:$0x1]  ;;  %816 = vst [vmem:[#allocation2 + $0x18] sm:$0xf] %v812_v44  ;;  %828 = vst [vmem:[#allocation3 + $0x2] sm:$0x1] %v827_v45  ;;  %v835_v49 = vmax.f32 %v833_v43, %v834_v47 }
 0x169   :  { %832 = vst [vmem:[#allocation3 + $0x3] sm:$0x1] %v831_v46  ;;  %v838_v50 = vld [vmem:[#allocation2 + $0xb] sm:$0x1]  ;;  %v841_v51 = vld [vmem:[#allocation2 + $0xc] sm:$0x1] }
 0x16a   :  { %v842_v52 = vld [vmem:[#allocation2 + $0xd] sm:$0x1]  ;;  %v839_v53 = vmax.f32 %v837_v48, %v838_v50  ;;  %v845_v55 = vld [vmem:[#allocation2 + $0xe] sm:$0x1]  ;;  %v846_v56 = vld [vmem:[#allocation2 + $0xf] sm:$0x1] }
 0x16b   :  { %v843_v54 = vmax.f32 %v841_v51, %v842_v52  ;;  %836 = vst [vmem:[#allocation3 + $0x4] sm:$0x1] %v835_v49  ;;  %v847_v57 = vmax.f32 %v845_v55, %v846_v56  ;;  %v849_v58 = vld [vmem:[#allocation2 + $0x10] sm:$0x1]  ;;  %v850_v59 = vld [vmem:[#allocation2 + $0x11] sm:$0x1] }
 0x16c   :  { %840 = vst [vmem:[#allocation3 + $0x5] sm:$0x1] %v839_v53  ;;  %v853_v60 = vld [vmem:[#allocation2 + $0x12] sm:$0x1]  ;;  %v851_v61 = vmax.f32 %v849_v58, %v850_v59  ;;  %v854_v62 = vld [vmem:[#allocation2 + $0x13] sm:$0x1] }
 0x16d   :  { %844 = vst [vmem:[#allocation3 + $0x6] sm:$0x1] %v843_v54  ;;  %848 = vst [vmem:[#allocation3 + $0x7] sm:$0x1] %v847_v57  ;;  %v857_v0 = vld [vmem:[#allocation2 + $0x14] sm:$0x1]  ;;  %v855_v1 = vmax.f32 %v853_v60, %v854_v62 }
 0x16e   :  { %v858_v63 = vld [vmem:[#allocation2 + $0x15] sm:$0x1]  ;;  %v861_v5 = vld [vmem:[#allocation2 + $0x16] sm:$0x1]  ;;  %v862_v7 = vld [vmem:[#allocation2 + $0x17] sm:$0x1] }
 0x16f   :  { %v859_v2 = vmax.f32 %v857_v0, %v858_v63  ;;  %852 = vst [vmem:[#allocation3 + $0x8] sm:$0x1] %v851_v61  ;;  %v863_v8 = vmax.f32 %v861_v5, %v862_v7  ;;  %856 = vst [vmem:[#allocation3 + $0x9] sm:$0x1] %v855_v1  ;;  %v865_v4 = vld [vmem:[#allocation2 + $0x18] sm:$0x1] }
 0x170   :  { %v866_v9 = vld [vmem:[#allocation2 + $0x19] sm:$0x1]  ;;  %v869_v10 = vld [vmem:[#allocation2 + $0x1a] sm:$0x1]  ;;  %v870_v12 = vld [vmem:[#allocation2 + $0x1b] sm:$0x1] }
 0x171   :  { %860 = vst [vmem:[#allocation3 + $0xa] sm:$0x1] %v859_v2  ;;  %864 = vst [vmem:[#allocation3 + $0xb] sm:$0x1] %v863_v8  ;;  %v867_v11 = vmax.f32 %v865_v4, %v866_v9  ;;  %v871_v14 = vmax.f32 %v869_v10, %v870_v12  ;;  %v4514_v30 = vld [vmem:[%s9062_s2 + $0x2d0] sm:$0xff]  ;;  %v4541_v31 = vld [vmem:[%s9062_s2 + $0x3a8] sm:$0xff] }
 0x172   :  { %v4513_v34 = vld [vmem:[%s9062_s2 + $0x2c8] sm:$0xff]  ;;  %v4540_v35 = vld [vmem:[%s9062_s2 + $0x3a0] sm:$0xff]  ;;  %v4539_v38 = vld [vmem:[%s9062_s2 + $0x398] sm:$0xff] }
 0x173   :  { %868 = vst [vmem:[#allocation3 + $0xc] sm:$0x1] %v867_v11  ;;  %872 = vst [vmem:[#allocation3 + $0xd] sm:$0x1] %v871_v14  ;;  %v4512_v36 = vld [vmem:[%s9062_s2 + $0x2c0] sm:$0xff]  ;;  %v4511_v39 = vld [vmem:[%s9062_s2 + $0x2b8] sm:$0xff] }
 0x174   :  { %v873_v6 = vld [vmem:[#allocation3] sm:$0xff]  ;;  %v4538_v40 = vld [vmem:[%s9062_s2 + $0x390] sm:$0xff]  ;;  %v4537_v42 = vld [vmem:[%s9062_s2 + $0x388] sm:$0xff] }
 0x175   :  { %1084 = vmatmul.mubr.f32.vlgmr.msra.gmra.mxu0 %v873_v6  ;;  %v4510_v41 = vld [vmem:[%s9062_s2 + $0x2b0] sm:$0xff]  ;;  %v4509_v37 = vld [vmem:[%s9062_s2 + $0x2a8] sm:$0xff]  ;;  %v4536_v44 = vld [vmem:[%s9062_s2 + $0x380] sm:$0xff] }
 0x176   :  { %1248 = vmatpush1.msra.mxu0 %v4550_v15  ;;  %1089 = vmatprep.mubr.f32.mxu0 %v5845_v3  ;;  %v907_v19 = vld [vmem:[#allocation3 + $0x1] sm:$0xff]  ;;  %v4535_v46 = vld [vmem:[%s9062_s2 + $0x378] sm:$0xff]  ;;  %v4534_v47 = vld [vmem:[%s9062_s2 + $0x370] sm:$0xff] }
 0x177   :  { %1249 = vmatprep.subr.mxu0 %v4549_v13  ;;  %1007 = vmatmul.mubr.f32.vlgmr.msra.gmra.mxu1 %v907_v19  ;;  %v874_v20 = vld [vmem:[#allocation3 + $0x8] sm:$0x3]  ;;  %v4508_v45 = vld [vmem:[%s9062_s2 + $0x2a0] sm:$0xff]  ;;  %v4507_v43 = vld [vmem:[%s9062_s2 + $0x298] sm:$0xff] }
 0x178   :  { %1250 = vmatpush1.msra.mxu0 %v4548_v16  ;;  %1132 = vmatpush1.msra.mxu1 %v4518_v17  ;;  %v908_v33 = vld [vmem:[#allocation3 + $0x9] sm:$0x3]  ;;  %v4506_v48 = vld [vmem:[%s9062_s2 + $0x290] sm:$0xff]  ;;  %v4532_v51 = vld [vmem:[%s9062_s2 + $0x360] sm:$0xff] }
 0x179   :  { %1251 = vmatprep.subr.mxu0 %v4547_v18  ;;  %1090 = vmatmul.mubr.f32.gmra.mxu0 %v874_v20  ;;  %v4533_v49 = vld [vmem:[%s9062_s2 + $0x368] sm:$0xff]  ;;  %v4504_v52 = vld [vmem:[%s9062_s2 + $0x280] sm:$0xff]  ;;  %v4531_v53 = vld [vmem:[%s9062_s2 + $0x358] sm:$0xff] }
 0x17a   :  { %1252 = vmatpush1.msra.mxu0 %v4546_v21  ;;  %1133 = vmatprep.subr.mxu1 %v4517_v22  ;;  %v4505_v50 = vld [vmem:[%s9062_s2 + $0x288] sm:$0xff]  ;;  %v4503_v54 = vld [vmem:[%s9062_s2 + $0x278] sm:$0xff]  ;;  %v4530_v55 = vld [vmem:[%s9062_s2 + $0x350] sm:$0xff] }
 0x17b   :  { %1253 = vmatprep.subr.mxu0 %v4545_v23  ;;  %1134 = vmatpush1.msra.mxu1 %v4516_v24  ;;  %v4502_v56 = vld [vmem:[%s9062_s2 + $0x270] sm:$0xff]  ;;  %v4529_v57 = vld [vmem:[%s9062_s2 + $0x348] sm:$0xff]  ;;  %v4528_v59 = vld [vmem:[%s9062_s2 + $0x340] sm:$0xff] }
 0x17c   :  { %1254 = vmatpush1.msra.mxu0 %v4544_v25  ;;  %1012 = vmatprep.mubr.f32.mxu1 %v5845_v3  ;;  %v4501_v58 = vld [vmem:[%s9062_s2 + $0x268] sm:$0xff]  ;;  %v4500_v60 = vld [vmem:[%s9062_s2 + $0x260] sm:$0xff]  ;;  %v4527_v61 = vld [vmem:[%s9062_s2 + $0x338] sm:$0xff] }
 0x17d   :  { %1135 = vmatprep.subr.mxu1 %v4515_v26  ;;  %1255 = vmatprep.subr.mxu0 %v4543_v28  ;;  %v4499_v62 = vld [vmem:[%s9062_s2 + $0x258] sm:$0xff]  ;;  %v4526_v0 = vld [vmem:[%s9062_s2 + $0x330] sm:$0xff]  ;;  %v4525_v1 = vld [vmem:[%s9062_s2 + $0x328] sm:$0xff] }
 0x17e   :  { %1013 = vmatmul.mubr.f32.gmra.mxu1 %v908_v33  ;;  %1256 = vmatpush1.msra.mxu0 %v4542_v29  ;;  %v4498_v63 = vld [vmem:[%s9062_s2 + $0x250] sm:$0xff]  ;;  %v4497_v2 = vld [vmem:[%s9062_s2 + $0x248] sm:$0xff]  ;;  %v4524_v5 = vld [vmem:[%s9062_s2 + $0x320] sm:$0xff] }
 0x17f   :  { %1136 = vmatpush1.msra.mxu1 %v4514_v30  ;;  %1257 = vmatprep.subr.mxu0 %v4541_v31  ;;  %v4496_v7 = vld [vmem:[%s9062_s2 + $0x240] sm:$0xff]  ;;  %v4523_v8 = vld [vmem:[%s9062_s2 + $0x318] sm:$0xff]  ;;  %v4522_v9 = vld [vmem:[%s9062_s2 + $0x310] sm:$0xff] }
 0x180   :  { %1137 = vmatprep.subr.mxu1 %v4513_v34  ;;  %1258 = vmatpush1.msra.mxu0 %v4540_v35  ;;  %v4495_v4 = vld [vmem:[%s9062_s2 + $0x238] sm:$0xff]  ;;  %v4494_v10 = vld [vmem:[%s9062_s2 + $0x230] sm:$0xff]  ;;  %v4521_v11 = vld [vmem:[%s9062_s2 + $0x308] sm:$0xff] }
 0x181   :  { %1138 = vmatpush1.msra.mxu1 %v4512_v36  ;;  %1259 = vmatprep.subr.mxu0 %v4539_v38  ;;  %v4493_v12 = vld [vmem:[%s9062_s2 + $0x228] sm:$0xff]  ;;  %v4520_v14 = vld [vmem:[%s9062_s2 + $0x300] sm:$0xff]  ;;  %v4491_v6 = vld [vmem:[%s9062_s2 + $0x218] sm:$0xff] }
 0x182   :  { %1139 = vmatprep.subr.mxu1 %v4511_v39  ;;  %1260 = vmatpush1.msra.mxu0 %v4538_v40  ;;  %v4492_v15 = vld [vmem:[%s9062_s2 + $0x220] sm:$0xff]  ;;  %v4490_v13 = vld [vmem:[%s9062_s2 + $0x210] sm:$0xff]  ;;  %v4489_v17 = vld [vmem:[%s9062_s2 + $0x208] sm:$0xff] }
 0x183   :  { %1140 = vmatpush1.msra.mxu1 %v4510_v41  ;;  %1261 = vmatprep.subr.mxu0 %v4537_v42  ;;  %v1212_v16 = vld [vmem:[#allocation3 + $0x3] sm:$0xff]  ;;  %v4583_v19 = vld [vmem:[%s9062_s2 + $0x4f8] sm:$0xff]  ;;  %v1213_v21 = vld [vmem:[#allocation3 + $0xb] sm:$0x3] }
 0x184   :  { %1141 = vmatprep.subr.mxu1 %v4509_v37  ;;  %1262 = vmatpush1.msra.mxu0 %v4536_v44  ;;  %v4488_v18 = vld [vmem:[%s9062_s2 + $0x200] sm:$0xff]  ;;  %v4582_v22 = vld [vmem:[%s9062_s2 + $0x4f0] sm:$0xff]  ;;  %v4581_v23 = vld [vmem:[%s9062_s2 + $0x4e8] sm:$0xff] }
 0x185   :  { %1142 = vmatpush1.msra.mxu1 %v4508_v45  ;;  %1263 = vmatprep.subr.mxu0 %v4535_v46  ;;  %v1096_v20 = vld [vmem:[#allocation3 + $0x2] sm:$0xff]  ;;  %v4579_v25 = vld [vmem:[%s9062_s2 + $0x4d8] sm:$0xff]  ;;  %v4578_v26 = vld [vmem:[%s9062_s2 + $0x4d0] sm:$0xff] }
 0x186   :  { %1143 = vmatprep.subr.mxu1 %v4507_v43  ;;  %1264 = vmatpush1.msra.mxu0 %v4534_v47  ;;  %v4580_v24 = vld [vmem:[%s9062_s2 + $0x4e0] sm:$0xff]  ;;  %v1097_v28 = vld [vmem:[#allocation3 + $0xa] sm:$0x3]  ;;  %v4575_v31 = vld [vmem:[%s9062_s2 + $0x4b8] sm:$0xff] }
 0x187   :  { %1144 = vmatpush1.msra.mxu1 %v4506_v48  ;;  %1265 = vmatprep.subr.mxu0 %v4533_v49  ;;  %v4577_v29 = vld [vmem:[%s9062_s2 + $0x4c8] sm:$0xff]  ;;  %v4576_v30 = vld [vmem:[%s9062_s2 + $0x4c0] sm:$0xff]  ;;  %v4574_v33 = vld [vmem:[%s9062_s2 + $0x4b0] sm:$0xff] }
 0x188   :  { %1145 = vmatprep.subr.mxu1 %v4505_v50  ;;  %1266 = vmatpush1.msra.mxu0 %v4532_v51  ;;  %v4573_v34 = vld [vmem:[%s9062_s2 + $0x4a8] sm:$0xff]  ;;  %v4572_v35 = vld [vmem:[%s9062_s2 + $0x4a0] sm:$0xff]  ;;  %v4571_v36 = vld [vmem:[%s9062_s2 + $0x498] sm:$0xff] }
 0x189   :  { %1146 = vmatpush1.msra.mxu1 %v4504_v52  ;;  %1267 = vmatprep.subr.mxu0 %v4531_v53  ;;  %v4570_v38 = vld [vmem:[%s9062_s2 + $0x490] sm:$0xff]  ;;  %v4569_v39 = vld [vmem:[%s9062_s2 + $0x488] sm:$0xff]  ;;  %v4568_v40 = vld [vmem:[%s9062_s2 + $0x480] sm:$0xff] }
 0x18a   :  { %1147 = vmatprep.subr.mxu1 %v4503_v54  ;;  %1268 = vmatpush1.msra.mxu0 %v4530_v55  ;;  %v4567_v41 = vld [vmem:[%s9062_s2 + $0x478] sm:$0xff]  ;;  %v4566_v42 = vld [vmem:[%s9062_s2 + $0x470] sm:$0xff]  ;;  %v4565_v37 = vld [vmem:[%s9062_s2 + $0x468] sm:$0xff] }
 0x18b   :  { %1148 = vmatpush1.msra.mxu1 %v4502_v56  ;;  %1269 = vmatprep.subr.mxu0 %v4529_v57  ;;  %v4564_v44 = vld [vmem:[%s9062_s2 + $0x460] sm:$0xff]  ;;  %v4563_v45 = vld [vmem:[%s9062_s2 + $0x458] sm:$0xff]  ;;  %v4562_v46 = vld [vmem:[%s9062_s2 + $0x450] sm:$0xff] }
 0x18c   :  { %1149 = vmatprep.subr.mxu1 %v4501_v58  ;;  %1270 = vmatpush1.msra.mxu0 %v4528_v59  ;;  %v4561_v43 = vld [vmem:[%s9062_s2 + $0x448] sm:$0xff]  ;;  %v4560_v47 = vld [vmem:[%s9062_s2 + $0x440] sm:$0xff]  ;;  %v4559_v48 = vld [vmem:[%s9062_s2 + $0x438] sm:$0xff] }
 0x18d   :  { %1150 = vmatpush1.msra.mxu1 %v4500_v60  ;;  %1271 = vmatprep.subr.mxu0 %v4527_v61  ;;  %v4558_v49 = vld [vmem:[%s9062_s2 + $0x430] sm:$0xff]  ;;  %v4557_v50 = vld [vmem:[%s9062_s2 + $0x428] sm:$0xff]  ;;  %v4556_v51 = vld [vmem:[%s9062_s2 + $0x420] sm:$0xff] }
 0x18e   :  { %1151 = vmatprep.subr.mxu1 %v4499_v62  ;;  %1272 = vmatpush1.msra.mxu0 %v4526_v0  ;;  %v4555_v52 = vld [vmem:[%s9062_s2 + $0x418] sm:$0xff]  ;;  %v4554_v53 = vld [vmem:[%s9062_s2 + $0x410] sm:$0xff]  ;;  %v4553_v54 = vld [vmem:[%s9062_s2 + $0x408] sm:$0xff] }
 0x18f   :  { %1152 = vmatpush1.msra.mxu1 %v4498_v63  ;;  %1273 = vmatprep.subr.mxu0 %v4525_v1  ;;  %v4552_v55 = vld [vmem:[%s9062_s2 + $0x400] sm:$0xff]  ;;  %v1329_v57 = vld [vmem:[#allocation3 + $0xc] sm:$0x3]  ;;  %v4601_v58 = vld [vmem:[%s9064_s3 + $0xf8] sm:$0xff] }
 0x190   :  { %1153 = vmatprep.subr.mxu1 %v4497_v2  ;;  %1274 = vmatpush1.msra.mxu0 %v4524_v5  ;;  %v1328_v56 = vld [vmem:[#allocation3 + $0x4] sm:$0xff]  ;;  %v1544_v59 = vld [vmem:[%s9064_s3 + $0x78] sm:$0xff]  ;;  %v4600_v60 = vld [vmem:[%s9064_s3 + $0xf0] sm:$0xff] }
 0x191   :  { %1154 = vmatpush1.msra.mxu1 %v4496_v7  ;;  %1275 = vmatprep.subr.mxu0 %v4523_v8  ;;  %v1543_v61 = vld [vmem:[%s9064_s3 + $0x70] sm:$0xff]  ;;  %v4599_v62 = vld [vmem:[%s9064_s3 + $0xe8] sm:$0xff]  ;;  %v4598_v63 = vld [vmem:[%s9064_s3 + $0xe0] sm:$0xff] }
 0x192   :  { %1155 = vmatprep.subr.mxu1 %v4495_v4  ;;  %1276 = vmatpush1.msra.mxu0 %v4522_v9  ;;  %v1542_v0 = vld [vmem:[%s9064_s3 + $0x68] sm:$0xff]  ;;  %v1541_v1 = vld [vmem:[%s9064_s3 + $0x60] sm:$0xff]  ;;  %v4597_v2 = vld [vmem:[%s9064_s3 + $0xd8] sm:$0xff] }
 0x193   :  { %1156 = vmatpush1.msra.mxu1 %v4494_v10  ;;  %1277 = vmatprep.subr.mxu0 %v4521_v11  ;;  %v1540_v5 = vld [vmem:[%s9064_s3 + $0x58] sm:$0xff]  ;;  %v4596_v7 = vld [vmem:[%s9064_s3 + $0xd0] sm:$0xff]  ;;  %v4595_v4 = vld [vmem:[%s9064_s3 + $0xc8] sm:$0xff] }
 0x194   :  { %1157 = vmatprep.subr.mxu1 %v4493_v12  ;;  %1278 = vmatpush1.msra.mxu0 %v4520_v14  ;;  %v1539_v8 = vld [vmem:[%s9064_s3 + $0x50] sm:$0xff]  ;;  %v1538_v9 = vld [vmem:[%s9064_s3 + $0x48] sm:$0xff]  ;;  %v4594_v10 = vld [vmem:[%s9064_s3 + $0xc0] sm:$0xff] }
 0x195   :  { %1158 = vmatpush1.msra.mxu1 %v4492_v15  ;;  %1311 = vmatprep.mubr.f32.mxu0 %v5845_v3  ;;  %v1537_v11 = vld [vmem:[%s9064_s3 + $0x40] sm:$0xff]  ;;  %v4593_v12 = vld [vmem:[%s9064_s3 + $0xb8] sm:$0xff]  ;;  %v4592_v15 = vld [vmem:[%s9064_s3 + $0xb0] sm:$0xff] }
 0x196   :  { %1159 = vmatprep.subr.mxu1 %v4491_v6  ;;  %1312 = vmatmul.mubr.f32.vlgmr.msra.gmra.mxu0 %v1212_v16  ;;  %v1536_v14 = vld [vmem:[%s9064_s3 + $0x38] sm:$0xff]  ;;  %v1535_v6 = vld [vmem:[%s9064_s3 + $0x30] sm:$0xff]  ;;  %v1534_v16 = vld [vmem:[%s9064_s3 + $0x28] sm:$0xff] }
 0x197   :  { %1160 = vmatpush1.msra.mxu1 %v4490_v13  ;;  %1195 = vmatprep.mubr.f32.mxu1 %v5845_v3  ;;  %v4591_v13 = vld [vmem:[%s9064_s3 + $0xa8] sm:$0xff] }
 0x198   :  { %1161 = vmatprep.subr.mxu1 %v4489_v17  ;;  %1317 = vmatprep.mubr.f32.mxu0 %v5845_v3  ;;  %v4590_v17 = vld [vmem:[%s9064_s3 + $0xa0] sm:$0xff] }
 0x199   :  { %1162 = vmatpush1.msra.mxu1 %v4488_v18  ;;  %5233 = vmatprep.subr.mxu0 %v5845_v3  ;;  %v1533_v18 = vld [vmem:[%s9064_s3 + $0x20] sm:$0xff] }
 0x19a   :  { %1196 = vmatmul.mubr.f32.vlgmr.msra.gmra.mxu1 %v1096_v20  ;;  %1318 = vmatmul.mubr.f32.gmra.mxu0 %v1213_v21  ;;  %v1532_v20 = vld [vmem:[%s9064_s3 + $0x18] sm:$0xff]  ;;  %v4588_v21 = vld [vmem:[%s9064_s3 + $0x90] sm:$0xff] }
 0x19b   :  { %1363 = vmatprep.subr.mxu1 %v4583_v19  ;;  %1201 = vmatprep.mubr.f32.mxu1 %v5845_v3  ;;  %v4589_v19 = vld [vmem:[%s9064_s3 + $0x98] sm:$0xff] }
 0x19c   :  { %1364 = vmatpush1.msra.mxu1 %v4582_v22  ;;  %5234 = vmatpush3.msra.mxu0 %v4601_v58  ;;  %v1531_v22 = vld [vmem:[%s9064_s3 + $0x10] sm:$0xff] }
 0x19d   :  { %1365 = vmatprep.subr.mxu1 %v4581_v23  ;;  %5235 = vmatprep.subr.mxu0 %v5845_v3  ;;  %v4587_v23 = vld [vmem:[%s9064_s3 + $0x88] sm:$0xff] }
 0x19e   :  { %1366 = vmatpush1.msra.mxu1 %v4580_v24  ;;  %5236 = vmatpush3.msra.mxu0 %v4600_v60  ;;  %v1530_v24 = vld [vmem:[%s9064_s3 + $0x8] sm:$0xff] }
 0x19f   :  { %1202 = vmatmul.mubr.f32.gmra.mxu1 %v1097_v28  ;;  %1367 = vmatprep.subr.mxu1 %v4579_v25  ;;  %v4586_v25 = vld [vmem:[%s9064_s3 + $0x80] sm:$0xff] }
 0x1a0   :  { %1368 = vmatpush1.msra.mxu1 %v4578_v26  ;;  %1427 = vmatprep.mubr.f32.mxu1 %v5845_v3  ;;  %v1529_v26 = vld [vmem:[%s9064_s3] sm:$0xff] }
 0x1a1   :  { %1369 = vmatprep.subr.mxu1 %v4577_v29  ;;  %5237 = vmatprep.subr.mxu0 %v5845_v3 }
 0x1a2   :  { %1370 = vmatpush1.msra.mxu1 %v4576_v30  ;;  %5238 = vmatpush3.msra.mxu0 %v4599_v62 }
 0x1a3   :  { %1371 = vmatprep.subr.mxu1 %v4575_v31  ;;  %5239 = vmatprep.subr.mxu0 %v5845_v3 }
 0x1a4   :  { %1372 = vmatpush1.msra.mxu1 %v4574_v33  ;;  %5240 = vmatpush3.msra.mxu0 %v4598_v63 }
 0x1a5   :  { %1373 = vmatprep.subr.mxu1 %v4573_v34  ;;  %5241 = vmatprep.subr.mxu0 %v5845_v3 }
 0x1a6   :  { %1374 = vmatpush1.msra.mxu1 %v4572_v35  ;;  %5242 = vmatpush3.msra.mxu0 %v4597_v2 }
 0x1a7   :  { %1375 = vmatprep.subr.mxu1 %v4571_v36  ;;  %5243 = vmatprep.subr.mxu0 %v5845_v3 }
 0x1a8   :  { %1376 = vmatpush1.msra.mxu1 %v4570_v38  ;;  %5244 = vmatpush3.msra.mxu0 %v4596_v7 }
 0x1a9   :  { %1377 = vmatprep.subr.mxu1 %v4569_v39  ;;  %5245 = vmatprep.subr.mxu0 %v5845_v3 }
 0x1aa   :  { %1378 = vmatpush1.msra.mxu1 %v4568_v40  ;;  %5246 = vmatpush3.msra.mxu0 %v4595_v4 }
 0x1ab   :  { %1379 = vmatprep.subr.mxu1 %v4567_v41  ;;  %5247 = vmatprep.subr.mxu0 %v5845_v3 }
 0x1ac   :  { %1380 = vmatpush1.msra.mxu1 %v4566_v42  ;;  %5248 = vmatpush3.msra.mxu0 %v4594_v10 }
 0x1ad   :  { %1381 = vmatprep.subr.mxu1 %v4565_v37  ;;  %5249 = vmatprep.subr.mxu0 %v5845_v3 }
 0x1ae   :  { %1382 = vmatpush1.msra.mxu1 %v4564_v44  ;;  %5250 = vmatpush3.msra.mxu0 %v4593_v12 }
 0x1af   :  { %1383 = vmatprep.subr.mxu1 %v4563_v45  ;;  %5251 = vmatprep.subr.mxu0 %v5845_v3 }
 0x1b0   :  { %1384 = vmatpush1.msra.mxu1 %v4562_v46  ;;  %5252 = vmatpush3.msra.mxu0 %v4592_v15  ;;  %v1444_v46 = vld [vmem:[%s9065_s7] ss:$4 sm:$0x3] }
 0x1b1   :  { %1385 = vmatprep.subr.mxu1 %v4561_v43  ;;  %5253 = vmatprep.subr.mxu0 %v5845_v3  ;;  %v1457_v58 = vrot.slane %v1444_v46, %v6672_v32 }
 0x1b2   :  { %1386 = vmatpush1.msra.mxu1 %v4560_v47  ;;  %5254 = vmatpush3.msra.mxu0 %v4591_v13 }
 0x1b3   :  { %1387 = vmatprep.subr.mxu1 %v4559_v48  ;;  %5255 = vmatprep.subr.mxu0 %v5845_v3 }
 0x1b4   :  { %1388 = vmatpush1.msra.mxu1 %v4558_v49  ;;  %5256 = vmatpush3.msra.mxu0 %v4590_v17 }
 0x1b5   :  { %1389 = vmatprep.subr.mxu1 %v4557_v50  ;;  %5257 = vmatprep.subr.mxu0 %v5845_v3 }
 0x1b6   :  { %1390 = vmatpush1.msra.mxu1 %v4556_v51  ;;  %5258 = vmatpush3.msra.mxu0 %v4589_v19 }
 0x1b7   :  { %1391 = vmatprep.subr.mxu1 %v4555_v52  ;;  %5259 = vmatprep.subr.mxu0 %v5845_v3  ;;  %v1453_v52 = vrot.slane %v1444_v46, %v6667_v27 }
 0x1b8   :  { %1392 = vmatpush1.msra.mxu1 %v4554_v53  ;;  %5260 = vmatpush3.msra.mxu0 %v4588_v21 }
 0x1b9   :  { %1393 = vmatprep.subr.mxu1 %v4553_v54  ;;  %5261 = vmatprep.subr.mxu0 %v5845_v3 }
 0x1ba   :  { %1394 = vmatpush1.msra.mxu1 %v4552_v55  ;;  %5262 = vmatpush3.msra.mxu0 %v4587_v23 }
 0x1bb   :  { %1428 = vmatmul.mubr.f32.vlgmr.msra.gmra.mxu1 %v1328_v56  ;;  %5268 = vmatprep.subr.mxu1 %v5845_v3 }
 0x1bc   :  { %1433 = vmatprep.mubr.f32.mxu1 %v5845_v3  ;;  %5269 = vmatpush3.msra.mxu1 %v1544_v59 }
 0x1bd   :  { %5270 = vmatprep.subr.mxu1 %v5845_v3  ;;  %5263 = vmatprep.subr.mxu0 %v5845_v3 }
 0x1be   :  { %5271 = vmatpush3.msra.mxu1 %v1543_v61  ;;  %5264 = vmatpush3.msra.mxu0 %v4586_v25  ;;  %v4584_v25 = vld [vmem:[%s9065_s7 + $0x1] ss:$4 sm:$0x3] }
 0x1bf   :  { %1434 = vmatmul.mubr.f32.gmra.mxu1 %v1329_v57  ;;  %5272 = vmatprep.subr.mxu1 %v5845_v3 }
 0x1c0   :  { %5273 = vmatpush3.msra.mxu1 %v1542_v0  ;;  %5265 = vmatprep.mubr.msk.f32.mxu0 %vm5846_vm0, %v5845_v3 }
 0x1c1   :  { %5274 = vmatprep.subr.mxu1 %v5845_v3  ;;  %5300 = vmatprep.mubr.msk.f32.mxu1 %vm5846_vm0, %v5845_v3 }
 0x1c2   :  { %5275 = vmatpush3.msra.mxu1 %v1541_v1  ;;  %5303 = vmatprep.subr.mxu0 %v5845_v3 }
 0x1c3   :  { %5276 = vmatprep.subr.mxu1 %v5845_v3 }
 0x1c4   :  { %5277 = vmatpush3.msra.mxu1 %v1540_v5 }
 0x1c5   :  { %5278 = vmatprep.subr.mxu1 %v5845_v3 }
 0x1c6   :  { %5279 = vmatpush3.msra.mxu1 %v1539_v8 }
 0x1c7   :  { %5280 = vmatprep.subr.mxu1 %v5845_v3 }
 0x1c8   :  { %5281 = vmatpush3.msra.mxu1 %v1538_v9 }
 0x1c9   :  { %5282 = vmatprep.subr.mxu1 %v5845_v3 }
 0x1ca   :  { %5283 = vmatpush3.msra.mxu1 %v1537_v11 }
 0x1cb   :  { %5284 = vmatprep.subr.mxu1 %v5845_v3 }
 0x1cc   :  { %5285 = vmatpush3.msra.mxu1 %v1536_v14 }
 0x1cd   :  { %5286 = vmatprep.subr.mxu1 %v5845_v3 }
 0x1ce   :  { %5287 = vmatpush3.msra.mxu1 %v1535_v6 }
 0x1cf   :  { %5288 = vmatprep.subr.mxu1 %v5845_v3 }
 0x1d0   :  { %5289 = vmatpush3.msra.mxu1 %v1534_v16 }
 0x1d1   :  { %5290 = vmatprep.subr.mxu1 %v5845_v3 }
 0x1d2   :  { %5291 = vmatpush3.msra.mxu1 %v1533_v18 }
 0x1d3   :  { %5292 = vmatprep.subr.mxu1 %v5845_v3 }
 0x1d4   :  { %5293 = vmatpush3.msra.mxu1 %v1532_v20 }
 0x1d5   :  { %5294 = vmatprep.subr.mxu1 %v5845_v3 }
 0x1d6   :  { %5295 = vmatpush3.msra.mxu1 %v1531_v22 }
 0x1d7   :  { %5296 = vmatprep.subr.mxu1 %v5845_v3 }
 0x1d8   :  { %5297 = vmatpush3.msra.mxu1 %v1530_v24 }
 0x1d9   :  { %5298 = vmatprep.subr.mxu1 %v5845_v3 }
 0x1da   :  { %5299 = vmatpush3.msra.mxu1 %v1529_v26  ;;  %v4585_v26 = vld [vmem:[%s9065_s7 + $0x2] ss:$4 sm:$0x3] }
 0x1db   :  { %5338 = vmatprep.subr.mxu1 %v5845_v3 }
 0x235   :  { %v1085_v30 = vpop.f32.mrf.mxu0 }
 0x237   :  { %v1008_v28 = vpop.f32.mrf.mxu1  ;;  %v1087_v33 = vpop.f32.mrf.mxu0 }
 0x238   :  { %v1086_v41 = vadd.f32 %v1085_v30, %v1008_v28  ;;  %v1492_v28 = vrot.slane %v4584_v25, %v6667_v27  ;;  %v1496_v30 = vrot.slane %v4584_v25, %v6672_v32 }
 0x239   :  { %v1010_v29 = vpop.f32.mrf.mxu1  ;;  %v1091_v35 = vpop.f32.mrf.mxu0 }
 0x23a   :  { %v1088_v37 = vadd.f32 %v1087_v33, %v1010_v29  ;;  %v1507_v29 = vrot.slane %v4585_v26, %v6667_v27 }
 0x23b   :  { %v1093_v38 = vpop.f32.mrf.mxu0 }
 0x23e   :  { %v1014_v31 = vpop.f32.mrf.mxu1 }
 0x23f   :  { %v1092_v43 = vadd.f32 %v1091_v35, %v1014_v31 }
 0x240   :  { %v1016_v34 = vpop.f32.mrf.mxu1 }
 0x241   :  { %v1094_v49 = vadd.f32 %v1093_v38, %v1016_v34  ;;  %v1511_v34 = vrot.slane %v4585_v26, %v6672_v32 }
 0x256   :  { %v1313_v40 = vpop.f32.mrf.mxu0 }
 0x258   :  { %v1315_v45 = vpop.f32.mrf.mxu0 }
 0x25a   :  { %v1197_v36 = vpop.f32.mrf.mxu1  ;;  %v1319_v53 = vpop.f32.mrf.mxu0 }
 0x25b   :  { %v1208_v44 = vadd.f32 %v1197_v36, %v1086_v41 }
 0x25c   :  { %v1199_v39 = vpop.f32.mrf.mxu1  ;;  %v1321_v0 = vpop.f32.mrf.mxu0 }
 0x25d   :  { %v1209_v47 = vadd.f32 %v1199_v39, %v1088_v37  ;;  %v1324_v51 = vadd.f32 %v1313_v40, %v1208_v44 }
 0x25f   :  { %v1203_v42 = vpop.f32.mrf.mxu1  ;;  %v1325_v57 = vadd.f32 %v1315_v45, %v1209_v47 }
 0x260   :  { %v1210_v50 = vadd.f32 %v1203_v42, %v1092_v43 }
 0x261   :  { %v1205_v48 = vpop.f32.mrf.mxu1 }
 0x262   :  { %v1211_v55 = vadd.f32 %v1205_v48, %v1094_v49  ;;  %v1326_v62 = vadd.f32 %v1319_v53, %v1210_v50 }
 0x264   :  { %v1327_v7 = vadd.f32 %v1321_v0, %v1211_v55  ;;  %v4614_v0 = vld [vmem:[%s9064_s3 + $0x160] sm:$0xff] }
 0x27b   :  { %v1429_v54 = vpop.f32.mrf.mxu1 }
 0x27c   :  { %v1440_v56 = vadd.f32 %v1429_v54, %v1324_v51 }
 0x27d   :  { %v1431_v59 = vpop.f32.mrf.mxu1 }
 0x27e   :  { %v1460_v60 = vadd.f32 %v1453_v52, %v1440_v56  ;;  %v1441_v61 = vadd.f32 %v1431_v59, %v1325_v57  ;;  %v4617_v56 = vld [vmem:[%s9064_s3 + $0x178] sm:$0xff]  ;;  %v4616_v59 = vld [vmem:[%s9064_s3 + $0x170] sm:$0xff] }
 0x27f   :  { %v1435_v63 = vpop.f32.mrf.mxu1 }
 0x280   :  { %v1464_v1 = vsub.f32 0.0, %v1460_v60  ;;  %v1461_v2 = vadd.f32 %v1457_v58, %v1441_v61  ;;  %v1442_v5 = vadd.f32 %v1435_v63, %v1326_v62  ;;  %v4632_v60 = vld [vmem:[%s9064_s3 + $0x1f0] sm:$0xff]  ;;  %v4615_v61 = vld [vmem:[%s9064_s3 + $0x168] sm:$0xff]  ;;  %v4630_v63 = vld [vmem:[%s9064_s3 + $0x1e0] sm:$0xff] }
 0x281   :  { %v1437_v8 = vpop.f32.mrf.mxu1  ;;  %v4631_v62 = vld [vmem:[%s9064_s3 + $0x1e8] sm:$0xff] }
 0x282   :  { %v1468_v4 = vmul.f32 1.442695, %v1464_v1  ;;  %v1465_v9 = vsub.f32 0.0, %v1461_v2  ;;  %v1462_v10 = vadd.f32 %v1453_v52, %v1442_v5  ;;  %v1443_v11 = vadd.f32 %v1437_v8, %v1327_v7  ;;  %v4613_v1 = vld [vmem:[%s9064_s3 + $0x158] sm:$0xff]  ;;  %v4612_v5 = vld [vmem:[%s9064_s3 + $0x150] sm:$0xff]  ;;  %v4611_v8 = vld [vmem:[%s9064_s3 + $0x148] sm:$0xff] }
 0x283   :  { %v4629_v2 = vld [vmem:[%s9064_s3 + $0x1d8] sm:$0xff]  ;;  %v4628_v7 = vld [vmem:[%s9064_s3 + $0x1d0] sm:$0xff] }
 0x284   :  { %5757 = vpow2.f32 %v1468_v4  ;;  %v1470_v12 = vmul.f32 1.442695, %v1465_v9  ;;  %v1466_v14 = vsub.f32 0.0, %v1462_v10  ;;  %v1463_v15 = vadd.f32 %v1457_v58, %v1443_v11  ;;  %v4633_v58 = vld [vmem:[%s9064_s3 + $0x1f8] sm:$0xff]  ;;  %v4627_v4 = vld [vmem:[%s9064_s3 + $0x1c8] sm:$0xff]  ;;  %v4610_v9 = vld [vmem:[%s9064_s3 + $0x140] sm:$0xff] }
 0x285   :  { %v4626_v10 = vld [vmem:[%s9064_s3 + $0x1c0] sm:$0xff]  ;;  %v4609_v11 = vld [vmem:[%s9064_s3 + $0x138] sm:$0xff] }
 0x286   :  { %5759 = vpow2.f32 %v1470_v12  ;;  %v1472_v6 = vmul.f32 1.442695, %v1466_v14  ;;  %v1467_v13 = vsub.f32 0.0, %v1463_v15  ;;  %v4625_v12 = vld [vmem:[%s9064_s3 + $0x1b8] sm:$0xff]  ;;  %v4608_v14 = vld [vmem:[%s9064_s3 + $0x130] sm:$0xff] }
 0x287   :  { %v4624_v15 = vld [vmem:[%s9064_s3 + $0x1b0] sm:$0xff] }
 0x288   :  { %5761 = vpow2.f32 %v1472_v6  ;;  %v1474_v16 = vmul.f32 1.442695, %v1467_v13  ;;  %v4607_v6 = vld [vmem:[%s9064_s3 + $0x128] sm:$0xff] }
 0x289   :  { %v4623_v13 = vld [vmem:[%s9064_s3 + $0x1a8] sm:$0xff] }
 0x28a   :  { %5763 = vpow2.f32 %v1474_v16  ;;  %v4606_v16 = vld [vmem:[%s9064_s3 + $0x120] sm:$0xff] }
 0x291   :  { %v5758_v17 = vpop.eup %5757 }
 0x292   :  { %v1476_v18 = vadd.f32 1.0, %v5758_v17  ;;  %v4622_v17 = vld [vmem:[%s9064_s3 + $0x1a0] sm:$0xff] }
 0x293   :  { %v5760_v19 = vpop.eup %5759 }
 0x294   :  { %5765 = vrcp.f32 %v1476_v18  ;;  %v1477_v20 = vadd.f32 1.0, %v5760_v19  ;;  %v4605_v18 = vld [vmem:[%s9064_s3 + $0x118] sm:$0xff] }
 0x295   :  { %v5762_v21 = vpop.eup %5761  ;;  %v4621_v19 = vld [vmem:[%s9064_s3 + $0x198] sm:$0xff] }
 0x296   :  { %5767 = vrcp.f32 %v1477_v20  ;;  %v1478_v22 = vadd.f32 1.0, %v5762_v21  ;;  %v4604_v20 = vld [vmem:[%s9064_s3 + $0x110] sm:$0xff] }
 0x297   :  { %v5764_v23 = vpop.eup %5763  ;;  %v4620_v21 = vld [vmem:[%s9064_s3 + $0x190] sm:$0xff] }
 0x298   :  { %5769 = vrcp.f32 %v1478_v22  ;;  %v1479_v24 = vadd.f32 1.0, %v5764_v23  ;;  %v4603_v22 = vld [vmem:[%s9064_s3 + $0x108] sm:$0xff] }
 0x299   :  { %v4619_v23 = vld [vmem:[%s9064_s3 + $0x188] sm:$0xff] }
 0x29a   :  { %5771 = vrcp.f32 %v1479_v24  ;;  %v4602_v24 = vld [vmem:[%s9064_s3 + $0x100] sm:$0xff] }
 0x2a1   :  { %v5766_v31 = vpop.eup %5765 }
 0x2a2   :  { %v1499_v33 = vmul.f32 %v5766_v31, %v1492_v28 }
 0x2a3   :  { %v5768_v35 = vpop.eup %5767 }
 0x2a4   :  { %v1514_v36 = vadd.f32 %v1507_v29, %v1499_v33  ;;  %v1500_v38 = vmul.f32 %v5768_v35, %v1496_v30  ;;  %v4648_v35 = vld [vmem:[%s9064_s3 + $0x270] sm:$0xff] }
 0x2a5   :  { %v5770_v39 = vpop.eup %5769 }
 0x2a6   :  { %v1515_v40 = vadd.f32 %v1511_v34, %v1500_v38  ;;  %v1501_v41 = vmul.f32 %v5770_v39, %v1492_v28  ;;  %v1518_v37 = vmax.f32 %v1514_v36, 0.0  ;;  %v4618_v28 = vld [vmem:[%s9064_s3 + $0x180] sm:$0xff]  ;;  %v4647_v36 = vld [vmem:[%s9064_s3 + $0x268] sm:$0xff]  ;;  %v4645_v39 = vld [vmem:[%s9064_s3 + $0x258] sm:$0xff] }
 0x2a7   :  { %v5772_v42 = vpop.eup %5771  ;;  %v4646_v38 = vld [vmem:[%s9064_s3 + $0x260] sm:$0xff] }
 0x2a8   :  { %v1519_v44 = vmax.f32 %v1515_v40, 0.0  ;;  %v1516_v45 = vadd.f32 %v1507_v29, %v1501_v41  ;;  %v1502_v46 = vmul.f32 %v5772_v42, %v1496_v30  ;;  %v4644_v40 = vld [vmem:[%s9064_s3 + $0x250] sm:$0xff]  ;;  %v4643_v41 = vld [vmem:[%s9064_s3 + $0x248] sm:$0xff]  ;;  %v4642_v42 = vld [vmem:[%s9064_s3 + $0x240] sm:$0xff] }
 0x2aa   :  { %v1522_v43 = vmax.f32 %v1518_v37, %v1519_v44  ;;  %v1517_v47 = vadd.f32 %v1511_v34, %v1502_v46  ;;  %v1520_v48 = vmax.f32 %v1516_v45, 0.0  ;;  %v4649_v34 = vld [vmem:[%s9064_s3 + $0x278] sm:$0xff]  ;;  %v4640_v44 = vld [vmem:[%s9064_s3 + $0x230] sm:$0xff]  ;;  %v4639_v45 = vld [vmem:[%s9064_s3 + $0x228] sm:$0xff] }
 0x2ab   :  { %v4641_v37 = vld [vmem:[%s9064_s3 + $0x238] sm:$0xff]  ;;  %v4638_v46 = vld [vmem:[%s9064_s3 + $0x220] sm:$0xff] }
 0x2ac   :  { %1524 = vst [vmem:[#allocation2] sm:$0xff] %v1522_v43  ;;  %v1521_v49 = vmax.f32 %v1517_v47, 0.0  ;;  %v4637_v43 = vld [vmem:[%s9064_s3 + $0x218] sm:$0xff]  ;;  %v4636_v47 = vld [vmem:[%s9064_s3 + $0x210] sm:$0xff] }
 0x2ae   :  { %v1523_v50 = vmax.f32 %v1520_v48, %v1521_v49  ;;  %v4635_v48 = vld [vmem:[%s9064_s3 + $0x208] sm:$0xff] }
 0x2b0   :  { %1525 = vst [vmem:[#allocation2 + $0x8] sm:$0x3] %v1523_v50 }
 0x2b3   :  { %v1545_v51 = vld [vmem:[#allocation2 + $0x2] sm:$0x1]  ;;  %v1546_v52 = vld [vmem:[#allocation2 + $0x3] sm:$0x1]  ;;  %v1526_v53 = vld [vmem:[#allocation2] sm:$0x1] }
 0x2b4   :  { %v1547_v54 = vmax.f32 %v1545_v51, %v1546_v52  ;;  %v1527_v55 = vld [vmem:[#allocation2 + $0x1] sm:$0x1]  ;;  %v1705_v25 = vld [vmem:[#allocation2 + $0x4] sm:$0x1]  ;;  %v1706_v26 = vld [vmem:[#allocation2 + $0x5] sm:$0x1] }
 0x2b5   :  { %v1528_v57 = vmax.f32 %v1526_v53, %v1527_v55  ;;  %v1796_v29 = vld [vmem:[#allocation2 + $0x6] sm:$0x1]  ;;  %v1797_v30 = vld [vmem:[#allocation2 + $0x7] sm:$0x1]  ;;  %v1707_v31 = vmax.f32 %v1705_v25, %v1706_v26  ;;  %v2006_v53 = vld [vmem:[%s9066_s4 + $0x78] sm:$0xff] }
 0x2b6   :  { %5266 = vmatmul.mubr.f32.vlgmr.msra.gmra.mxu0 %v1547_v54  ;;  %v1798_v33 = vmax.f32 %v1796_v29, %v1797_v30  ;;  %v4634_v51 = vld [vmem:[%s9064_s3 + $0x200] sm:$0xff]  ;;  %v2005_v54 = vld [vmem:[%s9066_s4 + $0x70] sm:$0xff]  ;;  %v2004_v55 = vld [vmem:[%s9066_s4 + $0x68] sm:$0xff] }
 0x2b7   :  { %5301 = vmatmul.mubr.f32.vlgmr.msra.gmra.mxu1 %v1528_v57  ;;  %5304 = vmatpush3.msra.mxu0 %v4617_v56  ;;  %v1887_v49 = vld [vmem:[#allocation2 + $0x8] sm:$0x1]  ;;  %v1888_v50 = vld [vmem:[#allocation2 + $0x9] sm:$0x1]  ;;  %v2003_v56 = vld [vmem:[%s9066_s4 + $0x60] sm:$0xff] }
 0x2b8   :  { %5339 = vmatpush3.msra.mxu1 %v4633_v58  ;;  %5305 = vmatprep.subr.mxu0 %v5845_v3  ;;  %v1889_v52 = vmax.f32 %v1887_v49, %v1888_v50  ;;  %v2002_v57 = vld [vmem:[%s9066_s4 + $0x58] sm:$0xff]  ;;  %v2001_v58 = vld [vmem:[%s9066_s4 + $0x50] sm:$0xff]  ;;  %v1979_v26 = vld [vmem:[%s9067_s8 + $0x1] sm:$0x1] }
 0x2b9   :  { %5340 = vmatprep.subr.mxu1 %v5845_v3  ;;  %5306 = vmatpush3.msra.mxu0 %v4616_v59  ;;  %v2000_v59 = vld [vmem:[%s9066_s4 + $0x48] sm:$0xff]  ;;  %v1980_v29 = vld [vmem:[%s9067_s8 + $0x2] sm:$0x1]  ;;  %v2099_v50 = vld [vmem:[%s9068_s5 + $0x50] sm:$0xff] }
 0x2ba   :  { %5341 = vmatpush3.msra.mxu1 %v4632_v60  ;;  %5307 = vmatprep.subr.mxu0 %v5845_v3  ;;  %v1999_v60 = vld [vmem:[%s9066_s4 + $0x40] sm:$0xff]  ;;  %v4679_v49 = vld [vmem:[%s9060_s1 + $0x1a8] sm:$0xff] }
 0x2bb   :  { %5342 = vmatprep.subr.mxu1 %v5845_v3  ;;  %5308 = vmatpush3.msra.mxu0 %v4615_v61  ;;  %v1998_v61 = vld [vmem:[%s9066_s4 + $0x38] sm:$0xff] }
 0x2bc   :  { %5343 = vmatpush3.msra.mxu1 %v4631_v62  ;;  %5309 = vmatprep.subr.mxu0 %v5845_v3  ;;  %v1997_v62 = vld [vmem:[%s9066_s4 + $0x30] sm:$0xff] }
 0x2bd   :  { %5344 = vmatprep.subr.mxu1 %v5845_v3  ;;  %5310 = vmatpush3.msra.mxu0 %v4614_v0  ;;  %v1996_v0 = vld [vmem:[%s9066_s4 + $0x28] sm:$0xff] }
 0x2be   :  { %5345 = vmatpush3.msra.mxu1 %v4630_v63  ;;  %5311 = vmatprep.subr.mxu0 %v5845_v3  ;;  %v1995_v63 = vld [vmem:[%s9066_s4 + $0x20] sm:$0xff] }
 0x2bf   :  { %5346 = vmatprep.subr.mxu1 %v5845_v3  ;;  %5312 = vmatpush3.msra.mxu0 %v4613_v1  ;;  %v1994_v1 = vld [vmem:[%s9066_s4 + $0x18] sm:$0xff] }
 0x2c0   :  { %5347 = vmatpush3.msra.mxu1 %v4629_v2  ;;  %5313 = vmatprep.subr.mxu0 %v5845_v3  ;;  %v1993_v2 = vld [vmem:[%s9066_s4 + $0x10] sm:$0xff] }
 0x2c1   :  { %5348 = vmatprep.subr.mxu1 %v5845_v3  ;;  %5314 = vmatpush3.msra.mxu0 %v4612_v5  ;;  %v1992_v5 = vld [vmem:[%s9066_s4 + $0x8] sm:$0xff] }
 0x2c2   :  { %5349 = vmatpush3.msra.mxu1 %v4628_v7  ;;  %5315 = vmatprep.subr.mxu0 %v5845_v3  ;;  %v1991_v7 = vld [vmem:[%s9066_s4] sm:$0xff] }
 0x2c3   :  { %5350 = vmatprep.subr.mxu1 %v5845_v3  ;;  %5316 = vmatpush3.msra.mxu0 %v4611_v8 }
 0x2c4   :  { %5351 = vmatpush3.msra.mxu1 %v4627_v4  ;;  %5317 = vmatprep.subr.mxu0 %v5845_v3 }
 0x2c5   :  { %5352 = vmatprep.subr.mxu1 %v5845_v3  ;;  %5318 = vmatpush3.msra.mxu0 %v4610_v9 }
 0x2c6   :  { %5353 = vmatpush3.msra.mxu1 %v4626_v10  ;;  %5319 = vmatprep.subr.mxu0 %v5845_v3 }
 0x2c7   :  { %5354 = vmatprep.subr.mxu1 %v5845_v3  ;;  %5320 = vmatpush3.msra.mxu0 %v4609_v11 }
 0x2c8   :  { %5355 = vmatpush3.msra.mxu1 %v4625_v12  ;;  %5321 = vmatprep.subr.mxu0 %v5845_v3 }
 0x2c9   :  { %5356 = vmatprep.subr.mxu1 %v5845_v3  ;;  %5322 = vmatpush3.msra.mxu0 %v4608_v14 }
 0x2ca   :  { %5357 = vmatpush3.msra.mxu1 %v4624_v15  ;;  %5323 = vmatprep.subr.mxu0 %v5845_v3 }
 0x2cb   :  { %5358 = vmatprep.subr.mxu1 %v5845_v3  ;;  %5324 = vmatpush3.msra.mxu0 %v4607_v6 }
 0x2cc   :  { %5359 = vmatpush3.msra.mxu1 %v4623_v13  ;;  %5325 = vmatprep.subr.mxu0 %v5845_v3 }
 0x2cd   :  { %5360 = vmatprep.subr.mxu1 %v5845_v3  ;;  %5326 = vmatpush3.msra.mxu0 %v4606_v16 }
 0x2ce   :  { %5361 = vmatpush3.msra.mxu1 %v4622_v17  ;;  %5327 = vmatprep.subr.mxu0 %v5845_v3 }
 0x2cf   :  { %5362 = vmatprep.subr.mxu1 %v5845_v3  ;;  %5328 = vmatpush3.msra.mxu0 %v4605_v18  ;;  %v1978_v18 = vld [vmem:[%s9067_s8] sm:$0x1] }
 0x2d0   :  { %5363 = vmatpush3.msra.mxu1 %v4621_v19  ;;  %5329 = vmatprep.subr.mxu0 %v5845_v3 }
 0x2d1   :  { %5364 = vmatprep.subr.mxu1 %v5845_v3  ;;  %5330 = vmatpush3.msra.mxu0 %v4604_v20 }
 0x2d2   :  { %5365 = vmatpush3.msra.mxu1 %v4620_v21  ;;  %5331 = vmatprep.subr.mxu0 %v5845_v3 }
 0x2d3   :  { %5366 = vmatprep.subr.mxu1 %v5845_v3  ;;  %5332 = vmatpush3.msra.mxu0 %v4603_v22 }
 0x2d4   :  { %5367 = vmatpush3.msra.mxu1 %v4619_v23  ;;  %5333 = vmatprep.subr.mxu0 %v5845_v3 }
 0x2d5   :  { %5368 = vmatprep.subr.mxu1 %v5845_v3  ;;  %5334 = vmatpush3.msra.mxu0 %v4602_v24 }
 0x2d6   :  { %5335 = vmatprep.mubr.msk.f32.mxu0 %vm5846_vm0, %v5845_v3  ;;  %5369 = vmatpush3.msra.mxu1 %v4618_v28 }
 0x2d7   :  { %5370 = vmatprep.mubr.msk.f32.mxu1 %vm5846_vm0, %v5845_v3  ;;  %5336 = vmatmul.mubr.f32.vlgmr.msra.gmra.mxu0 %v1707_v31 }
 0x2d8   :  { %5371 = vmatmul.mubr.f32.vlgmr.msra.gmra.mxu1 %v1798_v33  ;;  %5373 = vmatprep.subr.mxu0 %v5845_v3 }
 0x2d9   :  { %5374 = vmatpush3.msra.mxu0 %v4649_v34  ;;  %5405 = vmatprep.mubr.msk.f32.mxu0 %vm5846_vm0, %v5845_v3  ;;  %v4689_v34 = vld [vmem:[%s9060_s1 + $0x1f8] sm:$0xff] }
 0x2da   :  { %5375 = vmatprep.subr.mxu0 %v5845_v3  ;;  %5408 = vmatprep.subr.mxu1 %v5845_v3 }
 0x2db   :  { %5376 = vmatpush3.msra.mxu0 %v4648_v35  ;;  %5440 = vmatprep.mubr.msk.f32.mxu1 %vm5846_vm0, %v5845_v3  ;;  %v2104_v35 = vld [vmem:[%s9068_s5 + $0x78] sm:$0xff] }
 0x2dc   :  { %5377 = vmatprep.subr.mxu0 %v5845_v3  ;;  %5409 = vmatpush3.msra.mxu1 %v2006_v53  ;;  %v2098_v53 = vld [vmem:[%s9068_s5 + $0x48] sm:$0xff] }
 0x2dd   :  { %5378 = vmatpush3.msra.mxu0 %v4647_v36  ;;  %5410 = vmatprep.subr.mxu1 %v5845_v3  ;;  %v4688_v36 = vld [vmem:[%s9060_s1 + $0x1f0] sm:$0xff] }
 0x2de   :  { %5379 = vmatprep.subr.mxu0 %v5845_v3  ;;  %5411 = vmatpush3.msra.mxu1 %v2005_v54  ;;  %v4676_v54 = vld [vmem:[%s9060_s1 + $0x190] sm:$0xff] }
 0x2df   :  { %5380 = vmatpush3.msra.mxu0 %v4646_v38  ;;  %5412 = vmatprep.subr.mxu1 %v5845_v3  ;;  %v4687_v38 = vld [vmem:[%s9060_s1 + $0x1e8] sm:$0xff] }
 0x2e0   :  { %5381 = vmatprep.subr.mxu0 %v5845_v3  ;;  %5413 = vmatpush3.msra.mxu1 %v2004_v55  ;;  %v4675_v55 = vld [vmem:[%s9060_s1 + $0x188] sm:$0xff] }
 0x2e1   :  { %5382 = vmatpush3.msra.mxu0 %v4645_v39  ;;  %5414 = vmatprep.subr.mxu1 %v5845_v3  ;;  %v2103_v39 = vld [vmem:[%s9068_s5 + $0x70] sm:$0xff] }
 0x2e2   :  { %5383 = vmatprep.subr.mxu0 %v5845_v3  ;;  %5415 = vmatpush3.msra.mxu1 %v2003_v56  ;;  %v2097_v56 = vld [vmem:[%s9068_s5 + $0x40] sm:$0xff] }
 0x2e3   :  { %5384 = vmatpush3.msra.mxu0 %v4644_v40  ;;  %5416 = vmatprep.subr.mxu1 %v5845_v3  ;;  %v4686_v40 = vld [vmem:[%s9060_s1 + $0x1e0] sm:$0xff] }
 0x2e4   :  { %5385 = vmatprep.subr.mxu0 %v5845_v3  ;;  %5417 = vmatpush3.msra.mxu1 %v2002_v57  ;;  %v4674_v57 = vld [vmem:[%s9060_s1 + $0x180] sm:$0xff] }
 0x2e5   :  { %5386 = vmatpush3.msra.mxu0 %v4643_v41  ;;  %5418 = vmatprep.subr.mxu1 %v5845_v3  ;;  %v4685_v41 = vld [vmem:[%s9060_s1 + $0x1d8] sm:$0xff] }
 0x2e6   :  { %5387 = vmatprep.subr.mxu0 %v5845_v3  ;;  %5419 = vmatpush3.msra.mxu1 %v2001_v58  ;;  %v4673_v58 = vld [vmem:[%s9060_s1 + $0x178] sm:$0xff] }
 0x2e7   :  { %5388 = vmatpush3.msra.mxu0 %v4642_v42  ;;  %5420 = vmatprep.subr.mxu1 %v5845_v3  ;;  %v2102_v42 = vld [vmem:[%s9068_s5 + $0x68] sm:$0xff] }
 0x2e8   :  { %5389 = vmatprep.subr.mxu0 %v5845_v3  ;;  %5421 = vmatpush3.msra.mxu1 %v2000_v59  ;;  %v2096_v59 = vld [vmem:[%s9068_s5 + $0x38] sm:$0xff] }
 0x2e9   :  { %5390 = vmatpush3.msra.mxu0 %v4641_v37  ;;  %5422 = vmatprep.subr.mxu1 %v5845_v3  ;;  %v4684_v37 = vld [vmem:[%s9060_s1 + $0x1d0] sm:$0xff] }
 0x2ea   :  { %5391 = vmatprep.subr.mxu0 %v5845_v3  ;;  %5423 = vmatpush3.msra.mxu1 %v1999_v60  ;;  %v4672_v60 = vld [vmem:[%s9060_s1 + $0x170] sm:$0xff] }
 0x2eb   :  { %5392 = vmatpush3.msra.mxu0 %v4640_v44  ;;  %5424 = vmatprep.subr.mxu1 %v5845_v3  ;;  %v4683_v44 = vld [vmem:[%s9060_s1 + $0x1c8] sm:$0xff] }
 0x2ec   :  { %5393 = vmatprep.subr.mxu0 %v5845_v3  ;;  %5425 = vmatpush3.msra.mxu1 %v1998_v61  ;;  %v4671_v61 = vld [vmem:[%s9060_s1 + $0x168] sm:$0xff] }
 0x2ed   :  { %5394 = vmatpush3.msra.mxu0 %v4639_v45  ;;  %5426 = vmatprep.subr.mxu1 %v5845_v3  ;;  %v2101_v45 = vld [vmem:[%s9068_s5 + $0x60] sm:$0xff] }
 0x2ee   :  { %5395 = vmatprep.subr.mxu0 %v5845_v3  ;;  %5427 = vmatpush3.msra.mxu1 %v1997_v62  ;;  %v2095_v62 = vld [vmem:[%s9068_s5 + $0x30] sm:$0xff] }
 0x2ef   :  { %5396 = vmatpush3.msra.mxu0 %v4638_v46  ;;  %5428 = vmatprep.subr.mxu1 %v5845_v3  ;;  %v4682_v46 = vld [vmem:[%s9060_s1 + $0x1c0] sm:$0xff] }
 0x2f0   :  { %5397 = vmatprep.subr.mxu0 %v5845_v3  ;;  %5429 = vmatpush3.msra.mxu1 %v1996_v0  ;;  %v4670_v0 = vld [vmem:[%s9060_s1 + $0x160] sm:$0xff] }
 0x2f1   :  { %5398 = vmatpush3.msra.mxu0 %v4637_v43  ;;  %5430 = vmatprep.subr.mxu1 %v5845_v3  ;;  %v4681_v43 = vld [vmem:[%s9060_s1 + $0x1b8] sm:$0xff] }
 0x2f2   :  { %5399 = vmatprep.subr.mxu0 %v5845_v3  ;;  %5431 = vmatpush3.msra.mxu1 %v1995_v63  ;;  %v4669_v63 = vld [vmem:[%s9060_s1 + $0x158] sm:$0xff] }
 0x2f3   :  { %5400 = vmatpush3.msra.mxu0 %v4636_v47  ;;  %5432 = vmatprep.subr.mxu1 %v5845_v3  ;;  %v2100_v47 = vld [vmem:[%s9068_s5 + $0x58] sm:$0xff] }
 0x2f4   :  { %5401 = vmatprep.subr.mxu0 %v5845_v3  ;;  %5433 = vmatpush3.msra.mxu1 %v1994_v1  ;;  %v2094_v1 = vld [vmem:[%s9068_s5 + $0x28] sm:$0xff] }
 0x2f5   :  { %5402 = vmatpush3.msra.mxu0 %v4635_v48  ;;  %5434 = vmatprep.subr.mxu1 %v5845_v3  ;;  %v4680_v48 = vld [vmem:[%s9060_s1 + $0x1b0] sm:$0xff] }
 0x2f6   :  { %5403 = vmatprep.subr.mxu0 %v5845_v3  ;;  %5435 = vmatpush3.msra.mxu1 %v1993_v2  ;;  %v4668_v2 = vld [vmem:[%s9060_s1 + $0x150] sm:$0xff] }
 0x2f7   :  { %5404 = vmatpush3.msra.mxu0 %v4634_v51  ;;  %5436 = vmatprep.subr.mxu1 %v5845_v3  ;;  %v4678_v51 = vld [vmem:[%s9060_s1 + $0x1a0] sm:$0xff] }
 0x2f8   :  { %5406 = vmatmul.mubr.f32.vlgmr.msra.gmra.mxu0 %v1889_v52  ;;  %5443 = vmatprep.subr.mxu0 %v5845_v3  ;;  %v4677_v52 = vld [vmem:[%s9060_s1 + $0x198] sm:$0xff] }
 0x2f9   :  { %5475 = vmatprep.mubr.msk.f32.mxu0 %vm5846_vm0, %v5845_v3  ;;  %5437 = vmatpush3.msra.mxu1 %v1992_v5  ;;  %v4667_v5 = vld [vmem:[%s9060_s1 + $0x148] sm:$0xff] }
 0x2fa   :  { %5438 = vmatprep.subr.mxu1 %v5845_v3  ;;  %5444 = vmatpush3.msra.mxu0 %v2104_v35  ;;  %v4713_v35 = vld [vmem:[%s9060_s1 + $0x298] sm:$0xff] }
 0x2fb   :  { %5439 = vmatpush3.msra.mxu1 %v1991_v7  ;;  %5445 = vmatprep.subr.mxu0 %v5845_v3  ;;  %v2093_v7 = vld [vmem:[%s9068_s5 + $0x20] sm:$0xff] }
 0x2fc   :  { %2260 = vmatprep.subr.mxu1 %v4689_v34  ;;  %5446 = vmatpush3.msra.mxu0 %v2103_v39  ;;  %v4714_v34 = vld [vmem:[%s9060_s1 + $0x2a0] sm:$0xff] }
 0x2fd   :  { %5447 = vmatprep.subr.mxu0 %v5845_v3  ;;  %v4710_v39 = vld [vmem:[%s9060_s1 + $0x280] sm:$0xff] }
 0x2fe   :  { %5448 = vmatpush3.msra.mxu0 %v2102_v42  ;;  %v4707_v42 = vld [vmem:[%s9060_s1 + $0x268] sm:$0xff] }
 0x2ff   :  { %5449 = vmatprep.subr.mxu0 %v5845_v3 }
 0x300   :  { %5450 = vmatpush3.msra.mxu0 %v2101_v45  ;;  %v4655_v45 = vld [vmem:[%s9061_s0 + $0x29] sm:$0xff] }
 0x301   :  { %5451 = vmatprep.subr.mxu0 %v5845_v3 }
 0x302   :  { %5452 = vmatpush3.msra.mxu0 %v2100_v47  ;;  %v4702_v47 = vld [vmem:[%s9060_s1 + $0x240] sm:$0xff] }
 0x303   :  { %5453 = vmatprep.subr.mxu0 %v5845_v3 }
 0x304   :  { %5454 = vmatpush3.msra.mxu0 %v2099_v50  ;;  %v4700_v50 = vld [vmem:[%s9060_s1 + $0x230] sm:$0xff] }
 0x305   :  { %5455 = vmatprep.subr.mxu0 %v5845_v3 }
 0x306   :  { %5456 = vmatpush3.msra.mxu0 %v2098_v53  ;;  %v4697_v53 = vld [vmem:[%s9060_s1 + $0x218] sm:$0xff] }
 0x307   :  { %5457 = vmatprep.subr.mxu0 %v5845_v3 }
 0x308   :  { %5458 = vmatpush3.msra.mxu0 %v2097_v56  ;;  %v4695_v56 = vld [vmem:[%s9060_s1 + $0x208] sm:$0xff] }
 0x309   :  { %5459 = vmatprep.subr.mxu0 %v5845_v3 }
 0x30a   :  { %5460 = vmatpush3.msra.mxu0 %v2096_v59  ;;  %v4690_v59 = vld [vmem:[%s9061_s0 + $0x22] sm:$0xff] }
 0x30b   :  { %5461 = vmatprep.subr.mxu0 %v5845_v3 }
 0x30c   :  { %5462 = vmatpush3.msra.mxu0 %v2095_v62  ;;  %v4794_v62 = vld [vmem:[%s9060_s1 + $0x4e0] sm:$0xff] }
 0x30d   :  { %5463 = vmatprep.subr.mxu0 %v5845_v3 }
 0x30e   :  { %5464 = vmatpush3.msra.mxu0 %v2094_v1  ;;  %v4691_v1 = vld [vmem:[%s9061_s0 + $0x2a] sm:$0xff] }
 0x30f   :  { %5465 = vmatprep.subr.mxu0 %v5845_v3 }
 0x310   :  { %5466 = vmatpush3.msra.mxu0 %v2093_v7  ;;  %v4789_v7 = vld [vmem:[%s9060_s1 + $0x4b8] sm:$0xff] }
 0x311   :  { %5467 = vmatprep.subr.mxu0 %v5845_v3 }
 0x376   :  { %v1631_v8 = vpop.f32.mrf.mxu0 }
 0x377   :  { %v1701_v4 = vpop.f32.mrf.mxu1 }
 0x378   :  { %v5267_v9 = vpop.f32.mrf.mxu0  ;;  %v1702_v6 = vadd.f32 %v1701_v4, %v1631_v8  ;;  %v4666_v8 = vld [vmem:[%s9060_s1 + $0x140] sm:$0xff]  ;;  %v4665_v4 = vld [vmem:[%s9060_s1 + $0x138] sm:$0xff] }
 0x379   :  { %v5302_v10 = vpop.f32.mrf.mxu1  ;;  %v2092_v9 = vld [vmem:[%s9068_s5 + $0x18] sm:$0xff] }
 0x37a   :  { %v4664_v10 = vld [vmem:[%s9060_s1 + $0x130] sm:$0xff]  ;;  %5468 = vmatpush3.msra.mxu0 %v2092_v9  ;;  %v4787_v9 = vld [vmem:[%s9060_s1 + $0x4a8] sm:$0xff] }
 0x37b   :  { %5469 = vmatprep.subr.mxu0 %v5845_v3 }
 0x397   :  { %v1791_v11 = vpop.f32.mrf.mxu0 }
 0x398   :  { %v1882_v12 = vpop.f32.mrf.mxu1  ;;  %v1795_v13 = vadd.f32 %v1791_v11, %v1702_v6  ;;  %v4663_v11 = vld [vmem:[%s9060_s1 + $0x128] sm:$0xff] }
 0x399   :  { %v5337_v14 = vpop.f32.mrf.mxu0  ;;  %v2090_v6 = vld [vmem:[%s9068_s5 + $0x8] sm:$0xff] }
 0x39a   :  { %v5372_v15 = vpop.f32.mrf.mxu1  ;;  %v1886_v16 = vadd.f32 %v1882_v12, %v1795_v13  ;;  %v2091_v12 = vld [vmem:[%s9068_s5 + $0x10] sm:$0xff]  ;;  %v4662_v14 = vld [vmem:[%s9060_s1 + $0x120] sm:$0xff] }
 0x39b   :  { %v4661_v15 = vld [vmem:[%s9060_s1 + $0x118] sm:$0xff]  ;;  %v4660_v13 = vld [vmem:[%s9060_s1 + $0x110] sm:$0xff]  ;;  %5470 = vmatpush3.msra.mxu0 %v2091_v12 }
 0x39c   :  { %5471 = vmatprep.subr.mxu0 %v5845_v3  ;;  %v4784_v12 = vld [vmem:[%s9060_s1 + $0x490] sm:$0xff] }
 0x39d   :  { %5472 = vmatpush3.msra.mxu0 %v2090_v6  ;;  %v4782_v6 = vld [vmem:[%s9060_s1 + $0x480] sm:$0xff] }
 0x39e   :  { %5473 = vmatprep.subr.mxu0 %v5845_v3 }
 0x3b8   :  { %v1973_v17 = vpop.f32.mrf.mxu0 }
 0x3b9   :  { %v1977_v19 = vadd.f32 %v1973_v17, %v1886_v16  ;;  %v4659_v16 = vld [vmem:[%s9060_s1 + $0x108] sm:$0xff]  ;;  %v2089_v17 = vld [vmem:[%s9068_s5] sm:$0xff] }
 0x3ba   :  { %v5407_v20 = vpop.f32.mrf.mxu0  ;;  %5474 = vmatpush3.msra.mxu0 %v2089_v17  ;;  %v4779_v17 = vld [vmem:[%s9060_s1 + $0x468] sm:$0xff] }
 0x3bb   :  { %v1981_v21 = vadd.f32 %v1978_v18, %v1977_v19  ;;  %v4658_v18 = vld [vmem:[%s9060_s1 + $0x100] sm:$0xff]  ;;  %v2223_v19 = vld [vmem:[%s9060_s1 + $0xf8] sm:$0xff] }
 0x3bc   :  { %v4725_v20 = vld [vmem:[%s9060_s1 + $0x2f8] sm:$0xff]  ;;  %2349 = vmatprep.subr.mxu0 %v2223_v19 }
 0x3bd   :  { %v1982_v22 = vsub.f32 0.0, %v1981_v21  ;;  %v4654_v21 = vld [vmem:[%s9061_s0 + $0x21] sm:$0xff]  ;;  %v4777_v19 = vld [vmem:[%s9060_s1 + $0x458] sm:$0xff] }
 0x3bf   :  { %v1983_v23 = vmul.f32 1.442695, %v1982_v22  ;;  %v4724_v22 = vld [vmem:[%s9060_s1 + $0x2f0] sm:$0xff] }
 0x3c1   :  { %5773 = vpow2.f32 %v1983_v23  ;;  %v4723_v23 = vld [vmem:[%s9060_s1 + $0x2e8] sm:$0xff] }
 0x3ce   :  { %v5774_v24 = vpop.eup %5773 }
 0x3cf   :  { %v1985_v25 = vadd.f32 1.0, %v5774_v24  ;;  %v4722_v24 = vld [vmem:[%s9060_s1 + $0x2e0] sm:$0xff] }
 0x3d1   :  { %5775 = vrcp.f32 %v1985_v25  ;;  %v4721_v25 = vld [vmem:[%s9060_s1 + $0x2d8] sm:$0xff] }
 0x3de   :  { %v5776_v28 = vpop.eup %5775 }
 0x3df   :  { %v1988_v30 = vmul.f32 %v5776_v28, %v1979_v26  ;;  %v4720_v26 = vld [vmem:[%s9060_s1 + $0x2d0] sm:$0xff]  ;;  %v4719_v28 = vld [vmem:[%s9060_s1 + $0x2c8] sm:$0xff] }
 0x3e1   :  { %v1989_v31 = vadd.f32 %v1988_v30, %v1980_v29  ;;  %v4718_v29 = vld [vmem:[%s9060_s1 + $0x2c0] sm:$0xff]  ;;  %v4717_v30 = vld [vmem:[%s9060_s1 + $0x2b8] sm:$0xff] }
 0x3e3   :  { %v1990_v33 = vmax.f32 %v1989_v31, 0.0  ;;  %v4716_v31 = vld [vmem:[%s9060_s1 + $0x2b0] sm:$0xff] }
 0x3e5   :  { %5441 = vmatmul.mubr.f32.vlgmr.msra.gmra.mxu1 %v1990_v33  ;;  %v4715_v33 = vld [vmem:[%s9060_s1 + $0x2a8] sm:$0xff] }
 0x3e6   :  { %2324 = vmatprep.mubr.f32.mxu1 %v5845_v3  ;;  %2261 = vmatpush1.msra.mxu1 %v4688_v36  ;;  %v4712_v36 = vld [vmem:[%s9060_s1 + $0x290] sm:$0xff] }
 0x3e7   :  { %2262 = vmatprep.subr.mxu1 %v4687_v38  ;;  %v4711_v38 = vld [vmem:[%s9060_s1 + $0x288] sm:$0xff] }
 0x3e8   :  { %2263 = vmatpush1.msra.mxu1 %v4686_v40  ;;  %v4709_v40 = vld [vmem:[%s9060_s1 + $0x278] sm:$0xff] }
 0x3e9   :  { %2264 = vmatprep.subr.mxu1 %v4685_v41  ;;  %v4708_v41 = vld [vmem:[%s9060_s1 + $0x270] sm:$0xff] }
 0x3ea   :  { %2265 = vmatpush1.msra.mxu1 %v4684_v37  ;;  %v4706_v37 = vld [vmem:[%s9060_s1 + $0x260] sm:$0xff] }
 0x3eb   :  { %2266 = vmatprep.subr.mxu1 %v4683_v44  ;;  %v4705_v44 = vld [vmem:[%s9060_s1 + $0x258] sm:$0xff] }
 0x3ec   :  { %2267 = vmatpush1.msra.mxu1 %v4682_v46  ;;  %v4704_v46 = vld [vmem:[%s9060_s1 + $0x250] sm:$0xff] }
 0x3ed   :  { %2268 = vmatprep.subr.mxu1 %v4681_v43  ;;  %v4703_v43 = vld [vmem:[%s9060_s1 + $0x248] sm:$0xff] }
 0x3ee   :  { %2269 = vmatpush1.msra.mxu1 %v4680_v48  ;;  %v4701_v48 = vld [vmem:[%s9060_s1 + $0x238] sm:$0xff] }
 0x3ef   :  { %2270 = vmatprep.subr.mxu1 %v4679_v49  ;;  %v4656_v49 = vld [vmem:[%s9061_s0 + $0x31] sm:$0xff] }
 0x3f0   :  { %2271 = vmatpush1.msra.mxu1 %v4678_v51  ;;  %v4699_v51 = vld [vmem:[%s9060_s1 + $0x228] sm:$0xff] }
 0x3f1   :  { %2272 = vmatprep.subr.mxu1 %v4677_v52  ;;  %v4698_v52 = vld [vmem:[%s9060_s1 + $0x220] sm:$0xff] }
 0x3f2   :  { %2273 = vmatpush1.msra.mxu1 %v4676_v54  ;;  %v4657_v54 = vld [vmem:[%s9061_s0 + $0x39] sm:$0xf] }
 0x3f3   :  { %2274 = vmatprep.subr.mxu1 %v4675_v55  ;;  %v4696_v55 = vld [vmem:[%s9060_s1 + $0x210] sm:$0xff] }
 0x3f4   :  { %2275 = vmatpush1.msra.mxu1 %v4674_v57  ;;  %v4694_v57 = vld [vmem:[%s9060_s1 + $0x200] sm:$0xff] }
 0x3f5   :  { %2276 = vmatprep.subr.mxu1 %v4673_v58  ;;  %v4797_v58 = vld [vmem:[%s9060_s1 + $0x4f8] sm:$0xff] }
 0x3f6   :  { %2277 = vmatpush1.msra.mxu1 %v4672_v60  ;;  %v4796_v60 = vld [vmem:[%s9060_s1 + $0x4f0] sm:$0xff] }
 0x3f7   :  { %2278 = vmatprep.subr.mxu1 %v4671_v61  ;;  %v4795_v61 = vld [vmem:[%s9060_s1 + $0x4e8] sm:$0xff] }
 0x3f8   :  { %2279 = vmatpush1.msra.mxu1 %v4670_v0  ;;  %v4793_v0 = vld [vmem:[%s9060_s1 + $0x4d8] sm:$0xff] }
 0x3f9   :  { %2280 = vmatprep.subr.mxu1 %v4669_v63  ;;  %v4792_v63 = vld [vmem:[%s9060_s1 + $0x4d0] sm:$0xff] }
 0x3fa   :  { %2281 = vmatpush1.msra.mxu1 %v4668_v2  ;;  %v4791_v2 = vld [vmem:[%s9060_s1 + $0x4c8] sm:$0xff] }
 0x3fb   :  { %2282 = vmatprep.subr.mxu1 %v4667_v5  ;;  %v4790_v5 = vld [vmem:[%s9060_s1 + $0x4c0] sm:$0xff] }
 0x3fc   :  { %2283 = vmatpush1.msra.mxu1 %v4666_v8  ;;  %v4788_v8 = vld [vmem:[%s9060_s1 + $0x4b0] sm:$0xff] }
 0x3fd   :  { %2284 = vmatprep.subr.mxu1 %v4665_v4  ;;  %v4692_v4 = vld [vmem:[%s9061_s0 + $0x32] sm:$0xff] }
 0x3fe   :  { %2285 = vmatpush1.msra.mxu1 %v4664_v10  ;;  %v4786_v10 = vld [vmem:[%s9060_s1 + $0x4a0] sm:$0xff] }
 0x3ff   :  { %2286 = vmatprep.subr.mxu1 %v4663_v11  ;;  %v4785_v11 = vld [vmem:[%s9060_s1 + $0x498] sm:$0xff] }
 0x400   :  { %2287 = vmatpush1.msra.mxu1 %v4662_v14  ;;  %v4693_v14 = vld [vmem:[%s9061_s0 + $0x3a] sm:$0xf] }
 0x401   :  { %2288 = vmatprep.subr.mxu1 %v4661_v15  ;;  %v4783_v15 = vld [vmem:[%s9060_s1 + $0x488] sm:$0xff] }
 0x402   :  { %2289 = vmatpush1.msra.mxu1 %v4660_v13  ;;  %v4781_v13 = vld [vmem:[%s9060_s1 + $0x478] sm:$0xff] }
 0x403   :  { %2290 = vmatprep.subr.mxu1 %v4659_v16  ;;  %v4780_v16 = vld [vmem:[%s9060_s1 + $0x470] sm:$0xff] }
 0x404   :  { %2291 = vmatpush1.msra.mxu1 %v4658_v18  ;;  %v4778_v18 = vld [vmem:[%s9060_s1 + $0x460] sm:$0xff] }
 0x405   :  { %2474 = vmatprep.subr.mxu1 %v4725_v20  ;;  %2325 = vmatmul.mubr.f32.vlgmr.msra.gmra.mxu1 %v4654_v21  ;;  %v4776_v20 = vld [vmem:[%s9060_s1 + $0x450] sm:$0xff]  ;;  %v4775_v21 = vld [vmem:[%s9060_s1 + $0x448] sm:$0xff] }
 0x406   :  { %2475 = vmatpush1.msra.mxu1 %v4724_v22  ;;  %2330 = vmatprep.mubr.f32.mxu1 %v5845_v3  ;;  %v4774_v22 = vld [vmem:[%s9060_s1 + $0x440] sm:$0xff] }
 0x407   :  { %2476 = vmatprep.subr.mxu1 %v4723_v23  ;;  %v4773_v23 = vld [vmem:[%s9060_s1 + $0x438] sm:$0xff] }
 0x408   :  { %2477 = vmatpush1.msra.mxu1 %v4722_v24  ;;  %v4772_v24 = vld [vmem:[%s9060_s1 + $0x430] sm:$0xff] }
 0x409   :  { %2478 = vmatprep.subr.mxu1 %v4721_v25  ;;  %2331 = vmatmul.mubr.f32.gmra.mxu1 %v4655_v45  ;;  %v4771_v25 = vld [vmem:[%s9060_s1 + $0x428] sm:$0xff] }
 0x40a   :  { %2479 = vmatpush1.msra.mxu1 %v4720_v26  ;;  %2336 = vmatprep.mubr.f32.mxu1 %v5845_v3  ;;  %v4770_v26 = vld [vmem:[%s9060_s1 + $0x420] sm:$0xff] }
 0x40b   :  { %2480 = vmatprep.subr.mxu1 %v4719_v28  ;;  %v4769_v28 = vld [vmem:[%s9060_s1 + $0x418] sm:$0xff] }
 0x40c   :  { %2481 = vmatpush1.msra.mxu1 %v4718_v29  ;;  %v4768_v29 = vld [vmem:[%s9060_s1 + $0x410] sm:$0xff] }
 0x40d   :  { %2482 = vmatprep.subr.mxu1 %v4717_v30  ;;  %2337 = vmatmul.mubr.f32.gmra.mxu1 %v4656_v49  ;;  %v4767_v30 = vld [vmem:[%s9060_s1 + $0x408] sm:$0xff] }
 0x40e   :  { %2483 = vmatpush1.msra.mxu1 %v4716_v31  ;;  %2342 = vmatprep.mubr.f32.mxu1 %v5845_v3  ;;  %v4766_v31 = vld [vmem:[%s9060_s1 + $0x400] sm:$0xff] }
 0x40f   :  { %2484 = vmatprep.subr.mxu1 %v4715_v33  ;;  %v4762_v33 = vld [vmem:[%s9061_s0 + $0x24] sm:$0xff] }
 0x410   :  { %2485 = vmatpush1.msra.mxu1 %v4714_v34  ;;  %v4763_v34 = vld [vmem:[%s9061_s0 + $0x2c] sm:$0xff] }
 0x411   :  { %2486 = vmatprep.subr.mxu1 %v4713_v35  ;;  %2343 = vmatmul.mubr.f32.gmra.mxu1 %v4657_v54  ;;  %v4764_v35 = vld [vmem:[%s9061_s0 + $0x34] sm:$0xff] }
 0x412   :  { %2487 = vmatpush1.msra.mxu1 %v4712_v36  ;;  %2538 = vmatprep.mubr.f32.mxu1 %v5845_v3  ;;  %v4765_v36 = vld [vmem:[%s9061_s0 + $0x3c] sm:$0xf] }
 0x413   :  { %2488 = vmatprep.subr.mxu1 %v4711_v38  ;;  %v2007_v38 = vld [vmem:[%s9069_s9] sm:$0x1]  ;;  %v2219_v54 = vld [vmem:[%s9060_s1 + $0xd8] sm:$0xff] }
 0x414   :  { %2489 = vmatpush1.msra.mxu1 %v4710_v39 }
 0x415   :  { %2490 = vmatprep.subr.mxu1 %v4709_v40 }
 0x416   :  { %2491 = vmatpush1.msra.mxu1 %v4708_v41 }
 0x417   :  { %2492 = vmatprep.subr.mxu1 %v4707_v42 }
 0x418   :  { %2493 = vmatpush1.msra.mxu1 %v4706_v37 }
 0x419   :  { %2494 = vmatprep.subr.mxu1 %v4705_v44 }
 0x41a   :  { %2495 = vmatpush1.msra.mxu1 %v4704_v46  ;;  %v2008_v46 = vld [vmem:[%s9069_s9 + $0x1] sm:$0x1] }
 0x41b   :  { %2496 = vmatprep.subr.mxu1 %v4703_v43 }
 0x41c   :  { %2497 = vmatpush1.msra.mxu1 %v4702_v47  ;;  %v2009_v47 = vld [vmem:[%s9069_s9 + $0x2] sm:$0x1] }
 0x41d   :  { %2498 = vmatprep.subr.mxu1 %v4701_v48 }
 0x41e   :  { %2499 = vmatpush1.msra.mxu1 %v4700_v50 }
 0x41f   :  { %2500 = vmatprep.subr.mxu1 %v4699_v51  ;;  %v2222_v51 = vld [vmem:[%s9060_s1 + $0xf0] sm:$0xff] }
 0x420   :  { %2501 = vmatpush1.msra.mxu1 %v4698_v52  ;;  %v2221_v52 = vld [vmem:[%s9060_s1 + $0xe8] sm:$0xff] }
 0x421   :  { %2502 = vmatprep.subr.mxu1 %v4697_v53  ;;  %v2220_v53 = vld [vmem:[%s9060_s1 + $0xe0] sm:$0xff] }
 0x422   :  { %2503 = vmatpush1.msra.mxu1 %v4696_v55  ;;  %v2218_v55 = vld [vmem:[%s9060_s1 + $0xd0] sm:$0xff] }
 0x423   :  { %2504 = vmatprep.subr.mxu1 %v4695_v56  ;;  %v2217_v56 = vld [vmem:[%s9060_s1 + $0xc8] sm:$0xff] }
 0x424   :  { %2505 = vmatpush1.msra.mxu1 %v4694_v57  ;;  %v2216_v57 = vld [vmem:[%s9060_s1 + $0xc0] sm:$0xff] }
 0x425   :  { %2740 = vmatprep.subr.mxu1 %v4797_v58  ;;  %2539 = vmatmul.mubr.f32.vlgmr.msra.gmra.mxu1 %v4690_v59  ;;  %v2215_v58 = vld [vmem:[%s9060_s1 + $0xb8] sm:$0xff]  ;;  %v2214_v59 = vld [vmem:[%s9060_s1 + $0xb0] sm:$0xff] }
 0x426   :  { %2741 = vmatpush1.msra.mxu1 %v4796_v60  ;;  %2544 = vmatprep.mubr.f32.mxu1 %v5845_v3  ;;  %v2213_v60 = vld [vmem:[%s9060_s1 + $0xa8] sm:$0xff] }
 0x427   :  { %2742 = vmatprep.subr.mxu1 %v4795_v61  ;;  %v2212_v61 = vld [vmem:[%s9060_s1 + $0xa0] sm:$0xff] }
 0x428   :  { %2743 = vmatpush1.msra.mxu1 %v4794_v62  ;;  %v2211_v62 = vld [vmem:[%s9060_s1 + $0x98] sm:$0xff] }
 0x429   :  { %2744 = vmatprep.subr.mxu1 %v4793_v0  ;;  %2545 = vmatmul.mubr.f32.gmra.mxu1 %v4691_v1  ;;  %v2210_v0 = vld [vmem:[%s9060_s1 + $0x90] sm:$0xff]  ;;  %v2208_v1 = vld [vmem:[%s9060_s1 + $0x80] sm:$0xff] }
 0x42a   :  { %2745 = vmatpush1.msra.mxu1 %v4792_v63  ;;  %2550 = vmatprep.mubr.f32.mxu1 %v5845_v3  ;;  %v2209_v63 = vld [vmem:[%s9060_s1 + $0x88] sm:$0xff] }
 0x42b   :  { %2746 = vmatprep.subr.mxu1 %v4791_v2  ;;  %v2207_v2 = vld [vmem:[%s9060_s1 + $0x78] sm:$0xff] }
 0x42c   :  { %2747 = vmatpush1.msra.mxu1 %v4790_v5  ;;  %v2206_v5 = vld [vmem:[%s9060_s1 + $0x70] sm:$0xff] }
 0x42d   :  { %2748 = vmatprep.subr.mxu1 %v4789_v7  ;;  %2551 = vmatmul.mubr.f32.gmra.mxu1 %v4692_v4  ;;  %v2205_v7 = vld [vmem:[%s9060_s1 + $0x68] sm:$0xff]  ;;  %v2203_v4 = vld [vmem:[%s9060_s1 + $0x58] sm:$0xff] }
 0x42e   :  { %2749 = vmatpush1.msra.mxu1 %v4788_v8  ;;  %2556 = vmatprep.mubr.f32.mxu1 %v5845_v3  ;;  %v2204_v8 = vld [vmem:[%s9060_s1 + $0x60] sm:$0xff] }
 0x42f   :  { %2750 = vmatprep.subr.mxu1 %v4787_v9  ;;  %v2202_v9 = vld [vmem:[%s9060_s1 + $0x50] sm:$0xff] }
 0x430   :  { %2751 = vmatpush1.msra.mxu1 %v4786_v10  ;;  %v2201_v10 = vld [vmem:[%s9060_s1 + $0x48] sm:$0xff] }
 0x431   :  { %2752 = vmatprep.subr.mxu1 %v4785_v11  ;;  %2557 = vmatmul.mubr.f32.gmra.mxu1 %v4693_v14  ;;  %v2200_v11 = vld [vmem:[%s9060_s1 + $0x40] sm:$0xff]  ;;  %v2198_v14 = vld [vmem:[%s9060_s1 + $0x30] sm:$0xff] }
 0x432   :  { %2753 = vmatpush1.msra.mxu1 %v4784_v12  ;;  %2804 = vmatprep.mubr.f32.mxu1 %v5845_v3  ;;  %v2199_v12 = vld [vmem:[%s9060_s1 + $0x38] sm:$0xff] }
 0x433   :  { %2754 = vmatprep.subr.mxu1 %v4783_v15  ;;  %v2197_v15 = vld [vmem:[%s9060_s1 + $0x28] sm:$0xff] }
 0x434   :  { %2755 = vmatpush1.msra.mxu1 %v4782_v6  ;;  %v2196_v6 = vld [vmem:[%s9060_s1 + $0x20] sm:$0xff] }
 0x435   :  { %2756 = vmatprep.subr.mxu1 %v4781_v13  ;;  %v2195_v13 = vld [vmem:[%s9060_s1 + $0x18] sm:$0xff] }
 0x436   :  { %2757 = vmatpush1.msra.mxu1 %v4780_v16  ;;  %v2194_v16 = vld [vmem:[%s9060_s1 + $0x10] sm:$0xff] }
 0x437   :  { %2758 = vmatprep.subr.mxu1 %v4779_v17  ;;  %v2193_v17 = vld [vmem:[%s9060_s1 + $0x8] sm:$0xff] }
 0x438   :  { %2759 = vmatpush1.msra.mxu1 %v4778_v18  ;;  %v2192_v18 = vld [vmem:[%s9060_s1] sm:$0xff] }
 0x439   :  { %2760 = vmatprep.subr.mxu1 %v4777_v19  ;;  %v4650_v19 = vld [vmem:[%s9061_s0 + $0x20] sm:$0xff] }
 0x43a   :  { %2761 = vmatpush1.msra.mxu1 %v4776_v20  ;;  %v4761_v20 = vld [vmem:[%s9060_s1 + $0x3f8] sm:$0xff] }
 0x43b   :  { %2762 = vmatprep.subr.mxu1 %v4775_v21  ;;  %v4760_v21 = vld [vmem:[%s9060_s1 + $0x3f0] sm:$0xff] }
 0x43c   :  { %2763 = vmatpush1.msra.mxu1 %v4774_v22  ;;  %v4759_v22 = vld [vmem:[%s9060_s1 + $0x3e8] sm:$0xff] }
 0x43d   :  { %2764 = vmatprep.subr.mxu1 %v4773_v23  ;;  %v4758_v23 = vld [vmem:[%s9060_s1 + $0x3e0] sm:$0xff] }
 0x43e   :  { %2765 = vmatpush1.msra.mxu1 %v4772_v24  ;;  %v4651_v24 = vld [vmem:[%s9061_s0 + $0x28] sm:$0xff] }
 0x43f   :  { %2766 = vmatprep.subr.mxu1 %v4771_v25  ;;  %v4757_v25 = vld [vmem:[%s9060_s1 + $0x3d8] sm:$0xff] }
 0x440   :  { %2767 = vmatpush1.msra.mxu1 %v4770_v26  ;;  %v4756_v26 = vld [vmem:[%s9060_s1 + $0x3d0] sm:$0xff] }
 0x441   :  { %2768 = vmatprep.subr.mxu1 %v4769_v28  ;;  %v4755_v28 = vld [vmem:[%s9060_s1 + $0x3c8] sm:$0xff] }
 0x442   :  { %2769 = vmatpush1.msra.mxu1 %v4768_v29  ;;  %v4754_v29 = vld [vmem:[%s9060_s1 + $0x3c0] sm:$0xff] }
 0x443   :  { %2770 = vmatprep.subr.mxu1 %v4767_v30  ;;  %v4652_v30 = vld [vmem:[%s9061_s0 + $0x30] sm:$0xff] }
 0x444   :  { %2771 = vmatpush1.msra.mxu1 %v4766_v31  ;;  %v4753_v31 = vld [vmem:[%s9060_s1 + $0x3b8] sm:$0xff] }
 0x445   :  { %2805 = vmatmul.mubr.f32.vlgmr.msra.gmra.mxu1 %v4762_v33  ;;  %v4752_v33 = vld [vmem:[%s9060_s1 + $0x3b0] sm:$0xff] }
 0x446   :  { %2810 = vmatprep.mubr.f32.mxu1 %v5845_v3 }
 0x449   :  { %2811 = vmatmul.mubr.f32.gmra.mxu1 %v4763_v34  ;;  %v4751_v34 = vld [vmem:[%s9060_s1 + $0x3a8] sm:$0xff] }
 0x44a   :  { %2816 = vmatprep.mubr.f32.mxu1 %v5845_v3 }
 0x44d   :  { %2817 = vmatmul.mubr.f32.gmra.mxu1 %v4764_v35  ;;  %v4750_v35 = vld [vmem:[%s9060_s1 + $0x3a0] sm:$0xff] }
 0x44e   :  { %2822 = vmatprep.mubr.f32.mxu1 %v5845_v3 }
 0x451   :  { %2823 = vmatmul.mubr.f32.gmra.mxu1 %v4765_v36  ;;  %v4653_v36 = vld [vmem:[%s9061_s0 + $0x38] sm:$0xf] }
 0x452   :  { %3226 = vmatprep.mubr.f32.mxu1 %v5845_v3 }
 0x4a5   :  { %v2076_v39 = vpop.f32.mrf.mxu1 }
 0x4a6   :  { %v2077_v40 = vadd.f32 %v2076_v39, %v2007_v38  ;;  %v4749_v38 = vld [vmem:[%s9060_s1 + $0x398] sm:$0xff]  ;;  %v4748_v39 = vld [vmem:[%s9060_s1 + $0x390] sm:$0xff] }
 0x4a7   :  { %v5442_v41 = vpop.f32.mrf.mxu1 }
 0x4a8   :  { %v2080_v42 = vsub.f32 0.0, %v2077_v40  ;;  %v4747_v40 = vld [vmem:[%s9060_s1 + $0x388] sm:$0xff]  ;;  %v4746_v41 = vld [vmem:[%s9060_s1 + $0x380] sm:$0xff] }
 0x4aa   :  { %v2081_v37 = vmul.f32 1.442695, %v2080_v42  ;;  %v4745_v42 = vld [vmem:[%s9060_s1 + $0x378] sm:$0xff] }
 0x4ac   :  { %5777 = vpow2.f32 %v2081_v37  ;;  %v4744_v37 = vld [vmem:[%s9060_s1 + $0x370] sm:$0xff] }
 0x4b9   :  { %v5778_v44 = vpop.eup %5777 }
 0x4ba   :  { %v2083_v45 = vadd.f32 1.0, %v5778_v44  ;;  %v4743_v44 = vld [vmem:[%s9060_s1 + $0x368] sm:$0xff] }
 0x4bc   :  { %5779 = vrcp.f32 %v2083_v45  ;;  %v4742_v45 = vld [vmem:[%s9060_s1 + $0x360] sm:$0xff] }
 0x4c9   :  { %v5780_v43 = vpop.eup %5779 }
 0x4ca   :  { %v2086_v48 = vmul.f32 %v5780_v43, %v2008_v46  ;;  %v4741_v46 = vld [vmem:[%s9060_s1 + $0x358] sm:$0xff]  ;;  %v4740_v43 = vld [vmem:[%s9060_s1 + $0x350] sm:$0xff] }
 0x4cc   :  { %v2087_v49 = vadd.f32 %v2086_v48, %v2009_v47  ;;  %v4739_v47 = vld [vmem:[%s9060_s1 + $0x348] sm:$0xff]  ;;  %v4738_v48 = vld [vmem:[%s9060_s1 + $0x340] sm:$0xff] }
 0x4ce   :  { %v2088_v50 = vmax.f32 %v2087_v49, 0.0  ;;  %v4737_v49 = vld [vmem:[%s9060_s1 + $0x338] sm:$0xff] }
 0x4d0   :  { %5476 = vmatmul.mubr.f32.vlgmr.msra.gmra.mxu0 %v2088_v50  ;;  %v4736_v50 = vld [vmem:[%s9060_s1 + $0x330] sm:$0xff] }
 0x4d1   :  { %2350 = vmatpush1.msra.mxu0 %v2222_v51  ;;  %2413 = vmatprep.mubr.f32.mxu0 %v5845_v3  ;;  %v4735_v51 = vld [vmem:[%s9060_s1 + $0x328] sm:$0xff] }
 0x4d2   :  { %2351 = vmatprep.subr.mxu0 %v2221_v52  ;;  %v4734_v52 = vld [vmem:[%s9060_s1 + $0x320] sm:$0xff] }
 0x4d3   :  { %2352 = vmatpush1.msra.mxu0 %v2220_v53  ;;  %v4733_v53 = vld [vmem:[%s9060_s1 + $0x318] sm:$0xff] }
 0x4d4   :  { %2353 = vmatprep.subr.mxu0 %v2219_v54  ;;  %v4732_v54 = vld [vmem:[%s9060_s1 + $0x310] sm:$0xff] }
 0x4d5   :  { %2354 = vmatpush1.msra.mxu0 %v2218_v55  ;;  %v4731_v55 = vld [vmem:[%s9060_s1 + $0x308] sm:$0xff] }
 0x4d6   :  { %2355 = vmatprep.subr.mxu0 %v2217_v56  ;;  %v4730_v56 = vld [vmem:[%s9060_s1 + $0x300] sm:$0xff] }
 0x4d7   :  { %2356 = vmatpush1.msra.mxu0 %v2216_v57  ;;  %v4726_v57 = vld [vmem:[%s9061_s0 + $0x23] sm:$0xff] }
 0x4d8   :  { %2357 = vmatprep.subr.mxu0 %v2215_v58  ;;  %v4727_v58 = vld [vmem:[%s9061_s0 + $0x2b] sm:$0xff] }
 0x4d9   :  { %2358 = vmatpush1.msra.mxu0 %v2214_v59  ;;  %v4728_v59 = vld [vmem:[%s9061_s0 + $0x33] sm:$0xff] }
 0x4da   :  { %2359 = vmatprep.subr.mxu0 %v2213_v60  ;;  %v4729_v60 = vld [vmem:[%s9061_s0 + $0x3b] sm:$0xf] }
 0x4db   :  { %2360 = vmatpush1.msra.mxu0 %v2212_v61  ;;  %v3050_v61 = vld [vmem:[%s9062_s2 + $0xf8] sm:$0xff] }
 0x4dc   :  { %2361 = vmatprep.subr.mxu0 %v2211_v62  ;;  %3162 = vmatprep.subr.mxu1 %v3050_v61  ;;  %v3049_v62 = vld [vmem:[%s9062_s2 + $0xf0] sm:$0xff]  ;;  %v3022_v61 = vld [vmem:[%s9062_s2 + $0x18] sm:$0xff] }
 0x4dd   :  { %2362 = vmatpush1.msra.mxu0 %v2210_v0  ;;  %3163 = vmatpush1.msra.mxu1 %v3049_v62  ;;  %v3048_v0 = vld [vmem:[%s9062_s2 + $0xe8] sm:$0xff] }
 0x4de   :  { %2363 = vmatprep.subr.mxu0 %v2209_v63  ;;  %3164 = vmatprep.subr.mxu1 %v3048_v0  ;;  %v3047_v63 = vld [vmem:[%s9062_s2 + $0xe0] sm:$0xff]  ;;  %v4806_v0 = vld [vmem:[%s9062_s2 + $0x130] sm:$0xff] }
 0x4df   :  { %2364 = vmatpush1.msra.mxu0 %v2208_v1  ;;  %3165 = vmatpush1.msra.mxu1 %v3047_v63  ;;  %v4831_v1 = vld [vmem:[%s9062_s2 + $0x1f8] sm:$0xff]  ;;  %v3021_v63 = vld [vmem:[%s9062_s2 + $0x10] sm:$0xff] }
 0x4e0   :  { %2365 = vmatprep.subr.mxu0 %v2207_v2  ;;  %v3046_v2 = vld [vmem:[%s9062_s2 + $0xd8] sm:$0xff] }
 0x4e1   :  { %2366 = vmatpush1.msra.mxu0 %v2206_v5  ;;  %3166 = vmatprep.subr.mxu1 %v3046_v2  ;;  %v4830_v5 = vld [vmem:[%s9062_s2 + $0x1f0] sm:$0xff]  ;;  %v3020_v2 = vld [vmem:[%s9062_s2 + $0x8] sm:$0xff] }
 0x4e2   :  { %2367 = vmatprep.subr.mxu0 %v2205_v7  ;;  %v3045_v7 = vld [vmem:[%s9062_s2 + $0xd0] sm:$0xff] }
 0x4e3   :  { %2368 = vmatpush1.msra.mxu0 %v2204_v8  ;;  %3167 = vmatpush1.msra.mxu1 %v3045_v7  ;;  %v4829_v8 = vld [vmem:[%s9062_s2 + $0x1e8] sm:$0xff]  ;;  %v4804_v7 = vld [vmem:[%s9062_s2 + $0x120] sm:$0xff] }
 0x4e4   :  { %2369 = vmatprep.subr.mxu0 %v2203_v4  ;;  %v3044_v4 = vld [vmem:[%s9062_s2 + $0xc8] sm:$0xff] }
 0x4e5   :  { %2370 = vmatpush1.msra.mxu0 %v2202_v9  ;;  %3168 = vmatprep.subr.mxu1 %v3044_v4  ;;  %v4828_v9 = vld [vmem:[%s9062_s2 + $0x1e0] sm:$0xff] }
 0x4e6   :  { %2371 = vmatprep.subr.mxu0 %v2201_v10  ;;  %v3043_v10 = vld [vmem:[%s9062_s2 + $0xc0] sm:$0xff] }
 0x4e7   :  { %2372 = vmatpush1.msra.mxu0 %v2200_v11  ;;  %3169 = vmatpush1.msra.mxu1 %v3043_v10  ;;  %v4827_v11 = vld [vmem:[%s9062_s2 + $0x1d8] sm:$0xff] }
 0x4e8   :  { %2373 = vmatprep.subr.mxu0 %v2199_v12  ;;  %v3042_v12 = vld [vmem:[%s9062_s2 + $0xb8] sm:$0xff] }
 0x4e9   :  { %2374 = vmatpush1.msra.mxu0 %v2198_v14  ;;  %3170 = vmatprep.subr.mxu1 %v3042_v12  ;;  %v4826_v14 = vld [vmem:[%s9062_s2 + $0x1d0] sm:$0xff]  ;;  %v4895_v10 = vld [vmem:[%s9062_s2 + $0x3f8] sm:$0xff] }
 0x4ea   :  { %2375 = vmatprep.subr.mxu0 %v2197_v15  ;;  %v3041_v15 = vld [vmem:[%s9062_s2 + $0xb0] sm:$0xff] }
 0x4eb   :  { %2376 = vmatpush1.msra.mxu0 %v2196_v6  ;;  %3171 = vmatpush1.msra.mxu1 %v3041_v15  ;;  %v4825_v6 = vld [vmem:[%s9062_s2 + $0x1c8] sm:$0xff]  ;;  %v4800_v15 = vld [vmem:[%s9062_s2 + $0x100] sm:$0xff] }
 0x4ec   :  { %2377 = vmatprep.subr.mxu0 %v2195_v13  ;;  %v3040_v13 = vld [vmem:[%s9062_s2 + $0xa8] sm:$0xff] }
 0x4ed   :  { %2378 = vmatpush1.msra.mxu0 %v2194_v16  ;;  %3172 = vmatprep.subr.mxu1 %v3040_v13  ;;  %v4824_v16 = vld [vmem:[%s9062_s2 + $0x1c0] sm:$0xff]  ;;  %v4863_v13 = vld [vmem:[%s9062_s2 + $0x2f8] sm:$0xff] }
 0x4ee   :  { %2379 = vmatprep.subr.mxu0 %v2193_v17  ;;  %v3039_v17 = vld [vmem:[%s9062_s2 + $0xa0] sm:$0xff] }
 0x4ef   :  { %2380 = vmatpush1.msra.mxu0 %v2192_v18  ;;  %3173 = vmatpush1.msra.mxu1 %v3039_v17  ;;  %v4823_v18 = vld [vmem:[%s9062_s2 + $0x1b8] sm:$0xff] }
 0x4f0   :  { %2414 = vmatmul.mubr.f32.vlgmr.msra.gmra.mxu0 %v4650_v19  ;;  %2607 = vmatprep.subr.mxu0 %v4761_v20  ;;  %v3038_v19 = vld [vmem:[%s9062_s2 + $0x98] sm:$0xff]  ;;  %v4822_v20 = vld [vmem:[%s9062_s2 + $0x1b0] sm:$0xff] }
 0x4f1   :  { %2608 = vmatpush1.msra.mxu0 %v4760_v21  ;;  %2419 = vmatprep.mubr.f32.mxu0 %v5845_v3  ;;  %v3037_v21 = vld [vmem:[%s9062_s2 + $0x90] sm:$0xff] }
 0x4f2   :  { %2609 = vmatprep.subr.mxu0 %v4759_v22  ;;  %3174 = vmatprep.subr.mxu1 %v3038_v19  ;;  %v4821_v22 = vld [vmem:[%s9062_s2 + $0x1a8] sm:$0xff] }
 0x4f3   :  { %2610 = vmatpush1.msra.mxu0 %v4758_v23  ;;  %3175 = vmatpush1.msra.mxu1 %v3037_v21  ;;  %v3036_v23 = vld [vmem:[%s9062_s2 + $0x88] sm:$0xff] }
 0x4f4   :  { %2420 = vmatmul.mubr.f32.gmra.mxu0 %v4651_v24  ;;  %2611 = vmatprep.subr.mxu0 %v4757_v25  ;;  %v4820_v24 = vld [vmem:[%s9062_s2 + $0x1a0] sm:$0xff] }
 0x4f5   :  { %2612 = vmatpush1.msra.mxu0 %v4756_v26  ;;  %2425 = vmatprep.mubr.f32.mxu0 %v5845_v3  ;;  %v3035_v25 = vld [vmem:[%s9062_s2 + $0x80] sm:$0xff]  ;;  %v8117_v26 = vpop.f32.mrf.mxu1 }
 0x4f6   :  { %2613 = vmatprep.subr.mxu0 %v4755_v28  ;;  %3176 = vmatprep.subr.mxu1 %v3036_v23  ;;  %v4819_v28 = vld [vmem:[%s9062_s2 + $0x198] sm:$0xff] }
 0x4f7   :  { %2614 = vmatpush1.msra.mxu0 %v4754_v29  ;;  %3177 = vmatpush1.msra.mxu1 %v3035_v25  ;;  %v3034_v29 = vld [vmem:[%s9062_s2 + $0x78] sm:$0xff] }
 0x4f8   :  { %2426 = vmatmul.mubr.f32.gmra.mxu0 %v4652_v30  ;;  %2615 = vmatprep.subr.mxu0 %v4753_v31  ;;  %v4818_v30 = vld [vmem:[%s9062_s2 + $0x190] sm:$0xff] }
 0x4f9   :  { %2616 = vmatpush1.msra.mxu0 %v4752_v33  ;;  %2431 = vmatprep.mubr.f32.mxu0 %v5845_v3  ;;  %v3033_v31 = vld [vmem:[%s9062_s2 + $0x70] sm:$0xff]  ;;  %v4817_v33 = vld [vmem:[%s9062_s2 + $0x188] sm:$0xff] }
 0x4fa   :  { %2617 = vmatprep.subr.mxu0 %v4751_v34  ;;  %3178 = vmatprep.subr.mxu1 %v3034_v29  ;;  %v3032_v34 = vld [vmem:[%s9062_s2 + $0x68] sm:$0xff] }
 0x4fb   :  { %2618 = vmatpush1.msra.mxu0 %v4750_v35  ;;  %3179 = vmatpush1.msra.mxu1 %v3033_v31  ;;  %v4816_v35 = vld [vmem:[%s9062_s2 + $0x180] sm:$0xff] }
 0x4fc   :  { %2432 = vmatmul.mubr.f32.gmra.mxu0 %v4653_v36  ;;  %2619 = vmatprep.subr.mxu0 %v4749_v38  ;;  %v3031_v36 = vld [vmem:[%s9062_s2 + $0x60] sm:$0xff]  ;;  %v8143_v38 = vpop.f32.mrf.mxu1 }
 0x4fd   :  { %2620 = vmatpush1.msra.mxu0 %v4748_v39  ;;  %2671 = vmatprep.mubr.f32.mxu0 %v5845_v3  ;;  %v4815_v39 = vld [vmem:[%s9062_s2 + $0x178] sm:$0xff] }
 0x4fe   :  { %2621 = vmatprep.subr.mxu0 %v4747_v40  ;;  %3180 = vmatprep.subr.mxu1 %v3032_v34  ;;  %v3030_v40 = vld [vmem:[%s9062_s2 + $0x58] sm:$0xff] }
 0x4ff   :  { %2622 = vmatpush1.msra.mxu0 %v4746_v41  ;;  %3181 = vmatpush1.msra.mxu1 %v3031_v36  ;;  %v4814_v41 = vld [vmem:[%s9062_s2 + $0x170] sm:$0xff] }
 0x500   :  { %2623 = vmatprep.subr.mxu0 %v4745_v42  ;;  %3182 = vmatprep.subr.mxu1 %v3030_v40  ;;  %v3029_v42 = vld [vmem:[%s9062_s2 + $0x50] sm:$0xff] }
 0x501   :  { %2624 = vmatpush1.msra.mxu0 %v4744_v37  ;;  %v2105_v37 = vld [vmem:[%s9070_s10] sm:$0x1]  ;;  %3183 = vmatpush1.msra.mxu1 %v3029_v42 }
 0x502   :  { %2625 = vmatprep.subr.mxu0 %v4743_v44  ;;  %v8160_v44 = vpop.f32.mrf.mxu1 }
 0x503   :  { %2626 = vmatpush1.msra.mxu0 %v4742_v45  ;;  %v4813_v45 = vld [vmem:[%s9062_s2 + $0x168] sm:$0xff] }
 0x504   :  { %2627 = vmatprep.subr.mxu0 %v4741_v46  ;;  %v3028_v46 = vld [vmem:[%s9062_s2 + $0x48] sm:$0xff] }
 0x505   :  { %2628 = vmatpush1.msra.mxu0 %v4740_v43  ;;  %3184 = vmatprep.subr.mxu1 %v3028_v46  ;;  %v4812_v43 = vld [vmem:[%s9062_s2 + $0x160] sm:$0xff] }
 0x506   :  { %2629 = vmatprep.subr.mxu0 %v4739_v47  ;;  %v3027_v47 = vld [vmem:[%s9062_s2 + $0x40] sm:$0xff] }
 0x507   :  { %2630 = vmatpush1.msra.mxu0 %v4738_v48  ;;  %v4811_v48 = vld [vmem:[%s9062_s2 + $0x158] sm:$0xff]  ;;  %3185 = vmatpush1.msra.mxu1 %v3027_v47  ;;  %v2837_v47 = vld [vmem:[%s9063_s6] ss:$4 sm:$0x3] }
 0x508   :  { %2631 = vmatprep.subr.mxu0 %v4737_v49 }
 0x509   :  { %2632 = vmatpush1.msra.mxu0 %v4736_v50  ;;  %v3026_v50 = vld [vmem:[%s9062_s2 + $0x38] sm:$0xff] }
 0x50a   :  { %2633 = vmatprep.subr.mxu0 %v4735_v51  ;;  %v4810_v51 = vld [vmem:[%s9062_s2 + $0x150] sm:$0xff]  ;;  %3186 = vmatprep.subr.mxu1 %v3026_v50 }
 0x50b   :  { %2634 = vmatpush1.msra.mxu0 %v4734_v52  ;;  %v3025_v52 = vld [vmem:[%s9062_s2 + $0x30] sm:$0xff] }
 0x50c   :  { %2635 = vmatprep.subr.mxu0 %v4733_v53  ;;  %3187 = vmatpush1.msra.mxu1 %v3025_v52 }
 0x50d   :  { %2636 = vmatpush1.msra.mxu0 %v4732_v54  ;;  %v4809_v54 = vld [vmem:[%s9062_s2 + $0x148] sm:$0xff] }
 0x50e   :  { %2637 = vmatprep.subr.mxu0 %v4731_v55  ;;  %v3024_v55 = vld [vmem:[%s9062_s2 + $0x28] sm:$0xff] }
 0x50f   :  { %2638 = vmatpush1.msra.mxu0 %v4730_v56  ;;  %v4808_v56 = vld [vmem:[%s9062_s2 + $0x140] sm:$0xff]  ;;  %3188 = vmatprep.subr.mxu1 %v3024_v55  ;;  %v2844_v55 = vrot.slane %v2837_v47, %v6667_v27 }
 0x510   :  { %2672 = vmatmul.mubr.f32.vlgmr.msra.gmra.mxu0 %v4726_v57  ;;  %3085 = vmatprep.subr.mxu0 %v4831_v1  ;;  %v4805_v1 = vld [vmem:[%s9062_s2 + $0x128] sm:$0xff] }
 0x511   :  { %2677 = vmatprep.mubr.f32.mxu0 %v5845_v3  ;;  %3086 = vmatpush1.msra.mxu0 %v4830_v5 }
 0x512   :  { %3087 = vmatprep.subr.mxu0 %v4829_v8  ;;  %v3019_v8 = vld [vmem:[%s9062_s2] sm:$0xff] }
 0x513   :  { %3088 = vmatpush1.msra.mxu0 %v4828_v9  ;;  %v4803_v9 = vld [vmem:[%s9062_s2 + $0x118] sm:$0xff] }
 0x514   :  { %2678 = vmatmul.mubr.f32.gmra.mxu0 %v4727_v58  ;;  %3089 = vmatprep.subr.mxu0 %v4827_v11  ;;  %v8195_v58 = vpop.f32.mrf.mxu1  ;;  %v4802_v11 = vld [vmem:[%s9062_s2 + $0x110] sm:$0xff] }
 0x515   :  { %2683 = vmatprep.mubr.f32.mxu0 %v5845_v3  ;;  %3090 = vmatpush1.msra.mxu0 %v4826_v14  ;;  %v4801_v14 = vld [vmem:[%s9062_s2 + $0x108] sm:$0xff] }
 0x516   :  { %3091 = vmatprep.subr.mxu0 %v4825_v6  ;;  %v8224_v4 = vpop.f32.mrf.mxu1 }
 0x517   :  { %3092 = vmatpush1.msra.mxu0 %v4824_v16 }
 0x518   :  { %2684 = vmatmul.mubr.f32.gmra.mxu0 %v4728_v59  ;;  %3093 = vmatprep.subr.mxu0 %v4823_v18  ;;  %v3023_v59 = vld [vmem:[%s9062_s2 + $0x20] sm:$0xff]  ;;  %v2340_v12 = vpop.f32.mrf.mxu1 }
 0x519   :  { %2689 = vmatprep.mubr.f32.mxu0 %v5845_v3  ;;  %3094 = vmatpush1.msra.mxu0 %v4822_v20 }
 0x51a   :  { %3095 = vmatprep.subr.mxu0 %v4821_v22  ;;  %3189 = vmatpush1.msra.mxu1 %v3023_v59  ;;  %v2344_v6 = vpop.f32.mrf.mxu1  ;;  %v2848_v59 = vrot.slane %v2837_v47, %v6672_v32 }
 0x51b   :  { %3096 = vmatpush1.msra.mxu0 %v4820_v24  ;;  %3190 = vmatprep.subr.mxu1 %v3022_v61 }
 0x51c   :  { %2690 = vmatmul.mubr.f32.gmra.mxu0 %v4729_v60  ;;  %3097 = vmatprep.subr.mxu0 %v4819_v28  ;;  %v4807_v60 = vld [vmem:[%s9062_s2 + $0x138] sm:$0xff]  ;;  %v2346_v16 = vpop.f32.mrf.mxu1 }
 0x51d   :  { %3149 = vmatprep.mubr.f32.mxu0 %v5845_v3  ;;  %3098 = vmatpush1.msra.mxu0 %v4818_v30 }
 0x51e   :  { %3099 = vmatprep.subr.mxu0 %v4817_v33  ;;  %3191 = vmatpush1.msra.mxu1 %v3021_v63  ;;  %v2540_v19 = vpop.f32.mrf.mxu1 }
 0x51f   :  { %3100 = vmatpush1.msra.mxu0 %v4816_v35  ;;  %3192 = vmatprep.subr.mxu1 %v3020_v2 }
 0x520   :  { %3101 = vmatprep.subr.mxu0 %v4815_v39  ;;  %3193 = vmatpush1.msra.mxu1 %v3019_v8  ;;  %v2542_v20 = vpop.f32.mrf.mxu1 }
 0x521   :  { %3102 = vmatpush1.msra.mxu0 %v4814_v41  ;;  %3388 = vmatprep.subr.mxu1 %v4895_v10 }
 0x522   :  { %3103 = vmatprep.subr.mxu0 %v4813_v45  ;;  %v2546_v21 = vpop.f32.mrf.mxu1 }
 0x523   :  { %3104 = vmatpush1.msra.mxu0 %v4812_v43 }
 0x524   :  { %3105 = vmatprep.subr.mxu0 %v4811_v48  ;;  %v2548_v23 = vpop.f32.mrf.mxu1 }
 0x525   :  { %3106 = vmatpush1.msra.mxu0 %v4810_v51 }
 0x526   :  { %3107 = vmatprep.subr.mxu0 %v4809_v54  ;;  %v2552_v29 = vpop.f32.mrf.mxu1 }
 0x527   :  { %3108 = vmatpush1.msra.mxu0 %v4808_v56 }
 0x528   :  { %3109 = vmatprep.subr.mxu0 %v4807_v60  ;;  %v2554_v31 = vpop.f32.mrf.mxu1 }
 0x529   :  { %3110 = vmatpush1.msra.mxu0 %v4806_v0 }
 0x52a   :  { %3111 = vmatprep.subr.mxu0 %v4805_v1  ;;  %v2558_v34 = vpop.f32.mrf.mxu1 }
 0x52b   :  { %3112 = vmatpush1.msra.mxu0 %v4804_v7 }
 0x52c   :  { %3113 = vmatprep.subr.mxu0 %v4803_v9  ;;  %v2560_v36 = vpop.f32.mrf.mxu1 }
 0x52d   :  { %3114 = vmatpush1.msra.mxu0 %v4802_v11 }
 0x52e   :  { %3115 = vmatprep.subr.mxu0 %v4801_v14  ;;  %v2806_v39 = vpop.f32.mrf.mxu1 }
 0x52f   :  { %3116 = vmatpush1.msra.mxu0 %v4800_v15 }
 0x530   :  { %3273 = vmatprep.subr.mxu0 %v4863_v13  ;;  %v2808_v41 = vpop.f32.mrf.mxu1 }
 0x532   :  { %v2812_v45 = vpop.f32.mrf.mxu1 }
 0x534   :  { %v2814_v51 = vpop.f32.mrf.mxu1 }
 0x590   :  { %v2172_v49 = vpop.f32.mrf.mxu0 }
 0x591   :  { %v2173_v53 = vadd.f32 %v2172_v49, %v2105_v37 }
 0x592   :  { %v5477_v57 = vpop.f32.mrf.mxu0 }
 0x593   :  { %v2176_v62 = vsub.f32 0.0, %v2173_v53 }
 0x595   :  { %v2177_v5 = vmul.f32 1.442695, %v2176_v62  ;;  %v2818_v62 = vpop.f32.mrf.mxu1 }
 0x597   :  { %5781 = vpow2.f32 %v2177_v5  ;;  %v2820_v13 = vpop.f32.mrf.mxu1 }
 0x5a4   :  { %v5782_v17 = vpop.eup %5781 }
 0x5a5   :  { %v2179_v18 = vadd.f32 1.0, %v5782_v17 }
 0x5a7   :  { %5783 = vrcp.f32 %v2179_v18 }
 0x5b0   :  { %v2415_v22 = vpop.f32.mrf.mxu0 }
 0x5b1   :  { %v2416_v37 = vadd.f32 %v2415_v22, %v8117_v26 }
 0x5b2   :  { %v2417_v28 = vpop.f32.mrf.mxu0 }
 0x5b3   :  { %v2418_v46 = vadd.f32 %v2417_v28, %v8143_v38  ;;  %v2563_v48 = vadd.f32 %v2540_v19, %v2416_v37 }
 0x5b4   :  { %v5784_v24 = vpop.eup %5783  ;;  %v2421_v30 = vpop.f32.mrf.mxu0 }
 0x5b5   :  { %v2185_v25 = vrot.slane %v5784_v24, %v6667_v27  ;;  %v2422_v49 = vadd.f32 %v2421_v30, %v8160_v44  ;;  %v2564_v52 = vadd.f32 %v2542_v20, %v2418_v46  ;;  %v2824_v24 = vpop.f32.mrf.mxu1 }
 0x5b6   :  { %v2423_v33 = vpop.f32.mrf.mxu0 }
 0x5b7   :  { %2186 = vst [vmem:[%s9071_s11] sm:$0xff] %v2185_v25  ;;  %v2424_v53 = vadd.f32 %v2423_v33, %v8195_v58  ;;  %v2565_v56 = vadd.f32 %v2546_v21, %v2422_v49 }
 0x5b8   :  { %v2427_v35 = vpop.f32.mrf.mxu0 }
 0x5b9   :  { %v2428_v60 = vadd.f32 %v2427_v35, %v8224_v4  ;;  %v2566_v0 = vadd.f32 %v2548_v23, %v2424_v53 }
 0x5ba   :  { %v2429_v40 = vpop.f32.mrf.mxu0 }
 0x5bb   :  { %v2430_v2 = vadd.f32 %v2429_v40, %v2340_v12  ;;  %v2567_v11 = vadd.f32 %v2552_v29, %v2428_v60 }
 0x5bc   :  { %v2433_v42 = vpop.f32.mrf.mxu0 }
 0x5bd   :  { %v2434_v5 = vadd.f32 %v2433_v42, %v2344_v6  ;;  %v2568_v20 = vadd.f32 %v2554_v31, %v2430_v2  ;;  %v2826_v31 = vpop.f32.mrf.mxu1 }
 0x5be   :  { %v2435_v43 = vpop.f32.mrf.mxu0 }
 0x5bf   :  { %v2436_v14 = vadd.f32 %v2435_v43, %v2346_v16  ;;  %v2569_v21 = vadd.f32 %v2558_v34, %v2434_v5  ;;  %v4799_v5 = vld [vmem:[%s9063_s6 + $0x2] ss:$4 sm:$0x3] }
 0x5c1   :  { %v2570_v28 = vadd.f32 %v2560_v36, %v2436_v14 }
 0x5d0   :  { %v2673_v50 = vpop.f32.mrf.mxu0 }
 0x5d1   :  { %v2696_v54 = vadd.f32 %v2673_v50, %v2563_v48 }
 0x5d2   :  { %v2675_v26 = vpop.f32.mrf.mxu0 }
 0x5d3   :  { %v2829_v57 = vadd.f32 %v2806_v39, %v2696_v54  ;;  %v2697_v38 = vadd.f32 %v2675_v26, %v2564_v52 }
 0x5d4   :  { %v2679_v61 = vpop.f32.mrf.mxu0 }
 0x5d5   :  { %v2851_v44 = vadd.f32 %v2844_v55, %v2829_v57  ;;  %v2830_v63 = vadd.f32 %v2808_v41, %v2697_v38  ;;  %v2698_v1 = vadd.f32 %v2679_v61, %v2565_v56 }
 0x5d6   :  { %v2681_v58 = vpop.f32.mrf.mxu0 }
 0x5d7   :  { %v2859_v7 = vsub.f32 0.0, %v2851_v44  ;;  %v2852_v8 = vadd.f32 %v2848_v59, %v2830_v63  ;;  %v2831_v9 = vadd.f32 %v2812_v45, %v2698_v1  ;;  %v2699_v10 = vadd.f32 %v2681_v58, %v2566_v0  ;;  %v4798_v44 = vld [vmem:[%s9063_s6 + $0x1] ss:$4 sm:$0x3] }
 0x5d8   :  { %v2685_v15 = vpop.f32.mrf.mxu0 }
 0x5d9   :  { %v2867_v17 = vmul.f32 1.442695, %v2859_v7  ;;  %v2860_v18 = vsub.f32 0.0, %v2852_v8  ;;  %v2853_v4 = vadd.f32 %v2844_v55, %v2831_v9  ;;  %v2832_v19 = vadd.f32 %v2814_v51, %v2699_v10 }
 0x5da   :  { %v2700_v22 = vadd.f32 %v2685_v15, %v2567_v11  ;;  %v2687_v23 = vpop.f32.mrf.mxu0  ;;  %v2911_v7 = vrot.slane %v4798_v44, %v6667_v27  ;;  %v2930_v10 = vrot.slane %v4799_v5, %v6667_v27  ;;  %v2915_v11 = vrot.slane %v4798_v44, %v6672_v32 }
 0x5db   :  { %5785 = vpow2.f32 %v2867_v17  ;;  %v2869_v12 = vmul.f32 1.442695, %v2860_v18  ;;  %v2861_v6 = vsub.f32 0.0, %v2853_v4  ;;  %v2854_v25 = vadd.f32 %v2848_v59, %v2832_v19 }
 0x5dc   :  { %v2833_v30 = vadd.f32 %v2818_v62, %v2700_v22  ;;  %v2701_v33 = vadd.f32 %v2687_v23, %v2568_v20  ;;  %v2691_v29 = vpop.f32.mrf.mxu0 }
 0x5dd   :  { %5787 = vpow2.f32 %v2869_v12  ;;  %v2871_v16 = vmul.f32 1.442695, %v2861_v6  ;;  %v2862_v35 = vsub.f32 0.0, %v2854_v25  ;;  %v2702_v39 = vadd.f32 %v2691_v29, %v2569_v21 }
 0x5de   :  { %v2855_v40 = vadd.f32 %v2844_v55, %v2833_v30  ;;  %v2834_v41 = vadd.f32 %v2820_v13, %v2701_v33  ;;  %v2693_v42 = vpop.f32.mrf.mxu0  ;;  %v2934_v13 = vrot.slane %v4799_v5, %v6672_v32 }
 0x5df   :  { %5789 = vpow2.f32 %v2871_v16  ;;  %v2873_v34 = vmul.f32 1.442695, %v2862_v35  ;;  %v2703_v37 = vadd.f32 %v2693_v42, %v2570_v28  ;;  %v2835_v45 = vadd.f32 %v2824_v24, %v2702_v39 }
 0x5e0   :  { %v2863_v46 = vsub.f32 0.0, %v2855_v40  ;;  %v2856_v43 = vadd.f32 %v2848_v59, %v2834_v41 }
 0x5e1   :  { %5791 = vpow2.f32 %v2873_v34  ;;  %v2857_v47 = vadd.f32 %v2844_v55, %v2835_v45  ;;  %v2836_v36 = vadd.f32 %v2826_v31, %v2703_v37 }
 0x5e2   :  { %v2875_v48 = vmul.f32 1.442695, %v2863_v46  ;;  %v2864_v49 = vsub.f32 0.0, %v2856_v43 }
 0x5e3   :  { %v2865_v50 = vsub.f32 0.0, %v2857_v47  ;;  %v2858_v51 = vadd.f32 %v2848_v59, %v2836_v36 }
 0x5e4   :  { %5793 = vpow2.f32 %v2875_v48  ;;  %v2877_v52 = vmul.f32 1.442695, %v2864_v49 }
 0x5e5   :  { %v2879_v53 = vmul.f32 1.442695, %v2865_v50  ;;  %v2866_v54 = vsub.f32 0.0, %v2858_v51 }
 0x5e6   :  { %5795 = vpow2.f32 %v2877_v52 }
 0x5e7   :  { %5797 = vpow2.f32 %v2879_v53  ;;  %v2881_v26 = vmul.f32 1.442695, %v2866_v54 }
 0x5e8   :  { %v5786_v56 = vpop.eup %5785 }
 0x5e9   :  { %v2883_v57 = vadd.f32 1.0, %v5786_v56  ;;  %5799 = vpow2.f32 %v2881_v26 }
 0x5ea   :  { %v5788_v38 = vpop.eup %5787 }
 0x5eb   :  { %5801 = vrcp.f32 %v2883_v57  ;;  %v2884_v60 = vadd.f32 1.0, %v5788_v38 }
 0x5ec   :  { %v5790_v61 = vpop.eup %5789 }
 0x5ed   :  { %5803 = vrcp.f32 %v2884_v60  ;;  %v2885_v55 = vadd.f32 1.0, %v5790_v61 }
 0x5ee   :  { %v5792_v62 = vpop.eup %5791 }
 0x5ef   :  { %5805 = vrcp.f32 %v2885_v55  ;;  %v2886_v0 = vadd.f32 1.0, %v5792_v62 }
 0x5f1   :  { %v5794_v59 = vpop.eup %5793  ;;  %5807 = vrcp.f32 %v2886_v0 }
 0x5f2   :  { %v2887_v63 = vadd.f32 1.0, %v5794_v59 }
 0x5f3   :  { %v5796_v1 = vpop.eup %5795 }
 0x5f4   :  { %v5798_v2 = vpop.eup %5797  ;;  %5809 = vrcp.f32 %v2887_v63  ;;  %v2888_v58 = vadd.f32 1.0, %v5796_v1 }
 0x5f5   :  { %v2889_v8 = vadd.f32 1.0, %v5798_v2 }
 0x5f6   :  { %v5800_v9 = vpop.eup %5799  ;;  %5811 = vrcp.f32 %v2888_v58 }
 0x5f7   :  { %5813 = vrcp.f32 %v2889_v8  ;;  %v2890_v14 = vadd.f32 1.0, %v5800_v9 }
 0x5f8   :  { %v5802_v15 = vpop.eup %5801 }
 0x5f9   :  { %v2918_v17 = vmul.f32 %v5802_v15, %v2911_v7  ;;  %5815 = vrcp.f32 %v2890_v14 }
 0x5fa   :  { %v5804_v18 = vpop.eup %5803 }
 0x5fb   :  { %v2937_v4 = vadd.f32 %v2930_v10, %v2918_v17  ;;  %v2919_v19 = vmul.f32 %v5804_v18, %v2915_v11 }
 0x5fc   :  { %v5806_v20 = vpop.eup %5805 }
 0x5fd   :  { %v2938_v21 = vadd.f32 %v2934_v13, %v2919_v19  ;;  %v2920_v22 = vmul.f32 %v5806_v20, %v2911_v7  ;;  %v2945_v24 = vmax.f32 %v2937_v4, 0.0 }
 0x5fe   :  { %v5808_v23 = vpop.eup %5807 }
 0x5ff   :  { %v2946_v12 = vmax.f32 %v2938_v21, 0.0  ;;  %v2939_v6 = vadd.f32 %v2930_v10, %v2920_v22  ;;  %v2921_v25 = vmul.f32 %v5808_v23, %v2915_v11 }
 0x601   :  { %v5810_v28 = vpop.eup %5809  ;;  %v2953_v30 = vmax.f32 %v2945_v24, %v2946_v12  ;;  %v2940_v33 = vadd.f32 %v2934_v13, %v2921_v25  ;;  %v2947_v35 = vmax.f32 %v2939_v6, 0.0 }
 0x602   :  { %v2922_v29 = vmul.f32 %v5810_v28, %v2911_v7 }
 0x603   :  { %v5812_v16 = vpop.eup %5811  ;;  %2957 = vst [vmem:[#allocation2] sm:$0xff] %v2953_v30  ;;  %v2948_v39 = vmax.f32 %v2940_v33, 0.0 }
 0x604   :  { %v5814_v40 = vpop.eup %5813  ;;  %v2941_v41 = vadd.f32 %v2930_v10, %v2922_v29  ;;  %v2923_v42 = vmul.f32 %v5812_v16, %v2915_v11  ;;  %v4894_v16 = vld [vmem:[%s9062_s2 + $0x3f0] sm:$0xff] }
 0x605   :  { %v2954_v31 = vmax.f32 %v2947_v35, %v2948_v39  ;;  %v2924_v34 = vmul.f32 %v5814_v40, %v2911_v7  ;;  %v4893_v39 = vld [vmem:[%s9062_s2 + $0x3e8] sm:$0xff]  ;;  %v4892_v40 = vld [vmem:[%s9062_s2 + $0x3e0] sm:$0xff] }
 0x606   :  { %v5816_v37 = vpop.eup %5815  ;;  %v2942_v45 = vadd.f32 %v2934_v13, %v2923_v42  ;;  %v2949_v47 = vmax.f32 %v2941_v41, 0.0  ;;  %v4891_v41 = vld [vmem:[%s9062_s2 + $0x3d8] sm:$0xff] }
 0x607   :  { %2958 = vst [vmem:[#allocation2 + $0x8] sm:$0xff] %v2954_v31  ;;  %v2943_v46 = vadd.f32 %v2930_v10, %v2924_v34  ;;  %v2925_v43 = vmul.f32 %v5816_v37, %v2915_v11  ;;  %v4862_v31 = vld [vmem:[%s9062_s2 + $0x2f0] sm:$0xff] }
 0x608   :  { %v2950_v36 = vmax.f32 %v2942_v45, 0.0  ;;  %v4890_v34 = vld [vmem:[%s9062_s2 + $0x3d0] sm:$0xff]  ;;  %v4861_v45 = vld [vmem:[%s9062_s2 + $0x2e8] sm:$0xff] }
 0x609   :  { %v2944_v48 = vadd.f32 %v2934_v13, %v2925_v43  ;;  %v2951_v53 = vmax.f32 %v2943_v46, 0.0  ;;  %v4889_v46 = vld [vmem:[%s9062_s2 + $0x3c8] sm:$0xff]  ;;  %v4860_v43 = vld [vmem:[%s9062_s2 + $0x2e0] sm:$0xff] }
 0x60a   :  { %v2955_v49 = vmax.f32 %v2949_v47, %v2950_v36  ;;  %v2961_v50 = vld [vmem:[#allocation2] sm:$0x1]  ;;  %v2962_v51 = vld [vmem:[#allocation2 + $0x1] sm:$0x1]  ;;  %v2965_v52 = vld [vmem:[#allocation2 + $0x2] sm:$0x1] }
 0x60b   :  { %v2952_v54 = vmax.f32 %v2944_v48, 0.0  ;;  %v2963_v26 = vmax.f32 %v2961_v50, %v2962_v51  ;;  %v2966_v56 = vld [vmem:[#allocation2 + $0x3] sm:$0x1]  ;;  %v2969_v57 = vld [vmem:[#allocation2 + $0x4] sm:$0x1]  ;;  %v4859_v36 = vld [vmem:[%s9062_s2 + $0x2d8] sm:$0xff] }
 0x60c   :  { %2959 = vst [vmem:[#allocation2 + $0x10] sm:$0xff] %v2955_v49  ;;  %v2967_v38 = vmax.f32 %v2965_v52, %v2966_v56  ;;  %v2970_v60 = vld [vmem:[#allocation2 + $0x5] sm:$0x1]  ;;  %v2973_v61 = vld [vmem:[#allocation2 + $0x6] sm:$0x1]  ;;  %v4887_v48 = vld [vmem:[%s9062_s2 + $0x3b8] sm:$0xff] }
 0x60d   :  { %v2974_v55 = vld [vmem:[#allocation2 + $0x7] sm:$0x1]  ;;  %v2956_v62 = vmax.f32 %v2951_v53, %v2952_v54  ;;  %2964 = vst [vmem:[#allocation3] sm:$0x1] %v2963_v26  ;;  %v2971_v0 = vmax.f32 %v2969_v57, %v2970_v60  ;;  %v4858_v49 = vld [vmem:[%s9062_s2 + $0x2d0] sm:$0xff]  ;;  %v4857_v52 = vld [vmem:[%s9062_s2 + $0x2c8] sm:$0xff] }
 0x60e   :  { %v2975_v59 = vmax.f32 %v2973_v61, %v2974_v55  ;;  %2968 = vst [vmem:[#allocation3 + $0x1] sm:$0x1] %v2967_v38  ;;  %v2977_v44 = vld [vmem:[#allocation2 + $0x8] sm:$0x1]  ;;  %v2978_v63 = vld [vmem:[#allocation2 + $0x9] sm:$0x1] }
 0x60f   :  { %v2981_v1 = vld [vmem:[#allocation2 + $0xa] sm:$0x1]  ;;  %2960 = vst [vmem:[#allocation2 + $0x18] sm:$0xf] %v2956_v62  ;;  %2972 = vst [vmem:[#allocation3 + $0x2] sm:$0x1] %v2971_v0  ;;  %v2979_v2 = vmax.f32 %v2977_v44, %v2978_v63 }
 0x610   :  { %2976 = vst [vmem:[#allocation3 + $0x3] sm:$0x1] %v2975_v59  ;;  %v2982_v5 = vld [vmem:[#allocation2 + $0xb] sm:$0x1]  ;;  %v2985_v58 = vld [vmem:[#allocation2 + $0xc] sm:$0x1] }
 0x611   :  { %v2986_v7 = vld [vmem:[#allocation2 + $0xd] sm:$0x1]  ;;  %v2983_v8 = vmax.f32 %v2981_v1, %v2982_v5  ;;  %v2989_v10 = vld [vmem:[#allocation2 + $0xe] sm:$0x1]  ;;  %v2990_v11 = vld [vmem:[#allocation2 + $0xf] sm:$0x1] }
 0x612   :  { %v2987_v9 = vmax.f32 %v2985_v58, %v2986_v7  ;;  %2980 = vst [vmem:[#allocation3 + $0x4] sm:$0x1] %v2979_v2  ;;  %v2991_v14 = vmax.f32 %v2989_v10, %v2990_v11  ;;  %v4888_v47 = vld [vmem:[%s9062_s2 + $0x3c0] sm:$0xff]  ;;  %v4886_v50 = vld [vmem:[%s9062_s2 + $0x3b0] sm:$0xff]  ;;  %v4885_v53 = vld [vmem:[%s9062_s2 + $0x3a8] sm:$0xff] }
 0x613   :  { %2984 = vst [vmem:[#allocation3 + $0x5] sm:$0x1] %v2983_v8  ;;  %v2993_v15 = vld [vmem:[#allocation2 + $0x10] sm:$0x1]  ;;  %v2994_v13 = vld [vmem:[#allocation2 + $0x11] sm:$0x1] }
 0x614   :  { %2988 = vst [vmem:[#allocation3 + $0x6] sm:$0x1] %v2987_v9  ;;  %2992 = vst [vmem:[#allocation3 + $0x7] sm:$0x1] %v2991_v14  ;;  %v2997_v17 = vld [vmem:[#allocation2 + $0x12] sm:$0x1]  ;;  %v2995_v18 = vmax.f32 %v2993_v15, %v2994_v13 }
 0x615   :  { %v2998_v4 = vld [vmem:[#allocation2 + $0x13] sm:$0x1]  ;;  %v3001_v19 = vld [vmem:[#allocation2 + $0x14] sm:$0x1]  ;;  %v3002_v20 = vld [vmem:[#allocation2 + $0x15] sm:$0x1] }
 0x616   :  { %v2999_v21 = vmax.f32 %v2997_v17, %v2998_v4  ;;  %v3003_v22 = vmax.f32 %v3001_v19, %v3002_v20  ;;  %v3005_v23 = vld [vmem:[#allocation2 + $0x16] sm:$0x1]  ;;  %v3006_v24 = vld [vmem:[#allocation2 + $0x17] sm:$0x1]  ;;  %2996 = vst [vmem:[#allocation3 + $0x8] sm:$0x1] %v2995_v18 }
 0x617   :  { %v3007_v12 = vmax.f32 %v3005_v23, %v3006_v24  ;;  %v3009_v6 = vld [vmem:[#allocation2 + $0x18] sm:$0x1]  ;;  %v3010_v25 = vld [vmem:[#allocation2 + $0x19] sm:$0x1]  ;;  %v3013_v28 = vld [vmem:[#allocation2 + $0x1a] sm:$0x1] }
 0x618   :  { %3000 = vst [vmem:[#allocation3 + $0x9] sm:$0x1] %v2999_v21  ;;  %3004 = vst [vmem:[#allocation3 + $0xa] sm:$0x1] %v3003_v22  ;;  %v3011_v30 = vmax.f32 %v3009_v6, %v3010_v25  ;;  %v3014_v33 = vld [vmem:[#allocation2 + $0x1b] sm:$0x1] }
 0x619   :  { %3008 = vst [vmem:[#allocation3 + $0xb] sm:$0x1] %v3007_v12  ;;  %v3015_v29 = vmax.f32 %v3013_v28, %v3014_v33  ;;  %v4856_v54 = vld [vmem:[%s9062_s2 + $0x2c0] sm:$0xff]  ;;  %v4855_v56 = vld [vmem:[%s9062_s2 + $0x2b8] sm:$0xff]  ;;  %v4854_v38 = vld [vmem:[%s9062_s2 + $0x2b0] sm:$0xff] }
 0x61a   :  { %3012 = vst [vmem:[#allocation3 + $0xc] sm:$0x1] %v3011_v30  ;;  %v4884_v26 = vld [vmem:[%s9062_s2 + $0x3a0] sm:$0xff]  ;;  %v4883_v57 = vld [vmem:[%s9062_s2 + $0x398] sm:$0xff]  ;;  %v4882_v60 = vld [vmem:[%s9062_s2 + $0x390] sm:$0xff] }
 0x61b   :  { %v3017_v35 = vld [vmem:[#allocation3] sm:$0xff]  ;;  %3016 = vst [vmem:[#allocation3 + $0xd] sm:$0x1] %v3015_v29  ;;  %v4853_v61 = vld [vmem:[%s9062_s2 + $0x2a8] sm:$0xff]  ;;  %v4851_v59 = vld [vmem:[%s9062_s2 + $0x298] sm:$0xff] }
 0x61c   :  { %3227 = vmatmul.mubr.f32.vlgmr.msra.gmra.mxu1 %v3017_v35  ;;  %v4881_v55 = vld [vmem:[%s9062_s2 + $0x388] sm:$0xff]  ;;  %v4852_v62 = vld [vmem:[%s9062_s2 + $0x2a0] sm:$0xff]  ;;  %v4879_v44 = vld [vmem:[%s9062_s2 + $0x378] sm:$0xff] }
 0x61d   :  { %3389 = vmatpush1.msra.mxu1 %v4894_v16  ;;  %3232 = vmatprep.mubr.f32.mxu1 %v5845_v3  ;;  %v3051_v42 = vld [vmem:[#allocation3 + $0x1] sm:$0xff]  ;;  %v4850_v63 = vld [vmem:[%s9062_s2 + $0x290] sm:$0xff]  ;;  %v4847_v8 = vld [vmem:[%s9062_s2 + $0x278] sm:$0xff] }
 0x61e   :  { %3390 = vmatprep.subr.mxu1 %v4893_v39  ;;  %3150 = vmatmul.mubr.f32.vlgmr.msra.gmra.mxu0 %v3051_v42  ;;  %v4880_v0 = vld [vmem:[%s9062_s2 + $0x380] sm:$0xff]  ;;  %v4878_v1 = vld [vmem:[%s9062_s2 + $0x370] sm:$0xff]  ;;  %v4849_v2 = vld [vmem:[%s9062_s2 + $0x288] sm:$0xff] }
 0x61f   :  { %3391 = vmatpush1.msra.mxu1 %v4892_v40  ;;  %v3018_v37 = vld [vmem:[#allocation3 + $0x8] sm:$0x3]  ;;  %3274 = vmatpush1.msra.mxu0 %v4862_v31  ;;  %v4848_v58 = vld [vmem:[%s9062_s2 + $0x280] sm:$0xff]  ;;  %v4875_v9 = vld [vmem:[%s9062_s2 + $0x358] sm:$0xff] }
 0x620   :  { %3392 = vmatprep.subr.mxu1 %v4891_v41  ;;  %3233 = vmatmul.mubr.f32.gmra.mxu1 %v3018_v37  ;;  %v3052_v51 = vld [vmem:[#allocation3 + $0x9] sm:$0x3]  ;;  %v4876_v7 = vld [vmem:[%s9062_s2 + $0x360] sm:$0xff]  ;;  %v4846_v10 = vld [vmem:[%s9062_s2 + $0x270] sm:$0xff] }
 0x621   :  { %3393 = vmatpush1.msra.mxu1 %v4890_v34  ;;  %3275 = vmatprep.subr.mxu0 %v4861_v45  ;;  %v4877_v5 = vld [vmem:[%s9062_s2 + $0x368] sm:$0xff]  ;;  %v4874_v11 = vld [vmem:[%s9062_s2 + $0x350] sm:$0xff]  ;;  %v4844_v13 = vld [vmem:[%s9062_s2 + $0x260] sm:$0xff] }
 0x622   :  { %3394 = vmatprep.subr.mxu1 %v4889_v46  ;;  %3276 = vmatpush1.msra.mxu0 %v4860_v43  ;;  %v4845_v14 = vld [vmem:[%s9062_s2 + $0x268] sm:$0xff]  ;;  %v4872_v17 = vld [vmem:[%s9062_s2 + $0x340] sm:$0xff]  ;;  %v4843_v18 = vld [vmem:[%s9062_s2 + $0x258] sm:$0xff] }
 0x623   :  { %3395 = vmatpush1.msra.mxu1 %v4888_v47  ;;  %3155 = vmatprep.mubr.f32.mxu0 %v5845_v3  ;;  %v4873_v15 = vld [vmem:[%s9062_s2 + $0x348] sm:$0xff]  ;;  %v4871_v4 = vld [vmem:[%s9062_s2 + $0x338] sm:$0xff]  ;;  %v4842_v19 = vld [vmem:[%s9062_s2 + $0x250] sm:$0xff] }
 0x624   :  { %3277 = vmatprep.subr.mxu0 %v4859_v36  ;;  %3396 = vmatprep.subr.mxu1 %v4887_v48  ;;  %v4870_v20 = vld [vmem:[%s9062_s2 + $0x330] sm:$0xff]  ;;  %v4841_v21 = vld [vmem:[%s9062_s2 + $0x248] sm:$0xff]  ;;  %v4840_v23 = vld [vmem:[%s9062_s2 + $0x240] sm:$0xff] }
 0x625   :  { %3156 = vmatmul.mubr.f32.gmra.mxu0 %v3052_v51  ;;  %3397 = vmatpush1.msra.mxu1 %v4886_v50  ;;  %v4869_v22 = vld [vmem:[%s9062_s2 + $0x328] sm:$0xff]  ;;  %v4868_v24 = vld [vmem:[%s9062_s2 + $0x320] sm:$0xff]  ;;  %v4839_v12 = vld [vmem:[%s9062_s2 + $0x238] sm:$0xff] }
 0x626   :  { %3278 = vmatpush1.msra.mxu0 %v4858_v49  ;;  %3398 = vmatprep.subr.mxu1 %v4885_v53  ;;  %v4867_v6 = vld [vmem:[%s9062_s2 + $0x318] sm:$0xff]  ;;  %v4838_v25 = vld [vmem:[%s9062_s2 + $0x230] sm:$0xff]  ;;  %v4837_v30 = vld [vmem:[%s9062_s2 + $0x228] sm:$0xff] }
 0x627   :  { %3279 = vmatprep.subr.mxu0 %v4857_v52  ;;  %3399 = vmatpush1.msra.mxu1 %v4884_v26  ;;  %v4866_v28 = vld [vmem:[%s9062_s2 + $0x310] sm:$0xff]  ;;  %v4865_v33 = vld [vmem:[%s9062_s2 + $0x308] sm:$0xff]  ;;  %v4836_v29 = vld [vmem:[%s9062_s2 + $0x220] sm:$0xff] }
 0x628   :  { %3280 = vmatpush1.msra.mxu0 %v4856_v54  ;;  %3400 = vmatprep.subr.mxu1 %v4883_v57  ;;  %v4864_v16 = vld [vmem:[%s9062_s2 + $0x300] sm:$0xff]  ;;  %v4835_v35 = vld [vmem:[%s9062_s2 + $0x218] sm:$0xff]  ;;  %v4834_v39 = vld [vmem:[%s9062_s2 + $0x210] sm:$0xff] }
 0x629   :  { %3281 = vmatprep.subr.mxu0 %v4855_v56  ;;  %3401 = vmatpush1.msra.mxu1 %v4882_v60  ;;  %v4833_v40 = vld [vmem:[%s9062_s2 + $0x208] sm:$0xff]  ;;  %v4832_v42 = vld [vmem:[%s9062_s2 + $0x200] sm:$0xff]  ;;  %v4927_v31 = vld [vmem:[%s9062_s2 + $0x4f8] sm:$0xff] }
 0x62a   :  { %3282 = vmatpush1.msra.mxu0 %v4854_v38  ;;  %3402 = vmatprep.subr.mxu1 %v4881_v55  ;;  %v3354_v41 = vld [vmem:[#allocation3 + $0x3] sm:$0xff]  ;;  %v4926_v34 = vld [vmem:[%s9062_s2 + $0x4f0] sm:$0xff]  ;;  %v3355_v46 = vld [vmem:[#allocation3 + $0xb] sm:$0x3] }
 0x62b   :  { %3283 = vmatprep.subr.mxu0 %v4853_v61  ;;  %3403 = vmatpush1.msra.mxu1 %v4880_v0  ;;  %v3239_v37 = vld [vmem:[#allocation3 + $0x2] sm:$0xff]  ;;  %v4923_v47 = vld [vmem:[%s9062_s2 + $0x4d8] sm:$0xff]  ;;  %v4922_v36 = vld [vmem:[%s9062_s2 + $0x4d0] sm:$0xff] }
 0x62c   :  { %3284 = vmatpush1.msra.mxu0 %v4852_v62  ;;  %3404 = vmatprep.subr.mxu1 %v4879_v44  ;;  %v4925_v45 = vld [vmem:[%s9062_s2 + $0x4e8] sm:$0xff]  ;;  %v4924_v43 = vld [vmem:[%s9062_s2 + $0x4e0] sm:$0xff]  ;;  %v4919_v51 = vld [vmem:[%s9062_s2 + $0x4b8] sm:$0xff] }
 0x62d   :  { %3285 = vmatprep.subr.mxu0 %v4851_v59  ;;  %3405 = vmatpush1.msra.mxu1 %v4878_v1  ;;  %v3240_v48 = vld [vmem:[#allocation3 + $0xa] sm:$0x3]  ;;  %v4920_v50 = vld [vmem:[%s9062_s2 + $0x4c0] sm:$0xff]  ;;  %v4918_v52 = vld [vmem:[%s9062_s2 + $0x4b0] sm:$0xff] }
 0x62e   :  { %3286 = vmatpush1.msra.mxu0 %v4850_v63  ;;  %3406 = vmatprep.subr.mxu1 %v4877_v5  ;;  %v4921_v49 = vld [vmem:[%s9062_s2 + $0x4c8] sm:$0xff]  ;;  %v4916_v54 = vld [vmem:[%s9062_s2 + $0x4a0] sm:$0xff]  ;;  %v4915_v26 = vld [vmem:[%s9062_s2 + $0x498] sm:$0xff] }
 0x62f   :  { %3287 = vmatprep.subr.mxu0 %v4849_v2  ;;  %3407 = vmatpush1.msra.mxu1 %v4876_v7  ;;  %v4917_v53 = vld [vmem:[%s9062_s2 + $0x4a8] sm:$0xff]  ;;  %v4914_v56 = vld [vmem:[%s9062_s2 + $0x490] sm:$0xff]  ;;  %v4912_v38 = vld [vmem:[%s9062_s2 + $0x480] sm:$0xff] }
 0x630   :  { %3288 = vmatpush1.msra.mxu0 %v4848_v58  ;;  %3408 = vmatprep.subr.mxu1 %v4875_v9  ;;  %v4913_v57 = vld [vmem:[%s9062_s2 + $0x488] sm:$0xff]  ;;  %v4911_v60 = vld [vmem:[%s9062_s2 + $0x478] sm:$0xff]  ;;  %v4910_v61 = vld [vmem:[%s9062_s2 + $0x470] sm:$0xff] }
 0x631   :  { %3289 = vmatprep.subr.mxu0 %v4847_v8  ;;  %3409 = vmatpush1.msra.mxu1 %v4874_v11  ;;  %v4909_v55 = vld [vmem:[%s9062_s2 + $0x468] sm:$0xff]  ;;  %v4908_v62 = vld [vmem:[%s9062_s2 + $0x460] sm:$0xff]  ;;  %v4907_v0 = vld [vmem:[%s9062_s2 + $0x458] sm:$0xff] }
 0x632   :  { %3290 = vmatpush1.msra.mxu0 %v4846_v10  ;;  %3410 = vmatprep.subr.mxu1 %v4873_v15  ;;  %v4906_v59 = vld [vmem:[%s9062_s2 + $0x450] sm:$0xff]  ;;  %v4905_v44 = vld [vmem:[%s9062_s2 + $0x448] sm:$0xff]  ;;  %v4904_v63 = vld [vmem:[%s9062_s2 + $0x440] sm:$0xff] }
 0x633   :  { %3291 = vmatprep.subr.mxu0 %v4845_v14  ;;  %3411 = vmatpush1.msra.mxu1 %v4872_v17  ;;  %v4903_v1 = vld [vmem:[%s9062_s2 + $0x438] sm:$0xff]  ;;  %v4902_v2 = vld [vmem:[%s9062_s2 + $0x430] sm:$0xff]  ;;  %v4901_v5 = vld [vmem:[%s9062_s2 + $0x428] sm:$0xff] }
 0x634   :  { %3292 = vmatpush1.msra.mxu0 %v4844_v13  ;;  %3412 = vmatprep.subr.mxu1 %v4871_v4  ;;  %v4900_v58 = vld [vmem:[%s9062_s2 + $0x420] sm:$0xff]  ;;  %v4899_v7 = vld [vmem:[%s9062_s2 + $0x418] sm:$0xff]  ;;  %v4898_v8 = vld [vmem:[%s9062_s2 + $0x410] sm:$0xff] }
 0x635   :  { %3293 = vmatprep.subr.mxu0 %v4843_v18  ;;  %3413 = vmatpush1.msra.mxu1 %v4870_v20  ;;  %v4897_v9 = vld [vmem:[%s9062_s2 + $0x408] sm:$0xff]  ;;  %v4896_v10 = vld [vmem:[%s9062_s2 + $0x400] sm:$0xff]  ;;  %v4945_v15 = vld [vmem:[%s9064_s3 + $0xf8] sm:$0xff] }
 0x636   :  { %3294 = vmatpush1.msra.mxu0 %v4842_v19  ;;  %3414 = vmatprep.subr.mxu1 %v4869_v22  ;;  %v3469_v11 = vld [vmem:[#allocation3 + $0x4] sm:$0xff]  ;;  %v3470_v14 = vld [vmem:[#allocation3 + $0xc] sm:$0x3]  ;;  %v3682_v13 = vld [vmem:[%s9064_s3 + $0x78] sm:$0xff] }
 0x637   :  { %3295 = vmatprep.subr.mxu0 %v4841_v21  ;;  %3415 = vmatpush1.msra.mxu1 %v4868_v24  ;;  %v4944_v17 = vld [vmem:[%s9064_s3 + $0xf0] sm:$0xff]  ;;  %v4943_v4 = vld [vmem:[%s9064_s3 + $0xe8] sm:$0xff]  ;;  %v4942_v20 = vld [vmem:[%s9064_s3 + $0xe0] sm:$0xff] }
 0x638   :  { %3296 = vmatpush1.msra.mxu0 %v4840_v23  ;;  %3416 = vmatprep.subr.mxu1 %v4867_v6  ;;  %v3681_v18 = vld [vmem:[%s9064_s3 + $0x70] sm:$0xff]  ;;  %v3680_v19 = vld [vmem:[%s9064_s3 + $0x68] sm:$0xff]  ;;  %v3679_v21 = vld [vmem:[%s9064_s3 + $0x60] sm:$0xff] }
 0x639   :  { %3297 = vmatprep.subr.mxu0 %v4839_v12  ;;  %3417 = vmatpush1.msra.mxu1 %v4866_v28  ;;  %v4941_v22 = vld [vmem:[%s9064_s3 + $0xd8] sm:$0xff]  ;;  %v4940_v24 = vld [vmem:[%s9064_s3 + $0xd0] sm:$0xff]  ;;  %v4939_v6 = vld [vmem:[%s9064_s3 + $0xc8] sm:$0xff] }
 0x63a   :  { %3298 = vmatpush1.msra.mxu0 %v4838_v25  ;;  %3418 = vmatprep.subr.mxu1 %v4865_v33  ;;  %v3678_v23 = vld [vmem:[%s9064_s3 + $0x58] sm:$0xff]  ;;  %v3677_v12 = vld [vmem:[%s9064_s3 + $0x50] sm:$0xff]  ;;  %v3676_v25 = vld [vmem:[%s9064_s3 + $0x48] sm:$0xff] }
 0x63b   :  { %3299 = vmatprep.subr.mxu0 %v4837_v30  ;;  %3419 = vmatpush1.msra.mxu1 %v4864_v16  ;;  %v4938_v28 = vld [vmem:[%s9064_s3 + $0xc0] sm:$0xff]  ;;  %v4937_v33 = vld [vmem:[%s9064_s3 + $0xb8] sm:$0xff]  ;;  %v4936_v16 = vld [vmem:[%s9064_s3 + $0xb0] sm:$0xff] }
 0x63c   :  { %3300 = vmatpush1.msra.mxu0 %v4836_v29  ;;  %3452 = vmatprep.mubr.f32.mxu1 %v5845_v3  ;;  %v3675_v30 = vld [vmem:[%s9064_s3 + $0x40] sm:$0xff]  ;;  %v3674_v29 = vld [vmem:[%s9064_s3 + $0x38] sm:$0xff] }
 0x63d   :  { %3301 = vmatprep.subr.mxu0 %v4835_v35  ;;  %3453 = vmatmul.mubr.f32.vlgmr.msra.gmra.mxu1 %v3354_v41  ;;  %v3673_v35 = vld [vmem:[%s9064_s3 + $0x30] sm:$0xff]  ;;  %v4934_v41 = vld [vmem:[%s9064_s3 + $0xa0] sm:$0xff] }
 0x63e   :  { %3302 = vmatpush1.msra.mxu0 %v4834_v39  ;;  %3337 = vmatprep.mubr.f32.mxu0 %v5845_v3  ;;  %v4935_v39 = vld [vmem:[%s9064_s3 + $0xa8] sm:$0xff] }
 0x63f   :  { %3303 = vmatprep.subr.mxu0 %v4833_v40  ;;  %3458 = vmatprep.mubr.f32.mxu1 %v5845_v3  ;;  %v3672_v40 = vld [vmem:[%s9064_s3 + $0x28] sm:$0xff] }
 0x640   :  { %3304 = vmatpush1.msra.mxu0 %v4832_v42  ;;  %5478 = vmatprep.subr.mxu1 %v5845_v3  ;;  %v3671_v42 = vld [vmem:[%s9064_s3 + $0x20] sm:$0xff] }
 0x641   :  { %3338 = vmatmul.mubr.f32.vlgmr.msra.gmra.mxu0 %v3239_v37  ;;  %3503 = vmatprep.subr.mxu0 %v4927_v31  ;;  %v4933_v31 = vld [vmem:[%s9064_s3 + $0x98] sm:$0xff]  ;;  %v4932_v37 = vld [vmem:[%s9064_s3 + $0x90] sm:$0xff] }
 0x642   :  { %3459 = vmatmul.mubr.f32.gmra.mxu1 %v3355_v46  ;;  %3504 = vmatpush1.msra.mxu0 %v4926_v34  ;;  %v3670_v34 = vld [vmem:[%s9064_s3 + $0x18] sm:$0xff]  ;;  %v4931_v46 = vld [vmem:[%s9064_s3 + $0x88] sm:$0xff] }
 0x643   :  { %3505 = vmatprep.subr.mxu0 %v4925_v45  ;;  %3343 = vmatprep.mubr.f32.mxu0 %v5845_v3  ;;  %v3669_v45 = vld [vmem:[%s9064_s3 + $0x10] sm:$0xff] }
 0x644   :  { %3506 = vmatpush1.msra.mxu0 %v4924_v43  ;;  %5510 = vmatprep.mubr.msk.f32.mxu1 %vm5846_vm0, %v5845_v3  ;;  %v3668_v43 = vld [vmem:[%s9064_s3 + $0x8] sm:$0xff] }
 0x645   :  { %3344 = vmatmul.mubr.f32.gmra.mxu0 %v3240_v48  ;;  %3507 = vmatprep.subr.mxu0 %v4923_v47  ;;  %v4930_v47 = vld [vmem:[%s9064_s3 + $0x80] sm:$0xff] }
 0x646   :  { %3508 = vmatpush1.msra.mxu0 %v4922_v36  ;;  %3567 = vmatprep.mubr.f32.mxu0 %v5845_v3  ;;  %v3667_v36 = vld [vmem:[%s9064_s3] sm:$0xff] }
 0x647   :  { %3509 = vmatprep.subr.mxu0 %v4921_v49  ;;  %5479 = vmatpush3.msra.mxu1 %v4945_v15 }
 0x648   :  { %3510 = vmatpush1.msra.mxu0 %v4920_v50  ;;  %5480 = vmatprep.subr.mxu1 %v5845_v3 }
 0x649   :  { %3511 = vmatprep.subr.mxu0 %v4919_v51  ;;  %5481 = vmatpush3.msra.mxu1 %v4944_v17 }
 0x64a   :  { %3512 = vmatpush1.msra.mxu0 %v4918_v52  ;;  %5482 = vmatprep.subr.mxu1 %v5845_v3 }
 0x64b   :  { %3513 = vmatprep.subr.mxu0 %v4917_v53  ;;  %5483 = vmatpush3.msra.mxu1 %v4943_v4 }
 0x64c   :  { %3514 = vmatpush1.msra.mxu0 %v4916_v54  ;;  %5484 = vmatprep.subr.mxu1 %v5845_v3 }
 0x64d   :  { %3515 = vmatprep.subr.mxu0 %v4915_v26  ;;  %5485 = vmatpush3.msra.mxu1 %v4942_v20 }
 0x64e   :  { %3516 = vmatpush1.msra.mxu0 %v4914_v56  ;;  %5486 = vmatprep.subr.mxu1 %v5845_v3 }
 0x64f   :  { %3517 = vmatprep.subr.mxu0 %v4913_v57  ;;  %5487 = vmatpush3.msra.mxu1 %v4941_v22 }
 0x650   :  { %3518 = vmatpush1.msra.mxu0 %v4912_v38  ;;  %5488 = vmatprep.subr.mxu1 %v5845_v3 }
 0x651   :  { %3519 = vmatprep.subr.mxu0 %v4911_v60  ;;  %5489 = vmatpush3.msra.mxu1 %v4940_v24 }
 0x652   :  { %3520 = vmatpush1.msra.mxu0 %v4910_v61  ;;  %5490 = vmatprep.subr.mxu1 %v5845_v3 }
 0x653   :  { %3521 = vmatprep.subr.mxu0 %v4909_v55  ;;  %5491 = vmatpush3.msra.mxu1 %v4939_v6 }
 0x654   :  { %3522 = vmatpush1.msra.mxu0 %v4908_v62  ;;  %5492 = vmatprep.subr.mxu1 %v5845_v3 }
 0x655   :  { %3523 = vmatprep.subr.mxu0 %v4907_v0  ;;  %5493 = vmatpush3.msra.mxu1 %v4938_v28 }
 0x656   :  { %3524 = vmatpush1.msra.mxu0 %v4906_v59  ;;  %5494 = vmatprep.subr.mxu1 %v5845_v3  ;;  %v3584_v59 = vld [vmem:[%s9065_s7] ss:$4 sm:$0x3] }
 0x657   :  { %3525 = vmatprep.subr.mxu0 %v4905_v44  ;;  %5495 = vmatpush3.msra.mxu1 %v4937_v33  ;;  %v3595_v15 = vrot.slane %v3584_v59, %v6672_v32 }
 0x658   :  { %3526 = vmatpush1.msra.mxu0 %v4904_v63  ;;  %5496 = vmatprep.subr.mxu1 %v5845_v3 }
 0x659   :  { %3527 = vmatprep.subr.mxu0 %v4903_v1  ;;  %5497 = vmatpush3.msra.mxu1 %v4936_v16 }
 0x65a   :  { %3528 = vmatpush1.msra.mxu0 %v4902_v2  ;;  %5498 = vmatprep.subr.mxu1 %v5845_v3 }
 0x65b   :  { %3529 = vmatprep.subr.mxu0 %v4901_v5  ;;  %5499 = vmatpush3.msra.mxu1 %v4935_v39 }
 0x65c   :  { %3530 = vmatpush1.msra.mxu0 %v4900_v58  ;;  %5500 = vmatprep.subr.mxu1 %v5845_v3 }
 0x65d   :  { %3531 = vmatprep.subr.mxu0 %v4899_v7  ;;  %5501 = vmatpush3.msra.mxu1 %v4934_v41  ;;  %v3591_v7 = vrot.slane %v3584_v59, %v6667_v27 }
 0x65e   :  { %3532 = vmatpush1.msra.mxu0 %v4898_v8  ;;  %5502 = vmatprep.subr.mxu1 %v5845_v3 }
 0x65f   :  { %3533 = vmatprep.subr.mxu0 %v4897_v9  ;;  %5503 = vmatpush3.msra.mxu1 %v4933_v31 }
 0x660   :  { %3534 = vmatpush1.msra.mxu0 %v4896_v10  ;;  %5504 = vmatprep.subr.mxu1 %v5845_v3 }
 0x661   :  { %3568 = vmatmul.mubr.f32.vlgmr.msra.gmra.mxu0 %v3469_v11  ;;  %5513 = vmatprep.subr.mxu0 %v5845_v3 }
 0x662   :  { %3573 = vmatprep.mubr.f32.mxu0 %v5845_v3  ;;  %5514 = vmatpush3.msra.mxu0 %v3682_v13 }
 0x663   :  { %5515 = vmatprep.subr.mxu0 %v5845_v3  ;;  %5505 = vmatpush3.msra.mxu1 %v4932_v37 }
 0x664   :  { %5516 = vmatpush3.msra.mxu0 %v3681_v18  ;;  %5506 = vmatprep.subr.mxu1 %v5845_v3 }
 0x665   :  { %3574 = vmatmul.mubr.f32.gmra.mxu0 %v3470_v14  ;;  %5517 = vmatprep.subr.mxu0 %v5845_v3 }
 0x666   :  { %5545 = vmatprep.mubr.msk.f32.mxu0 %vm5846_vm0, %v5845_v3  ;;  %5518 = vmatpush3.msra.mxu0 %v3680_v19 }
 0x667   :  { %5519 = vmatprep.subr.mxu0 %v5845_v3  ;;  %5507 = vmatpush3.msra.mxu1 %v4931_v46 }
 0x668   :  { %5520 = vmatpush3.msra.mxu0 %v3679_v21  ;;  %5508 = vmatprep.subr.mxu1 %v5845_v3 }
 0x669   :  { %5521 = vmatprep.subr.mxu0 %v5845_v3  ;;  %5509 = vmatpush3.msra.mxu1 %v4930_v47  ;;  %v4928_v47 = vld [vmem:[%s9065_s7 + $0x1] ss:$4 sm:$0x3] }
 0x66a   :  { %5522 = vmatpush3.msra.mxu0 %v3678_v23  ;;  %5548 = vmatprep.subr.mxu1 %v5845_v3 }
 0x66b   :  { %5523 = vmatprep.subr.mxu0 %v5845_v3 }
 0x66c   :  { %5524 = vmatpush3.msra.mxu0 %v3677_v12 }
 0x66d   :  { %5525 = vmatprep.subr.mxu0 %v5845_v3 }
 0x66e   :  { %5526 = vmatpush3.msra.mxu0 %v3676_v25 }
 0x66f   :  { %5527 = vmatprep.subr.mxu0 %v5845_v3 }
 0x670   :  { %5528 = vmatpush3.msra.mxu0 %v3675_v30 }
 0x671   :  { %5529 = vmatprep.subr.mxu0 %v5845_v3 }
 0x672   :  { %5530 = vmatpush3.msra.mxu0 %v3674_v29 }
 0x673   :  { %5531 = vmatprep.subr.mxu0 %v5845_v3 }
 0x674   :  { %5532 = vmatpush3.msra.mxu0 %v3673_v35 }
 0x675   :  { %5533 = vmatprep.subr.mxu0 %v5845_v3 }
 0x676   :  { %5534 = vmatpush3.msra.mxu0 %v3672_v40 }
 0x677   :  { %5535 = vmatprep.subr.mxu0 %v5845_v3 }
 0x678   :  { %5536 = vmatpush3.msra.mxu0 %v3671_v42 }
 0x679   :  { %5537 = vmatprep.subr.mxu0 %v5845_v3 }
 0x67a   :  { %5538 = vmatpush3.msra.mxu0 %v3670_v34 }
 0x67b   :  { %5539 = vmatprep.subr.mxu0 %v5845_v3 }
 0x67c   :  { %5540 = vmatpush3.msra.mxu0 %v3669_v45 }
 0x67d   :  { %5541 = vmatprep.subr.mxu0 %v5845_v3 }
 0x67e   :  { %5542 = vmatpush3.msra.mxu0 %v3668_v43 }
 0x67f   :  { %5543 = vmatprep.subr.mxu0 %v5845_v3 }
 0x680   :  { %5544 = vmatpush3.msra.mxu0 %v3667_v36  ;;  %v4929_v36 = vld [vmem:[%s9065_s7 + $0x2] ss:$4 sm:$0x3] }
 0x681   :  { %5583 = vmatprep.subr.mxu0 %v5845_v3 }
 0x6dc   :  { %v3228_v50 = vpop.f32.mrf.mxu1 }
 0x6de   :  { %v3151_v48 = vpop.f32.mrf.mxu0  ;;  %v3230_v52 = vpop.f32.mrf.mxu1 }
 0x6df   :  { %v3229_v60 = vadd.f32 %v3228_v50, %v3151_v48  ;;  %v3630_v48 = vrot.slane %v4928_v47, %v6667_v27  ;;  %v3634_v50 = vrot.slane %v4928_v47, %v6672_v32 }
 0x6e0   :  { %v3153_v49 = vpop.f32.mrf.mxu0  ;;  %v3234_v54 = vpop.f32.mrf.mxu1 }
 0x6e1   :  { %v3231_v55 = vadd.f32 %v3230_v52, %v3153_v49  ;;  %v3645_v49 = vrot.slane %v4929_v36, %v6667_v27  ;;  %v3649_v52 = vrot.slane %v4929_v36, %v6672_v32  ;;  %v4962_v36 = vld [vmem:[%s9064_s3 + $0x180] sm:$0xff] }
 0x6e2   :  { %v3236_v56 = vpop.f32.mrf.mxu1 }
 0x6e5   :  { %v3157_v51 = vpop.f32.mrf.mxu0 }
 0x6e6   :  { %v3235_v44 = vadd.f32 %v3234_v54, %v3157_v51 }
 0x6e7   :  { %v3159_v53 = vpop.f32.mrf.mxu0 }
 0x6e8   :  { %v3237_v2 = vadd.f32 %v3236_v56, %v3159_v53 }
 0x6fd   :  { %v3454_v38 = vpop.f32.mrf.mxu1 }
 0x6ff   :  { %v3456_v0 = vpop.f32.mrf.mxu1 }
 0x701   :  { %v3339_v26 = vpop.f32.mrf.mxu0 }
 0x702   :  { %v3350_v62 = vadd.f32 %v3339_v26, %v3229_v60  ;;  %v3460_v8 = vpop.f32.mrf.mxu1 }
 0x703   :  { %v3341_v57 = vpop.f32.mrf.mxu0 }
 0x704   :  { %v3351_v63 = vadd.f32 %v3341_v57, %v3231_v55  ;;  %v3465_v58 = vadd.f32 %v3454_v38, %v3350_v62  ;;  %v3462_v19 = vpop.f32.mrf.mxu1 }
 0x705   :  { %v3345_v61 = vpop.f32.mrf.mxu0 }
 0x706   :  { %v3352_v5 = vadd.f32 %v3345_v61, %v3235_v44  ;;  %v3466_v14 = vadd.f32 %v3456_v0, %v3351_v63 }
 0x707   :  { %v3347_v1 = vpop.f32.mrf.mxu0 }
 0x708   :  { %v3353_v10 = vadd.f32 %v3347_v1, %v3237_v2  ;;  %v3467_v4 = vadd.f32 %v3460_v8, %v3352_v5 }
 0x70a   :  { %v3468_v24 = vadd.f32 %v3462_v19, %v3353_v10  ;;  %v4961_v10 = vld [vmem:[%s9064_s3 + $0x178] sm:$0xff]  ;;  %v4974_v19 = vld [vmem:[%s9064_s3 + $0x1e0] sm:$0xff] }
 0x721   :  { %v3569_v9 = vpop.f32.mrf.mxu0 }
 0x722   :  { %v3580_v11 = vadd.f32 %v3569_v9, %v3465_v58 }
 0x723   :  { %v3571_v13 = vpop.f32.mrf.mxu0 }
 0x724   :  { %v3598_v17 = vadd.f32 %v3591_v7, %v3580_v11  ;;  %v3581_v18 = vadd.f32 %v3571_v13, %v3466_v14  ;;  %v4977_v14 = vld [vmem:[%s9064_s3 + $0x1f8] sm:$0xff]  ;;  %v4976_v13 = vld [vmem:[%s9064_s3 + $0x1f0] sm:$0xff] }
 0x725   :  { %v3575_v20 = vpop.f32.mrf.mxu0 }
 0x726   :  { %v3602_v21 = vsub.f32 0.0, %v3598_v17  ;;  %v3599_v22 = vadd.f32 %v3595_v15, %v3581_v18  ;;  %v3582_v23 = vadd.f32 %v3575_v20, %v3467_v4  ;;  %v4959_v17 = vld [vmem:[%s9064_s3 + $0x168] sm:$0xff]  ;;  %v4958_v4 = vld [vmem:[%s9064_s3 + $0x160] sm:$0xff]  ;;  %v4957_v20 = vld [vmem:[%s9064_s3 + $0x158] sm:$0xff] }
 0x727   :  { %v3577_v12 = vpop.f32.mrf.mxu0  ;;  %v4975_v18 = vld [vmem:[%s9064_s3 + $0x1e8] sm:$0xff] }
 0x728   :  { %v3606_v6 = vmul.f32 1.442695, %v3602_v21  ;;  %v3603_v25 = vsub.f32 0.0, %v3599_v22  ;;  %v3600_v28 = vadd.f32 %v3591_v7, %v3582_v23  ;;  %v3583_v30 = vadd.f32 %v3577_v12, %v3468_v24  ;;  %v4973_v21 = vld [vmem:[%s9064_s3 + $0x1d8] sm:$0xff]  ;;  %v4956_v22 = vld [vmem:[%s9064_s3 + $0x150] sm:$0xff]  ;;  %v4955_v24 = vld [vmem:[%s9064_s3 + $0x148] sm:$0xff] }
 0x729   :  { %v4972_v23 = vld [vmem:[%s9064_s3 + $0x1d0] sm:$0xff]  ;;  %v4971_v12 = vld [vmem:[%s9064_s3 + $0x1c8] sm:$0xff] }
 0x72a   :  { %5817 = vpow2.f32 %v3606_v6  ;;  %v3608_v33 = vmul.f32 1.442695, %v3603_v25  ;;  %v3604_v29 = vsub.f32 0.0, %v3600_v28  ;;  %v3601_v16 = vadd.f32 %v3595_v15, %v3583_v30  ;;  %v4960_v15 = vld [vmem:[%s9064_s3 + $0x170] sm:$0xff]  ;;  %v4954_v6 = vld [vmem:[%s9064_s3 + $0x140] sm:$0xff]  ;;  %v4953_v28 = vld [vmem:[%s9064_s3 + $0x138] sm:$0xff] }
 0x72b   :  { %v4970_v25 = vld [vmem:[%s9064_s3 + $0x1c0] sm:$0xff]  ;;  %v4969_v30 = vld [vmem:[%s9064_s3 + $0x1b8] sm:$0xff] }
 0x72c   :  { %5819 = vpow2.f32 %v3608_v33  ;;  %v3610_v35 = vmul.f32 1.442695, %v3604_v29  ;;  %v3605_v39 = vsub.f32 0.0, %v3601_v16  ;;  %v4952_v33 = vld [vmem:[%s9064_s3 + $0x130] sm:$0xff]  ;;  %v4951_v16 = vld [vmem:[%s9064_s3 + $0x128] sm:$0xff] }
 0x72d   :  { %v4968_v29 = vld [vmem:[%s9064_s3 + $0x1b0] sm:$0xff] }
 0x72e   :  { %5821 = vpow2.f32 %v3610_v35  ;;  %v3612_v40 = vmul.f32 1.442695, %v3605_v39  ;;  %v4967_v35 = vld [vmem:[%s9064_s3 + $0x1a8] sm:$0xff]  ;;  %v4950_v39 = vld [vmem:[%s9064_s3 + $0x120] sm:$0xff] }
 0x730   :  { %5823 = vpow2.f32 %v3612_v40  ;;  %v4966_v40 = vld [vmem:[%s9064_s3 + $0x1a0] sm:$0xff] }
 0x737   :  { %v5818_v41 = vpop.eup %5817 }
 0x738   :  { %v3614_v42 = vadd.f32 1.0, %v5818_v41  ;;  %v4949_v41 = vld [vmem:[%s9064_s3 + $0x118] sm:$0xff] }
 0x739   :  { %v5820_v31 = vpop.eup %5819 }
 0x73a   :  { %5825 = vrcp.f32 %v3614_v42  ;;  %v3615_v34 = vadd.f32 1.0, %v5820_v31  ;;  %v4965_v42 = vld [vmem:[%s9064_s3 + $0x198] sm:$0xff]  ;;  %v4948_v31 = vld [vmem:[%s9064_s3 + $0x110] sm:$0xff] }
 0x73b   :  { %v5822_v37 = vpop.eup %5821 }
 0x73c   :  { %5827 = vrcp.f32 %v3615_v34  ;;  %v3616_v45 = vadd.f32 1.0, %v5822_v37  ;;  %v4964_v34 = vld [vmem:[%s9064_s3 + $0x190] sm:$0xff]  ;;  %v4947_v37 = vld [vmem:[%s9064_s3 + $0x108] sm:$0xff] }
 0x73d   :  { %v5824_v46 = vpop.eup %5823 }
 0x73e   :  { %5829 = vrcp.f32 %v3616_v45  ;;  %v3617_v43 = vadd.f32 1.0, %v5824_v46  ;;  %v4963_v45 = vld [vmem:[%s9064_s3 + $0x188] sm:$0xff]  ;;  %v4946_v46 = vld [vmem:[%s9064_s3 + $0x100] sm:$0xff] }
 0x740   :  { %5831 = vrcp.f32 %v3617_v43 }
 0x747   :  { %v5826_v51 = vpop.eup %5825 }
 0x748   :  { %v3637_v53 = vmul.f32 %v5826_v51, %v3630_v48 }
 0x749   :  { %v5828_v54 = vpop.eup %5827 }
 0x74a   :  { %v3652_v26 = vadd.f32 %v3645_v49, %v3637_v53  ;;  %v3638_v56 = vmul.f32 %v5828_v54, %v3634_v50  ;;  %v4992_v53 = vld [vmem:[%s9064_s3 + $0x270] sm:$0xff]  ;;  %v4991_v54 = vld [vmem:[%s9064_s3 + $0x268] sm:$0xff] }
 0x74b   :  { %v5830_v57 = vpop.eup %5829 }
 0x74c   :  { %v3653_v38 = vadd.f32 %v3649_v52, %v3638_v56  ;;  %v3639_v60 = vmul.f32 %v5830_v57, %v3630_v48  ;;  %v3656_v55 = vmax.f32 %v3652_v26, 0.0  ;;  %v4990_v26 = vld [vmem:[%s9064_s3 + $0x260] sm:$0xff]  ;;  %v4989_v56 = vld [vmem:[%s9064_s3 + $0x258] sm:$0xff]  ;;  %v4988_v57 = vld [vmem:[%s9064_s3 + $0x250] sm:$0xff] }
 0x74d   :  { %v5832_v61 = vpop.eup %5831 }
 0x74e   :  { %v3657_v62 = vmax.f32 %v3653_v38, 0.0  ;;  %v3654_v0 = vadd.f32 %v3645_v49, %v3639_v60  ;;  %v3640_v59 = vmul.f32 %v5832_v61, %v3634_v50  ;;  %v4987_v38 = vld [vmem:[%s9064_s3 + $0x248] sm:$0xff]  ;;  %v4986_v60 = vld [vmem:[%s9064_s3 + $0x240] sm:$0xff]  ;;  %v4985_v61 = vld [vmem:[%s9064_s3 + $0x238] sm:$0xff] }
 0x750   :  { %v3660_v44 = vmax.f32 %v3656_v55, %v3657_v62  ;;  %v3655_v63 = vadd.f32 %v3649_v52, %v3640_v59  ;;  %v3658_v1 = vmax.f32 %v3654_v0, 0.0  ;;  %v4993_v52 = vld [vmem:[%s9064_s3 + $0x278] sm:$0xff]  ;;  %v4984_v55 = vld [vmem:[%s9064_s3 + $0x230] sm:$0xff]  ;;  %v4983_v62 = vld [vmem:[%s9064_s3 + $0x228] sm:$0xff] }
 0x751   :  { %v4982_v0 = vld [vmem:[%s9064_s3 + $0x220] sm:$0xff]  ;;  %v4981_v59 = vld [vmem:[%s9064_s3 + $0x218] sm:$0xff] }
 0x752   :  { %3662 = vst [vmem:[#allocation2] sm:$0xff] %v3660_v44  ;;  %v3659_v2 = vmax.f32 %v3655_v63, 0.0  ;;  %v4980_v44 = vld [vmem:[%s9064_s3 + $0x210] sm:$0xff]  ;;  %v4979_v63 = vld [vmem:[%s9064_s3 + $0x208] sm:$0xff] }
 0x754   :  { %v3661_v5 = vmax.f32 %v3658_v1, %v3659_v2 }
 0x756   :  { %3663 = vst [vmem:[#allocation2 + $0x8] sm:$0x3] %v3661_v5  ;;  %v4978_v5 = vld [vmem:[%s9064_s3 + $0x200] sm:$0xff] }
 0x759   :  { %v3683_v32 = vld [vmem:[#allocation2 + $0x2] sm:$0x1]  ;;  %v3684_v58 = vld [vmem:[#allocation2 + $0x3] sm:$0x1]  ;;  %v3664_v7 = vld [vmem:[#allocation2] sm:$0x1] }
 0x75a   :  { %v3685_v8 = vmax.f32 %v3683_v32, %v3684_v58  ;;  %v3665_v9 = vld [vmem:[#allocation2 + $0x1] sm:$0x1]  ;;  %v3842_v43 = vld [vmem:[#allocation2 + $0x4] sm:$0x1]  ;;  %v3843_v47 = vld [vmem:[#allocation2 + $0x5] sm:$0x1] }
 0x75b   :  { %v3666_v11 = vmax.f32 %v3664_v7, %v3665_v9  ;;  %v3932_v48 = vld [vmem:[#allocation2 + $0x6] sm:$0x1]  ;;  %v3933_v49 = vld [vmem:[#allocation2 + $0x7] sm:$0x1]  ;;  %v3844_v50 = vmax.f32 %v3842_v43, %v3843_v47  ;;  %v4140_v58 = vld [vmem:[%s9066_s4 + $0x78] sm:$0xff] }
 0x75c   :  { %5511 = vmatmul.mubr.f32.vlgmr.msra.gmra.mxu1 %v3685_v8  ;;  %v3934_v51 = vmax.f32 %v3932_v48, %v3933_v49  ;;  %v4139_v7 = vld [vmem:[%s9066_s4 + $0x70] sm:$0xff]  ;;  %v4138_v8 = vld [vmem:[%s9066_s4 + $0x68] sm:$0xff]  ;;  %v4137_v9 = vld [vmem:[%s9066_s4 + $0x60] sm:$0xff] }
 0x75d   :  { %5546 = vmatmul.mubr.f32.vlgmr.msra.gmra.mxu0 %v3666_v11  ;;  %5549 = vmatpush3.msra.mxu1 %v4961_v10  ;;  %v4022_v1 = vld [vmem:[#allocation2 + $0x8] sm:$0x1]  ;;  %v4023_v2 = vld [vmem:[#allocation2 + $0x9] sm:$0x1]  ;;  %v4136_v10 = vld [vmem:[%s9066_s4 + $0x58] sm:$0xff] }
 0x75e   :  { %5584 = vmatpush3.msra.mxu0 %v4977_v14  ;;  %5550 = vmatprep.subr.mxu1 %v5845_v3  ;;  %v4024_v32 = vmax.f32 %v4022_v1, %v4023_v2  ;;  %v4135_v11 = vld [vmem:[%s9066_s4 + $0x50] sm:$0xff]  ;;  %v4134_v14 = vld [vmem:[%s9066_s4 + $0x48] sm:$0xff]  ;;  %v4113_v43 = vld [vmem:[%s9067_s8 + $0x1] sm:$0x1] }
 0x75f   :  { %5585 = vmatprep.subr.mxu0 %v5845_v3  ;;  %5551 = vmatpush3.msra.mxu1 %v4960_v15  ;;  %v4133_v15 = vld [vmem:[%s9066_s4 + $0x40] sm:$0xff] }
 0x760   :  { %5586 = vmatpush3.msra.mxu0 %v4976_v13  ;;  %5552 = vmatprep.subr.mxu1 %v5845_v3  ;;  %v4132_v13 = vld [vmem:[%s9066_s4 + $0x38] sm:$0xff]  ;;  %v4141_v1 = vld [vmem:[%s9069_s9] sm:$0x1] }
 0x761   :  { %5587 = vmatprep.subr.mxu0 %v5845_v3  ;;  %5553 = vmatpush3.msra.mxu1 %v4959_v17  ;;  %v4131_v17 = vld [vmem:[%s9066_s4 + $0x30] sm:$0xff] }
 0x762   :  { %5588 = vmatpush3.msra.mxu0 %v4975_v18  ;;  %5554 = vmatprep.subr.mxu1 %v5845_v3  ;;  %v4130_v18 = vld [vmem:[%s9066_s4 + $0x28] sm:$0xff] }
 0x763   :  { %5589 = vmatprep.subr.mxu0 %v5845_v3  ;;  %5555 = vmatpush3.msra.mxu1 %v4958_v4  ;;  %v4129_v4 = vld [vmem:[%s9066_s4 + $0x20] sm:$0xff] }
 0x764   :  { %5590 = vmatpush3.msra.mxu0 %v4974_v19  ;;  %5556 = vmatprep.subr.mxu1 %v5845_v3  ;;  %v4128_v19 = vld [vmem:[%s9066_s4 + $0x18] sm:$0xff] }
 0x765   :  { %5591 = vmatprep.subr.mxu0 %v5845_v3  ;;  %5557 = vmatpush3.msra.mxu1 %v4957_v20  ;;  %v4127_v20 = vld [vmem:[%s9066_s4 + $0x10] sm:$0xff] }
 0x766   :  { %5592 = vmatpush3.msra.mxu0 %v4973_v21  ;;  %5558 = vmatprep.subr.mxu1 %v5845_v3  ;;  %v4126_v21 = vld [vmem:[%s9066_s4 + $0x8] sm:$0xff] }
 0x767   :  { %5593 = vmatprep.subr.mxu0 %v5845_v3  ;;  %5559 = vmatpush3.msra.mxu1 %v4956_v22  ;;  %v4125_v22 = vld [vmem:[%s9066_s4] sm:$0xff] }
 0x768   :  { %5594 = vmatpush3.msra.mxu0 %v4972_v23  ;;  %5560 = vmatprep.subr.mxu1 %v5845_v3 }
 0x769   :  { %5595 = vmatprep.subr.mxu0 %v5845_v3  ;;  %5561 = vmatpush3.msra.mxu1 %v4955_v24 }
 0x76a   :  { %5596 = vmatpush3.msra.mxu0 %v4971_v12  ;;  %5562 = vmatprep.subr.mxu1 %v5845_v3 }
 0x76b   :  { %5597 = vmatprep.subr.mxu0 %v5845_v3  ;;  %5563 = vmatpush3.msra.mxu1 %v4954_v6 }
 0x76c   :  { %5598 = vmatpush3.msra.mxu0 %v4970_v25  ;;  %5564 = vmatprep.subr.mxu1 %v5845_v3 }
 0x76d   :  { %5599 = vmatprep.subr.mxu0 %v5845_v3  ;;  %5565 = vmatpush3.msra.mxu1 %v4953_v28 }
 0x76e   :  { %5600 = vmatpush3.msra.mxu0 %v4969_v30  ;;  %5566 = vmatprep.subr.mxu1 %v5845_v3 }
 0x76f   :  { %5601 = vmatprep.subr.mxu0 %v5845_v3  ;;  %5567 = vmatpush3.msra.mxu1 %v4952_v33 }
 0x770   :  { %5602 = vmatpush3.msra.mxu0 %v4968_v29  ;;  %5568 = vmatprep.subr.mxu1 %v5845_v3 }
 0x771   :  { %5603 = vmatprep.subr.mxu0 %v5845_v3  ;;  %5569 = vmatpush3.msra.mxu1 %v4951_v16 }
 0x772   :  { %5604 = vmatpush3.msra.mxu0 %v4967_v35  ;;  %5570 = vmatprep.subr.mxu1 %v5845_v3 }
 0x773   :  { %5605 = vmatprep.subr.mxu0 %v5845_v3  ;;  %5571 = vmatpush3.msra.mxu1 %v4950_v39 }
 0x774   :  { %5606 = vmatpush3.msra.mxu0 %v4966_v40  ;;  %5572 = vmatprep.subr.mxu1 %v5845_v3  ;;  %v4112_v40 = vld [vmem:[%s9067_s8] sm:$0x1] }
 0x775   :  { %5607 = vmatprep.subr.mxu0 %v5845_v3  ;;  %5573 = vmatpush3.msra.mxu1 %v4949_v41 }
 0x776   :  { %5608 = vmatpush3.msra.mxu0 %v4965_v42  ;;  %5574 = vmatprep.subr.mxu1 %v5845_v3 }
 0x777   :  { %5609 = vmatprep.subr.mxu0 %v5845_v3  ;;  %5575 = vmatpush3.msra.mxu1 %v4948_v31 }
 0x778   :  { %5610 = vmatpush3.msra.mxu0 %v4964_v34  ;;  %5576 = vmatprep.subr.mxu1 %v5845_v3 }
 0x779   :  { %5611 = vmatprep.subr.mxu0 %v5845_v3  ;;  %5577 = vmatpush3.msra.mxu1 %v4947_v37 }
 0x77a   :  { %5612 = vmatpush3.msra.mxu0 %v4963_v45  ;;  %5578 = vmatprep.subr.mxu1 %v5845_v3 }
 0x77b   :  { %5613 = vmatprep.subr.mxu0 %v5845_v3  ;;  %5579 = vmatpush3.msra.mxu1 %v4946_v46 }
 0x77c   :  { %5580 = vmatprep.mubr.msk.f32.mxu1 %vm5846_vm0, %v5845_v3  ;;  %5614 = vmatpush3.msra.mxu0 %v4962_v36  ;;  %v4114_v36 = vld [vmem:[%s9067_s8 + $0x2] sm:$0x1] }
 0x77d   :  { %5615 = vmatprep.mubr.msk.f32.mxu0 %vm5846_vm0, %v5845_v3  ;;  %5581 = vmatmul.mubr.f32.vlgmr.msra.gmra.mxu1 %v3844_v50 }
 0x77e   :  { %5616 = vmatmul.mubr.f32.vlgmr.msra.gmra.mxu0 %v3934_v51  ;;  %5618 = vmatprep.subr.mxu1 %v5845_v3  ;;  %v4238_v51 = vld [vmem:[%s9068_s5 + $0x78] sm:$0xff] }
 0x77f   :  { %5619 = vmatpush3.msra.mxu1 %v4993_v52  ;;  %5650 = vmatprep.mubr.msk.f32.mxu1 %vm5846_vm0, %v5845_v3  ;;  %v4237_v52 = vld [vmem:[%s9068_s5 + $0x70] sm:$0xff] }
 0x780   :  { %5620 = vmatprep.subr.mxu1 %v5845_v3  ;;  %5653 = vmatprep.subr.mxu0 %v5845_v3 }
 0x781   :  { %5621 = vmatpush3.msra.mxu1 %v4992_v53  ;;  %5685 = vmatprep.mubr.msk.f32.mxu0 %vm5846_vm0, %v5845_v3  ;;  %v4236_v53 = vld [vmem:[%s9068_s5 + $0x68] sm:$0xff] }
 0x782   :  { %5622 = vmatprep.subr.mxu1 %v5845_v3  ;;  %5654 = vmatpush3.msra.mxu0 %v4140_v58 }
 0x783   :  { %5623 = vmatpush3.msra.mxu1 %v4991_v54  ;;  %5655 = vmatprep.subr.mxu0 %v5845_v3  ;;  %v4235_v54 = vld [vmem:[%s9068_s5 + $0x60] sm:$0xff] }
 0x784   :  { %5624 = vmatprep.subr.mxu1 %v5845_v3  ;;  %5656 = vmatpush3.msra.mxu0 %v4139_v7 }
 0x785   :  { %5625 = vmatpush3.msra.mxu1 %v4990_v26  ;;  %5657 = vmatprep.subr.mxu0 %v5845_v3  ;;  %v4234_v26 = vld [vmem:[%s9068_s5 + $0x58] sm:$0xff] }
 0x786   :  { %5626 = vmatprep.subr.mxu1 %v5845_v3  ;;  %5658 = vmatpush3.msra.mxu0 %v4138_v8 }
 0x787   :  { %5627 = vmatpush3.msra.mxu1 %v4989_v56  ;;  %5659 = vmatprep.subr.mxu0 %v5845_v3  ;;  %v4233_v56 = vld [vmem:[%s9068_s5 + $0x50] sm:$0xff] }
 0x788   :  { %5628 = vmatprep.subr.mxu1 %v5845_v3  ;;  %5660 = vmatpush3.msra.mxu0 %v4137_v9 }
 0x789   :  { %5629 = vmatpush3.msra.mxu1 %v4988_v57  ;;  %5661 = vmatprep.subr.mxu0 %v5845_v3  ;;  %v4232_v57 = vld [vmem:[%s9068_s5 + $0x48] sm:$0xff] }
 0x78a   :  { %5630 = vmatprep.subr.mxu1 %v5845_v3  ;;  %5662 = vmatpush3.msra.mxu0 %v4136_v10  ;;  %v4142_v10 = vld [vmem:[%s9069_s9 + $0x1] sm:$0x1] }
 0x78b   :  { %5631 = vmatpush3.msra.mxu1 %v4987_v38  ;;  %5663 = vmatprep.subr.mxu0 %v5845_v3  ;;  %v4231_v38 = vld [vmem:[%s9068_s5 + $0x40] sm:$0xff] }
 0x78c   :  { %5632 = vmatprep.subr.mxu1 %v5845_v3  ;;  %5664 = vmatpush3.msra.mxu0 %v4135_v11 }
 0x78d   :  { %5633 = vmatpush3.msra.mxu1 %v4986_v60  ;;  %5665 = vmatprep.subr.mxu0 %v5845_v3  ;;  %v4230_v60 = vld [vmem:[%s9068_s5 + $0x38] sm:$0xff] }
 0x78e   :  { %5634 = vmatprep.subr.mxu1 %v5845_v3  ;;  %5666 = vmatpush3.msra.mxu0 %v4134_v14 }
 0x78f   :  { %5635 = vmatpush3.msra.mxu1 %v4985_v61  ;;  %5667 = vmatprep.subr.mxu0 %v5845_v3  ;;  %v4229_v61 = vld [vmem:[%s9068_s5 + $0x30] sm:$0xff] }
 0x790   :  { %5636 = vmatprep.subr.mxu1 %v5845_v3  ;;  %5668 = vmatpush3.msra.mxu0 %v4133_v15 }
 0x791   :  { %5637 = vmatpush3.msra.mxu1 %v4984_v55  ;;  %5669 = vmatprep.subr.mxu0 %v5845_v3  ;;  %v4228_v55 = vld [vmem:[%s9068_s5 + $0x28] sm:$0xff] }
 0x792   :  { %5638 = vmatprep.subr.mxu1 %v5845_v3  ;;  %5670 = vmatpush3.msra.mxu0 %v4132_v13 }
 0x793   :  { %5639 = vmatpush3.msra.mxu1 %v4983_v62  ;;  %5671 = vmatprep.subr.mxu0 %v5845_v3  ;;  %v4227_v62 = vld [vmem:[%s9068_s5 + $0x20] sm:$0xff] }
 0x794   :  { %5640 = vmatprep.subr.mxu1 %v5845_v3  ;;  %5672 = vmatpush3.msra.mxu0 %v4131_v17  ;;  %v4239_v17 = vld [vmem:[%s9070_s10] sm:$0x1] }
 0x795   :  { %5641 = vmatpush3.msra.mxu1 %v4982_v0  ;;  %5673 = vmatprep.subr.mxu0 %v5845_v3  ;;  %v4226_v0 = vld [vmem:[%s9068_s5 + $0x18] sm:$0xff] }
 0x796   :  { %5642 = vmatprep.subr.mxu1 %v5845_v3  ;;  %5674 = vmatpush3.msra.mxu0 %v4130_v18 }
 0x797   :  { %5643 = vmatpush3.msra.mxu1 %v4981_v59  ;;  %5675 = vmatprep.subr.mxu0 %v5845_v3  ;;  %v4225_v59 = vld [vmem:[%s9068_s5 + $0x10] sm:$0xff] }
 0x798   :  { %5644 = vmatprep.subr.mxu1 %v5845_v3  ;;  %5676 = vmatpush3.msra.mxu0 %v4129_v4 }
 0x799   :  { %5645 = vmatpush3.msra.mxu1 %v4980_v44  ;;  %5677 = vmatprep.subr.mxu0 %v5845_v3  ;;  %v4224_v44 = vld [vmem:[%s9068_s5 + $0x8] sm:$0xff] }
 0x79a   :  { %5646 = vmatprep.subr.mxu1 %v5845_v3  ;;  %5678 = vmatpush3.msra.mxu0 %v4128_v19 }
 0x79b   :  { %5647 = vmatpush3.msra.mxu1 %v4979_v63  ;;  %5679 = vmatprep.subr.mxu0 %v5845_v3  ;;  %v4223_v63 = vld [vmem:[%s9068_s5] sm:$0xff] }
 0x79c   :  { %5648 = vmatprep.subr.mxu1 %v5845_v3  ;;  %5680 = vmatpush3.msra.mxu0 %v4127_v20 }
 0x79d   :  { %5649 = vmatpush3.msra.mxu1 %v4978_v5  ;;  %5681 = vmatprep.subr.mxu0 %v5845_v3 }
 0x79e   :  { %5651 = vmatmul.mubr.f32.vlgmr.msra.gmra.mxu1 %v4024_v32  ;;  %5688 = vmatprep.subr.mxu1 %v5845_v3 }
 0x79f   :  { %5720 = vmatprep.mubr.msk.f32.mxu1 %vm5846_vm0, %v5845_v3  ;;  %5682 = vmatpush3.msra.mxu0 %v4126_v21 }
 0x7a0   :  { %5683 = vmatprep.subr.mxu0 %v5845_v3  ;;  %5689 = vmatpush3.msra.mxu1 %v4238_v51 }
 0x7a1   :  { %5684 = vmatpush3.msra.mxu0 %v4125_v22  ;;  %5690 = vmatprep.subr.mxu1 %v5845_v3 }
 0x7a2   :  { %5691 = vmatpush3.msra.mxu1 %v4237_v52 }
 0x7a3   :  { %5692 = vmatprep.subr.mxu1 %v5845_v3 }
 0x7a4   :  { %5693 = vmatpush3.msra.mxu1 %v4236_v53 }
 0x7a5   :  { %5694 = vmatprep.subr.mxu1 %v5845_v3 }
 0x7a6   :  { %5695 = vmatpush3.msra.mxu1 %v4235_v54 }
 0x7a7   :  { %5696 = vmatprep.subr.mxu1 %v5845_v3 }
 0x7a8   :  { %5697 = vmatpush3.msra.mxu1 %v4234_v26 }
 0x7a9   :  { %5698 = vmatprep.subr.mxu1 %v5845_v3 }
 0x7aa   :  { %5699 = vmatpush3.msra.mxu1 %v4233_v56 }
 0x7ab   :  { %5700 = vmatprep.subr.mxu1 %v5845_v3 }
 0x7ac   :  { %5701 = vmatpush3.msra.mxu1 %v4232_v57 }
 0x7ad   :  { %5702 = vmatprep.subr.mxu1 %v5845_v3 }
 0x7ae   :  { %5703 = vmatpush3.msra.mxu1 %v4231_v38 }
 0x7af   :  { %5704 = vmatprep.subr.mxu1 %v5845_v3 }
 0x7b0   :  { %5705 = vmatpush3.msra.mxu1 %v4230_v60 }
 0x7b1   :  { %5706 = vmatprep.subr.mxu1 %v5845_v3 }
 0x7b2   :  { %5707 = vmatpush3.msra.mxu1 %v4229_v61 }
 0x7b3   :  { %5708 = vmatprep.subr.mxu1 %v5845_v3 }
 0x7b4   :  { %5709 = vmatpush3.msra.mxu1 %v4228_v55 }
 0x7b5   :  { %5710 = vmatprep.subr.mxu1 %v5845_v3 }
 0x7b6   :  { %5711 = vmatpush3.msra.mxu1 %v4227_v62 }
 0x7b7   :  { %5712 = vmatprep.subr.mxu1 %v5845_v3 }
 0x7b8   :  { %5713 = vmatpush3.msra.mxu1 %v4226_v0 }
 0x7b9   :  { %5714 = vmatprep.subr.mxu1 %v5845_v3 }
 0x7ba   :  { %5715 = vmatpush3.msra.mxu1 %v4225_v59 }
 0x7bb   :  { %5716 = vmatprep.subr.mxu1 %v5845_v3 }
 0x7bc   :  { %5717 = vmatpush3.msra.mxu1 %v4224_v44 }
 0x7bd   :  { %5718 = vmatprep.subr.mxu1 %v5845_v3  ;;  %v4143_v3 = vld [vmem:[%s9069_s9 + $0x2] sm:$0x1] }
 0x7be   :  { %5719 = vmatpush3.msra.mxu1 %v4223_v63 }
 0x81c   :  { %v3768_v23 = vpop.f32.mrf.mxu1 }
 0x81d   :  { %v3838_v24 = vpop.f32.mrf.mxu0 }
 0x81e   :  { %v5512_v12 = vpop.f32.mrf.mxu1  ;;  %v3839_v29 = vadd.f32 %v3838_v24, %v3768_v23 }
 0x81f   :  { %v5547_v6 = vpop.f32.mrf.mxu0 }
 0x83d   :  { %v3927_v25 = vpop.f32.mrf.mxu1 }
 0x83e   :  { %v4017_v28 = vpop.f32.mrf.mxu0  ;;  %v3931_v16 = vadd.f32 %v3927_v25, %v3839_v29 }
 0x83f   :  { %v5582_v30 = vpop.f32.mrf.mxu1 }
 0x840   :  { %v5617_v33 = vpop.f32.mrf.mxu0  ;;  %v4021_v35 = vadd.f32 %v4017_v28, %v3931_v16 }
 0x85e   :  { %v4107_v39 = vpop.f32.mrf.mxu1 }
 0x85f   :  { %v4111_v41 = vadd.f32 %v4107_v39, %v4021_v35 }
 0x860   :  { %v5652_v42 = vpop.f32.mrf.mxu1 }
 0x861   :  { %v4115_v31 = vadd.f32 %v4112_v40, %v4111_v41 }
 0x863   :  { %v4116_v34 = vsub.f32 0.0, %v4115_v31 }
 0x865   :  { %v4117_v37 = vmul.f32 1.442695, %v4116_v34 }
 0x867   :  { %5833 = vpow2.f32 %v4117_v37 }
 0x874   :  { %v5834_v45 = vpop.eup %5833 }
 0x875   :  { %v4119_v46 = vadd.f32 1.0, %v5834_v45 }
 0x877   :  { %5835 = vrcp.f32 %v4119_v46 }
 0x884   :  { %v5836_v47 = vpop.eup %5835 }
 0x885   :  { %v4122_v48 = vmul.f32 %v5836_v47, %v4113_v43 }
 0x887   :  { %v4123_v49 = vadd.f32 %v4122_v48, %v4114_v36 }
 0x889   :  { %v4124_v50 = vmax.f32 %v4123_v49, 0.0 }
 0x88b   :  { %5686 = vmatmul.mubr.f32.vlgmr.msra.gmra.mxu0 %v4124_v50 }
 0x94b   :  { %v4210_v2 = vpop.f32.mrf.mxu0 }
 0x94c   :  { %v4211_v5 = vadd.f32 %v4210_v2, %v4141_v1 }
 0x94d   :  { %v5687_v32 = vpop.f32.mrf.mxu0 }
 0x94e   :  { %v4214_v58 = vsub.f32 0.0, %v4211_v5 }
 0x950   :  { %v4215_v7 = vmul.f32 1.442695, %v4214_v58 }
 0x952   :  { %5837 = vpow2.f32 %v4215_v7 }
 0x95f   :  { %v5838_v8 = vpop.eup %5837 }
 0x960   :  { %v4217_v9 = vadd.f32 1.0, %v5838_v8 }
 0x962   :  { %5839 = vrcp.f32 %v4217_v9 }
 0x96f   :  { %v5840_v11 = vpop.eup %5839 }
 0x970   :  { %v4220_v14 = vmul.f32 %v5840_v11, %v4142_v10 }
 0x972   :  { %v4221_v15 = vadd.f32 %v4220_v14, %v4143_v3 }
 0x974   :  { %v4222_v13 = vmax.f32 %v4221_v15, 0.0 }
 0x976   :  { %5721 = vmatmul.mubr.f32.vlgmr.msra.gmra.mxu1 %v4222_v13 }
 0xa36   :  { %v4306_v18 = vpop.f32.mrf.mxu1 }
 0xa37   :  { %v4307_v4 = vadd.f32 %v4306_v18, %v4239_v17 }
 0xa38   :  { %v5722_v19 = vpop.f32.mrf.mxu1 }
 0xa39   :  { %v4310_v20 = vsub.f32 0.0, %v4307_v4 }
 0xa3b   :  { %v4311_v21 = vmul.f32 1.442695, %v4310_v20 }
 0xa3d   :  { %5841 = vpow2.f32 %v4311_v21 }
 0xa4a   :  { %v5842_v22 = vpop.eup %5841 }
 0xa4b   :  { %v4313_v23 = vadd.f32 1.0, %v5842_v22 }
 0xa4d   :  { %5843 = vrcp.f32 %v4313_v23 }
 0xa5a   :  { %v5844_v24 = vpop.eup %5843 }
 0xa5b   :  { %v4319_v12 = vrot.slane %v5844_v24, %v6667_v27 }
 0xa5d   :  { %4994 = vst [vmem:[%s9071_s11 + $0x8] sm:$0xff] %v4319_v12 }

</bundles_post_ra>
